<compile_context>
chip_gen: v7x
topology: tpu7x:2x2x1
jax: 0.10.0
libtpu: 0.0.40
codegen_flags: <defaults>
</compile_context>

<pallas_src>
import functools

import jax
import jax.numpy as jnp
import numpy as np
from jax.experimental import pallas as pl
from jax.experimental.pallas import tpu as pltpu

EPS = 1e-5
LANE = 128                       # lane width: pad channels to this
VMEM_LIMIT = 32 * 1024 * 1024    # safe on v5e/v6e/v7x; tiles use < 2 MiB


def _round_up(x, m):
    return (x + m - 1) // m * m


# ----------------------------------------------------------------------------
# Shared conv core: 3x3 / stride 1 / pad 1 via a single im2col matmul.
# ----------------------------------------------------------------------------
def _im2col_conv(src_hwc_f32, w_ref, xpad, cols):
    """src_hwc_f32: (H, W, Cp) f32 (already BN/ReLU'd if needed).
    w_ref: (9*Cp, Cp) bf16, rows ordered (kh, kw, cin).
    xpad:  (H+2, Wpp, Cp) bf16 scratch, halo pre-zeroed at grid step 0.
    cols:  (H*W, 9*Cp) bf16 scratch (im2col patch matrix).
    Returns (H*W, Cp) f32 conv output."""
    H, W, Cp = src_hwc_f32.shape
    # interior store (halo + W-alignment pad stay zero across grid steps)
    xpad[1:1 + H, 1:1 + W, :] = src_hwc_f32.astype(jnp.bfloat16)
    for kh in range(3):
        for kw in range(3):
            k = kh * 3 + kw
            cols[:, k * Cp:(k + 1) * Cp] = (
                xpad[kh:kh + H, kw:kw + W, :].reshape(H * W, Cp))
    return jnp.dot(cols[...], w_ref[...], preferred_element_type=jnp.float32)


# ----------------------------------------------------------------------------
# K1: conv1 + accumulation of BN1 moments (sum, sum of squares).
# ----------------------------------------------------------------------------
def _conv1_kernel(x_ref, w_ref, y_ref, mom_ref, xpad, cols):
    i = pl.program_id(0)

    @pl.when(i == 0)
    def _init():
        xpad[...] = jnp.zeros_like(xpad)
        mom_ref[...] = jnp.zeros_like(mom_ref)

    _, H, W, Cp = x_ref.shape
    acc = _im2col_conv(x_ref[0], w_ref, xpad, cols)          # (H*W, Cp) f32
    y_ref[...] = acc.reshape(1, H, W, Cp)
    mom_ref[0:1, :] += jnp.sum(acc, axis=0, keepdims=True)
    mom_ref[1:2, :] += jnp.sum(acc * acc, axis=0, keepdims=True)


# ----------------------------------------------------------------------------
# K2: BN1 (from accumulated moments) + ReLU + conv2 + BN2 moment accumulation.
# ----------------------------------------------------------------------------
def _bn_relu_conv2_kernel(y1_ref, mom1_ref, g1_ref, b1_ref, w_ref,
                          y_ref, mom_ref, xpad, cols, *, count):
    i = pl.program_id(0)

    @pl.when(i == 0)
    def _init():
        xpad[...] = jnp.zeros_like(xpad)
        mom_ref[...] = jnp.zeros_like(mom_ref)

    _, H, W, Cp = y1_ref.shape
    inv_n = 1.0 / count
    mean = mom1_ref[0:1, :] * inv_n                                  # (1, Cp)
    var = jnp.maximum(mom1_ref[1:2, :] * inv_n - mean * mean, 0.0)
    scale = g1_ref[...] * jax.lax.rsqrt(var + EPS)
    shift = b1_ref[...] - mean * scale
    y = jnp.maximum(y1_ref[0] * scale.reshape(1, 1, Cp)
                    + shift.reshape(1, 1, Cp), 0.0)                  # f32
    acc = _im2col_conv(y, w_ref, xpad, cols)
    y_ref[...] = acc.reshape(1, H, W, Cp)
    mom_ref[0:1, :] += jnp.sum(acc, axis=0, keepdims=True)
    mom_ref[1:2, :] += jnp.sum(acc * acc, axis=0, keepdims=True)


# ----------------------------------------------------------------------------
# K3: BN2 (from accumulated moments) + residual add + ReLU (elementwise).
# ----------------------------------------------------------------------------
def _bn2_residual_kernel(y2_ref, x_ref, mom2_ref, g2_ref, b2_ref, out_ref, *,
                         count):
    Cp = out_ref.shape[-1]
    inv_n = 1.0 / count
    mean = mom2_ref[0:1, :] * inv_n
    var = jnp.maximum(mom2_ref[1:2, :] * inv_n - mean * mean, 0.0)
    scale = g2_ref[...] * jax.lax.rsqrt(var + EPS)
    shift = b2_ref[...] - mean * scale
    y2 = y2_ref[...] * scale.reshape(1, 1, 1, Cp) + shift.reshape(1, 1, 1, Cp)
    out_ref[...] = jnp.maximum(x_ref[...] + y2, 0.0)


# ----------------------------------------------------------------------------
# Wrapper
# ----------------------------------------------------------------------------
def resnet_basic_block(x_nchw, params):
    """x_nchw: (N, C, H, W) f32. params = (w1, b1, g1, be1, w2, b2, g2, be2),
    conv weights in HWIO (3,3,Cin,Cout). Returns (N, C, H, W) f32.
    b1/b2 are accepted but unused: training-mode BN cancels constant biases."""
    w1, b1, g1, be1, w2, b2, g2, be2 = params
    del b1, b2
    N, C, H, W = x_nchw.shape
    assert w1.shape[-1] == C, "residual add requires in_channels == out_channels"
    Cp = max(LANE, _round_up(C, LANE))   # lane-dense channel padding
    Hp = H + 2
    Wpp = _round_up(W + 2, 8)            # sublane-friendly padded width
    count = float(N * H * W)             # BN statistics population

    # ---- layout plumbing (wrapper side): NCHW -> NHWC, pad channels to Cp
    x_nhwc = jnp.transpose(x_nchw, (0, 2, 3, 1)).astype(jnp.float32)
    x_p = jnp.pad(x_nhwc, ((0, 0), (0, 0), (0, 0), (0, Cp - C)))

    def pack_w(w):   # (3,3,C,C) HWIO -> (9*Cp, Cp) bf16, rows = (kh, kw, cin)
        wp = jnp.zeros((3, 3, Cp, Cp), jnp.float32).at[:, :, :C, :C].set(w)
        return wp.reshape(9 * Cp, Cp).astype(jnp.bfloat16)

    def pack_c(v):   # (C,) -> (1, Cp) f32, zero padded (padded channels inert)
        return jnp.zeros((1, Cp), jnp.float32).at[0, :C].set(v)

    w1_r, w2_r = pack_w(w1), pack_w(w2)
    g1_p, be1_p, g2_p, be2_p = pack_c(g1), pack_c(be1), pack_c(g2), pack_c(be2)

    img_spec = pl.BlockSpec((1, H, W, Cp), lambda i: (i, 0, 0, 0))
    w_spec = pl.BlockSpec((9 * Cp, Cp), lambda i: (0, 0))
    mom_spec = pl.BlockSpec((2, Cp), lambda i: (0, 0))      # resident accumulator
    vec_spec = pl.BlockSpec((1, Cp), lambda i: (0, 0))
    conv_scratch = [pltpu.VMEM((Hp, Wpp, Cp), jnp.bfloat16),
                    pltpu.VMEM((H * W, 9 * Cp), jnp.bfloat16)]
    params_arb = pltpu.CompilerParams(dimension_semantics=("arbitrary",),
                                      vmem_limit_bytes=VMEM_LIMIT)
    params_par = pltpu.CompilerParams(dimension_semantics=("parallel",),
                                      vmem_limit_bytes=VMEM_LIMIT)

    # K1: conv1 + BN1 moments
    y1_raw, mom1 = pl.pallas_call(
        _conv1_kernel,
        out_shape=(jax.ShapeDtypeStruct((N, H, W, Cp), jnp.float32),
                   jax.ShapeDtypeStruct((2, Cp), jnp.float32)),
        grid=(N,),
        in_specs=[img_spec, w_spec],
        out_specs=(img_spec, mom_spec),
        scratch_shapes=conv_scratch,
        compiler_params=params_arb,
    )(x_p, w1_r)

    # K2: BN1 + ReLU + conv2 + BN2 moments
    y2_raw, mom2 = pl.pallas_call(
        functools.partial(_bn_relu_conv2_kernel, count=count),
        out_shape=(jax.ShapeDtypeStruct((N, H, W, Cp), jnp.float32),
                   jax.ShapeDtypeStruct((2, Cp), jnp.float32)),
        grid=(N,),
        in_specs=[img_spec, mom_spec, vec_spec, vec_spec, w_spec],
        out_specs=(img_spec, mom_spec),
        scratch_shapes=conv_scratch,
        compiler_params=params_arb,
    )(y1_raw, mom1, g1_p, be1_p, w2_r)

    # K3: BN2 + residual + ReLU
    out_nhwc = pl.pallas_call(
        functools.partial(_bn2_residual_kernel, count=count),
        out_shape=jax.ShapeDtypeStruct((N, H, W, Cp), jnp.float32),
        grid=(N,),
        in_specs=[img_spec, img_spec, mom_spec, vec_spec, vec_spec],
        out_specs=img_spec,
        compiler_params=params_par,
    )(y2_raw, x_p, mom2, g2_p, be2_p)

    out = out_nhwc[..., :C]
    return jnp.transpose(out, (0, 3, 1, 2))


# ----------------------------------------------------------------------------
# Pure-JAX reference replicating the PyTorch forward (training-mode BN).
# ----------------------------------------------------------------------------
def reference_jax(x_nchw, params):
    w1, b1, g1, be1, w2, b2, g2, be2 = params
    x = jnp.transpose(x_nchw, (0, 2, 3, 1)).astype(jnp.float32)  # NHWC

    def conv(y, w, b):
        o = jax.lax.conv_general_dilated(
            y, w, window_strides=(1, 1), padding="SAME",
            dimension_numbers=("NHWC", "HWIO", "NHWC"),
            precision=jax.lax.Precision.HIGHEST)
        return o + b

    def bn(y, g, be):
        m = jnp.mean(y, axis=(0, 1, 2), keepdims=True)
        v = jnp.mean((y - m) ** 2, axis=(0, 1, 2), keepdims=True)
        return (y - m) * jax.lax.rsqrt(v + EPS) * g + be

    o = jax.nn.relu(bn(conv(x, w1, b1), g1, be1))
    o = bn(conv(o, w2, b2), g2, be2)
    o = jax.nn.relu(x + o)
    return jnp.transpose(o, (0, 3, 1, 2))


if __name__ == "__main__":
    N, C, H, W = 2, 4, 16, 16          # in_channels = out_channels = 4, stride 1
    key = jax.random.PRNGKey(0)
    k_x, k_w1, k_b1, k_w2, k_b2 = jax.random.split(key, 5)

    x = jax.random.normal(k_x, (N, C, H, W), jnp.float32)

    # Conv weights stored HWIO (3,3,Cin,Cout); BN gamma=1, beta=0 (PyTorch init)
    fan_in = C * 3 * 3
    bound = 1.0 / np.sqrt(fan_in)
    w1 = jax.random.uniform(k_w1, (3, 3, C, C), jnp.float32, -bound, bound)
    b1 = jax.random.uniform(k_b1, (C,), jnp.float32, -bound, bound)
    w2 = jax.random.uniform(k_w2, (3, 3, C, C), jnp.float32, -bound, bound)
    b2 = jax.random.uniform(k_b2, (C,), jnp.float32, -bound, bound)
    g1 = jnp.ones((C,), jnp.float32)
    be1 = jnp.zeros((C,), jnp.float32)
    g2 = jnp.ones((C,), jnp.float32)
    be2 = jnp.zeros((C,), jnp.float32)
    params = (w1, b1, g1, be1, w2, b2, g2, be2)

    out = jax.block_until_ready(resnet_basic_block(x, params))
    ref = jax.block_until_ready(reference_jax(x, params))

    out_np, ref_np = np.asarray(out), np.asarray(ref)
    # bf16 MXU operands propagated through two conv + batch-norm stages ->
    # slightly loose elementwise tolerance; the mean-abs-error check guards
    # against any structural mistake (which would blow far past it).
    np.testing.assert_allclose(out_np, ref_np, rtol=5e-2, atol=5e-2)
    assert float(np.mean(np.abs(out_np - ref_np))) < 2e-2
    assert out.shape == (N, C, H, W)
    print("KERNEL_OK")
</pallas_src>

<mosaic_0001>
module attributes {stable_mosaic.version = 11 : i64} {
  func.func @_conv1_kernel(%arg0: i32, %arg1: memref<1x16x16x128xf32, #tpu.memory_space<vmem>>, %arg2: memref<1152x128xbf16, #tpu.memory_space<vmem>>, %arg3: memref<1x16x16x128xf32, #tpu.memory_space<vmem>>, %arg4: memref<2x128xf32, #tpu.memory_space<vmem>>, %arg5: memref<18x24x128xbf16, #tpu.memory_space<vmem>>, %arg6: memref<256x1152xbf16, #tpu.memory_space<vmem>>) attributes {dimension_semantics = [#tpu.dimension_semantics<arbitrary>], iteration_bounds = array<i64: 2>, scalar_prefetch = 0 : i64, scratch_operands = 2 : i64, tpu.core_type = #tpu.core_type<tc>, window_params = [{transform_indices = @transform_0, window_bounds = array<i64: 1, 16, 16, 128>}, {pipeline_mode = #tpu.pipeline_mode<synchronous>, transform_indices = @transform_1, window_bounds = array<i64: 1152, 128>}, {transform_indices = @transform_2, window_bounds = array<i64: 1, 16, 16, 128>}, {pipeline_mode = #tpu.pipeline_mode<synchronous>, transform_indices = @transform_3, window_bounds = array<i64: 2, 128>}]} {
    %c0_i32 = arith.constant 0 : i32
    %0 = arith.cmpi eq, %arg0, %c0_i32 : i32
    %1 = arith.extui %0 : i1 to i32
    %c0_i32_0 = arith.constant 0 : i32
    %2 = arith.cmpi ne, %1, %c0_i32_0 : i32
    scf.if %2 {
      %cst_60 = arith.constant 0.000000e+00 : bf16
      %50 = vector.broadcast %cst_60 : bf16 to vector<18x24x128xbf16>
      %c0_61 = arith.constant 0 : index
      %c0_62 = arith.constant 0 : index
      %c0_63 = arith.constant 0 : index
      %51 = vector.load %arg5[%c0_61, %c0_62, %c0_63] : memref<18x24x128xbf16, #tpu.memory_space<vmem>>, vector<18x24x128xbf16>
      tpu.vector_store %arg5[%c0_61, %c0_62, %c0_63], %50 {strides = array<i32>} : memref<18x24x128xbf16, #tpu.memory_space<vmem>>, vector<18x24x128xbf16>,
      %cst_64 = arith.constant 0.000000e+00 : f32
      %52 = vector.broadcast %cst_64 : f32 to vector<2x128xf32>
      %c0_65 = arith.constant 0 : index
      %c0_66 = arith.constant 0 : index
      %53 = vector.load %arg4[%c0_65, %c0_66] : memref<2x128xf32, #tpu.memory_space<vmem>>, vector<2x128xf32>
      tpu.vector_store %arg4[%c0_65, %c0_66], %52 {strides = array<i32>} : memref<2x128xf32, #tpu.memory_space<vmem>>, vector<2x128xf32>,
    } else {
    }
    %c0 = arith.constant 0 : index
    %c0_1 = arith.constant 0 : index
    %c0_2 = arith.constant 0 : index
    %c0_3 = arith.constant 0 : index
    %3 = vector.load %arg1[%c0, %c0_1, %c0_2, %c0_3] : memref<1x16x16x128xf32, #tpu.memory_space<vmem>>, vector<1x16x16x128xf32>
    %4 = vector.shape_cast %3 : vector<1x16x16x128xf32> to vector<16x16x128xf32>
    %5 = arith.truncf %4 : vector<16x16x128xf32> to vector<16x16x128xbf16>
    %c1 = arith.constant 1 : index
    %c1_4 = arith.constant 1 : index
    %c0_5 = arith.constant 0 : index
    %6 = vector.load %arg5[%c1, %c1_4, %c0_5] : memref<18x24x128xbf16, #tpu.memory_space<vmem>>, vector<16x16x128xbf16>
    tpu.vector_store %arg5[%c1, %c1_4, %c0_5], %5 {strides = array<i32>} : memref<18x24x128xbf16, #tpu.memory_space<vmem>>, vector<16x16x128xbf16>,
    %c0_6 = arith.constant 0 : index
    %c0_7 = arith.constant 0 : index
    %c0_8 = arith.constant 0 : index
    %7 = vector.load %arg5[%c0_6, %c0_7, %c0_8] : memref<18x24x128xbf16, #tpu.memory_space<vmem>>, vector<16x16x128xbf16>
    %8 = vector.shape_cast %7 : vector<16x16x128xbf16> to vector<256x128xbf16>
    %c0_9 = arith.constant 0 : index
    %c0_10 = arith.constant 0 : index
    %9 = vector.load %arg6[%c0_9, %c0_10] : memref<256x1152xbf16, #tpu.memory_space<vmem>>, vector<256x128xbf16>
    tpu.vector_store %arg6[%c0_9, %c0_10], %8 {strides = array<i32>} : memref<256x1152xbf16, #tpu.memory_space<vmem>>, vector<256x128xbf16>,
    %c0_11 = arith.constant 0 : index
    %c1_12 = arith.constant 1 : index
    %c0_13 = arith.constant 0 : index
    %10 = vector.load %arg5[%c0_11, %c1_12, %c0_13] : memref<18x24x128xbf16, #tpu.memory_space<vmem>>, vector<16x16x128xbf16>
    %11 = vector.shape_cast %10 : vector<16x16x128xbf16> to vector<256x128xbf16>
    %c0_14 = arith.constant 0 : index
    %c128 = arith.constant 128 : index
    %12 = vector.load %arg6[%c0_14, %c128] : memref<256x1152xbf16, #tpu.memory_space<vmem>>, vector<256x128xbf16>
    tpu.vector_store %arg6[%c0_14, %c128], %11 {strides = array<i32>} : memref<256x1152xbf16, #tpu.memory_space<vmem>>, vector<256x128xbf16>,
    %c0_15 = arith.constant 0 : index
    %c2 = arith.constant 2 : index
    %c0_16 = arith.constant 0 : index
    %13 = vector.load %arg5[%c0_15, %c2, %c0_16] : memref<18x24x128xbf16, #tpu.memory_space<vmem>>, vector<16x16x128xbf16>
    %14 = vector.shape_cast %13 : vector<16x16x128xbf16> to vector<256x128xbf16>
    %c0_17 = arith.constant 0 : index
    %c256 = arith.constant 256 : index
    %15 = vector.load %arg6[%c0_17, %c256] : memref<256x1152xbf16, #tpu.memory_space<vmem>>, vector<256x128xbf16>
    tpu.vector_store %arg6[%c0_17, %c256], %14 {strides = array<i32>} : memref<256x1152xbf16, #tpu.memory_space<vmem>>, vector<256x128xbf16>,
    %c1_18 = arith.constant 1 : index
    %c0_19 = arith.constant 0 : index
    %c0_20 = arith.constant 0 : index
    %16 = vector.load %arg5[%c1_18, %c0_19, %c0_20] : memref<18x24x128xbf16, #tpu.memory_space<vmem>>, vector<16x16x128xbf16>
    %17 = vector.shape_cast %16 : vector<16x16x128xbf16> to vector<256x128xbf16>
    %c0_21 = arith.constant 0 : index
    %c384 = arith.constant 384 : index
    %18 = vector.load %arg6[%c0_21, %c384] : memref<256x1152xbf16, #tpu.memory_space<vmem>>, vector<256x128xbf16>
    tpu.vector_store %arg6[%c0_21, %c384], %17 {strides = array<i32>} : memref<256x1152xbf16, #tpu.memory_space<vmem>>, vector<256x128xbf16>,
    %c1_22 = arith.constant 1 : index
    %c1_23 = arith.constant 1 : index
    %c0_24 = arith.constant 0 : index
    %19 = vector.load %arg5[%c1_22, %c1_23, %c0_24] : memref<18x24x128xbf16, #tpu.memory_space<vmem>>, vector<16x16x128xbf16>
    %20 = vector.shape_cast %19 : vector<16x16x128xbf16> to vector<256x128xbf16>
    %c0_25 = arith.constant 0 : index
    %c512 = arith.constant 512 : index
    %21 = vector.load %arg6[%c0_25, %c512] : memref<256x1152xbf16, #tpu.memory_space<vmem>>, vector<256x128xbf16>
    tpu.vector_store %arg6[%c0_25, %c512], %20 {strides = array<i32>} : memref<256x1152xbf16, #tpu.memory_space<vmem>>, vector<256x128xbf16>,
    %c1_26 = arith.constant 1 : index
    %c2_27 = arith.constant 2 : index
    %c0_28 = arith.constant 0 : index
    %22 = vector.load %arg5[%c1_26, %c2_27, %c0_28] : memref<18x24x128xbf16, #tpu.memory_space<vmem>>, vector<16x16x128xbf16>
    %23 = vector.shape_cast %22 : vector<16x16x128xbf16> to vector<256x128xbf16>
    %c0_29 = arith.constant 0 : index
    %c640 = arith.constant 640 : index
    %24 = vector.load %arg6[%c0_29, %c640] : memref<256x1152xbf16, #tpu.memory_space<vmem>>, vector<256x128xbf16>
    tpu.vector_store %arg6[%c0_29, %c640], %23 {strides = array<i32>} : memref<256x1152xbf16, #tpu.memory_space<vmem>>, vector<256x128xbf16>,
    %c2_30 = arith.constant 2 : index
    %c0_31 = arith.constant 0 : index
    %c0_32 = arith.constant 0 : index
    %25 = vector.load %arg5[%c2_30, %c0_31, %c0_32] : memref<18x24x128xbf16, #tpu.memory_space<vmem>>, vector<16x16x128xbf16>
    %26 = vector.shape_cast %25 : vector<16x16x128xbf16> to vector<256x128xbf16>
    %c0_33 = arith.constant 0 : index
    %c768 = arith.constant 768 : index
    %27 = vector.load %arg6[%c0_33, %c768] : memref<256x1152xbf16, #tpu.memory_space<vmem>>, vector<256x128xbf16>
    tpu.vector_store %arg6[%c0_33, %c768], %26 {strides = array<i32>} : memref<256x1152xbf16, #tpu.memory_space<vmem>>, vector<256x128xbf16>,
    %c2_34 = arith.constant 2 : index
    %c1_35 = arith.constant 1 : index
    %c0_36 = arith.constant 0 : index
    %28 = vector.load %arg5[%c2_34, %c1_35, %c0_36] : memref<18x24x128xbf16, #tpu.memory_space<vmem>>, vector<16x16x128xbf16>
    %29 = vector.shape_cast %28 : vector<16x16x128xbf16> to vector<256x128xbf16>
    %c0_37 = arith.constant 0 : index
    %c896 = arith.constant 896 : index
    %30 = vector.load %arg6[%c0_37, %c896] : memref<256x1152xbf16, #tpu.memory_space<vmem>>, vector<256x128xbf16>
    tpu.vector_store %arg6[%c0_37, %c896], %29 {strides = array<i32>} : memref<256x1152xbf16, #tpu.memory_space<vmem>>, vector<256x128xbf16>,
    %c2_38 = arith.constant 2 : index
    %c2_39 = arith.constant 2 : index
    %c0_40 = arith.constant 0 : index
    %31 = vector.load %arg5[%c2_38, %c2_39, %c0_40] : memref<18x24x128xbf16, #tpu.memory_space<vmem>>, vector<16x16x128xbf16>
    %32 = vector.shape_cast %31 : vector<16x16x128xbf16> to vector<256x128xbf16>
    %c0_41 = arith.constant 0 : index
    %c1024 = arith.constant 1024 : index
    %33 = vector.load %arg6[%c0_41, %c1024] : memref<256x1152xbf16, #tpu.memory_space<vmem>>, vector<256x128xbf16>
    tpu.vector_store %arg6[%c0_41, %c1024], %32 {strides = array<i32>} : memref<256x1152xbf16, #tpu.memory_space<vmem>>, vector<256x128xbf16>,
    %c0_42 = arith.constant 0 : index
    %c0_43 = arith.constant 0 : index
    %34 = vector.load %arg6[%c0_42, %c0_43] : memref<256x1152xbf16, #tpu.memory_space<vmem>>, vector<256x1152xbf16>
    %c0_44 = arith.constant 0 : index
    %c0_45 = arith.constant 0 : index
    %35 = vector.load %arg2[%c0_44, %c0_45] : memref<1152x128xbf16, #tpu.memory_space<vmem>>, vector<1152x128xbf16>
    %cst = arith.constant dense<0.000000e+00> : vector<256x128xf32>
    %36 = tpu.matmul %34, %35, %cst {dimension_numbers = #tpu.dot_dimension_numbers<[1], [0], [0], [1], [0, 0, 1, 1], [], []>} : vector<256x1152xbf16>, vector<1152x128xbf16>, vector<256x128xf32> -> vector<256x128xf32>
    %37 = vector.shape_cast %36 : vector<256x128xf32> to vector<1x16x16x128xf32>
    %c0_46 = arith.constant 0 : index
    %c0_47 = arith.constant 0 : index
    %c0_48 = arith.constant 0 : index
    %c0_49 = arith.constant 0 : index
    %38 = vector.load %arg3[%c0_46, %c0_47, %c0_48, %c0_49] : memref<1x16x16x128xf32, #tpu.memory_space<vmem>>, vector<1x16x16x128xf32>
    tpu.vector_store %arg3[%c0_46, %c0_47, %c0_48, %c0_49], %37 {strides = array<i32>} : memref<1x16x16x128xf32, #tpu.memory_space<vmem>>, vector<1x16x16x128xf32>,
    %c0_50 = arith.constant 0 : index
    %c0_51 = arith.constant 0 : index
    %39 = vector.load %arg4[%c0_50, %c0_51] : memref<2x128xf32, #tpu.memory_space<vmem>>, vector<1x128xf32>
    %cst_52 = arith.constant dense<0.000000e+00> : vector<128xf32>
    %40 = vector.multi_reduction <add>, %36, %cst_52 [0] : vector<256x128xf32> to vector<128xf32>
    %41 = vector.shape_cast %40 : vector<128xf32> to vector<1x128xf32>
    %42 = arith.addf %39, %41 : vector<1x128xf32>
    %c0_53 = arith.constant 0 : index
    %c0_54 = arith.constant 0 : index
    %43 = vector.load %arg4[%c0_53, %c0_54] : memref<2x128xf32, #tpu.memory_space<vmem>>, vector<1x128xf32>
    tpu.vector_store %arg4[%c0_53, %c0_54], %42 {strides = array<i32>} : memref<2x128xf32, #tpu.memory_space<vmem>>, vector<1x128xf32>,
    %c1_55 = arith.constant 1 : index
    %c0_56 = arith.constant 0 : index
    %44 = vector.load %arg4[%c1_55, %c0_56] : memref<2x128xf32, #tpu.memory_space<vmem>>, vector<1x128xf32>
    %45 = arith.mulf %36, %36 : vector<256x128xf32>
    %cst_57 = arith.constant dense<0.000000e+00> : vector<128xf32>
    %46 = vector.multi_reduction <add>, %45, %cst_57 [0] : vector<256x128xf32> to vector<128xf32>
    %47 = vector.shape_cast %46 : vector<128xf32> to vector<1x128xf32>
    %48 = arith.addf %44, %47 : vector<1x128xf32>
    %c1_58 = arith.constant 1 : index
    %c0_59 = arith.constant 0 : index
    %49 = vector.load %arg4[%c1_58, %c0_59] : memref<2x128xf32, #tpu.memory_space<vmem>>, vector<1x128xf32>
    tpu.vector_store %arg4[%c1_58, %c0_59], %48 {strides = array<i32>} : memref<2x128xf32, #tpu.memory_space<vmem>>, vector<1x128xf32>,
    return
  }
  func.func @transform_0(%arg0: i32) -> (i32, i32, i32, i32) {
    %c0_i32 = arith.constant 0 : i32
    %c0_i32_0 = arith.constant 0 : i32
    %c0_i32_1 = arith.constant 0 : i32
    %c0_i32_2 = arith.constant 0 : i32
    return %arg0, %c0_i32, %c0_i32_0, %c0_i32_1 : i32, i32, i32, i32
  }
  func.func @transform_1(%arg0: i32) -> (i32, i32) {
    %c0_i32 = arith.constant 0 : i32
    %c0_i32_0 = arith.constant 0 : i32
    %c0_i32_1 = arith.constant 0 : i32
    return %c0_i32, %c0_i32_0 : i32, i32
  }
  func.func @transform_2(%arg0: i32) -> (i32, i32, i32, i32) {
    %c0_i32 = arith.constant 0 : i32
    %c0_i32_0 = arith.constant 0 : i32
    %c0_i32_1 = arith.constant 0 : i32
    %c0_i32_2 = arith.constant 0 : i32
    return %arg0, %c0_i32, %c0_i32_0, %c0_i32_1 : i32, i32, i32, i32
  }
  func.func @transform_3(%arg0: i32) -> (i32, i32) {
    %c0_i32 = arith.constant 0 : i32
    %c0_i32_0 = arith.constant 0 : i32
    %c0_i32_1 = arith.constant 0 : i32
    return %c0_i32, %c0_i32_0 : i32, i32
  }
}

</mosaic_0001>

<bundles_post_ra>
// kernel: tpu_custom_call.1
= control target key start
LH: loop header
LB: loop body
LE: loop exit
PB: predicated region body
PF: predicated region fallthrough
CT: control target
= control target key end

     0   :  { %9 = vsyncpa [#allocation5], 0  ;;  %s8292_s0 = inlined_call_operand.hbm [shape: f32[2,16,16,128], index: 0, kind: input, shape index: {}]   ;;  %s8293_s1 = inlined_call_operand.hbm [shape: bf16[1152,128], index: 1, kind: input, shape index: {}]   ;;  %s8294_s2 = inlined_call_operand.hbm [shape: f32[2,16,16,128], index: 2, kind: output, shape index: {0}]   ;;  %s8295_s3 = inlined_call_operand.hbm [shape: f32[2,128], index: 3, kind: output, shape index: {1}]  }
   0x1   :  { %11 = vsyncpa [#allocation5 + $0x1], 0 }
   0x2   :  { %12 = vsyncpa [#allocation8], 0 }
   0x3   :  { %13 = vsyncpa [#allocation6], 0 }
   0x4   :  { %15 = vsyncpa [#allocation6 + $0x1], 0 }
   0x5   :  { %16 = vsyncpa [#allocation11], 0  ;;  %s6728_s12 = smov 0   ;;  %s6730_s13 = smov 0  }
   0x6   :  { %s6732_s14 = smov 0   ;;  %s6734_s15 = smov 0  }
   0x7 LB: > { %s6749_s16 = sadd.s32 4294967295, %s6694_s15   ;;  %s5459_s17 = sadd.s32 4294967294, %s6694_s15   ;;  %s6694_s15 = sphi %s6734_s15, %s8363_s15   ;;  %s6690_s14 = sphi %s6732_s14, %s8362_s14   ;;  %s6686_s13 = sphi %s6730_s13, %s8361_s13   ;;  %s6682_s12 = sphi %s6728_s12, %s8360_s12  }
   0x8   : > { %p42_p0 = scmp.ne.s32.totalorder %s6686_s13, %s6682_s12  ;;  %p8296_p1 = scmp.eq.s32.totalorder %s6749_s16, 0 }
   0x9   : > { %p93_p3 = scmp.eq.s32.totalorder %s5459_s17, 1  ;;  %p5460_p5 = scmp.ge.s32.totalorder %s6694_s15, 1 }
   0xa   : > { %p6758_p4 = por %p8296_p1, %p42_p0  ;;  %p121_p7 = scmp.lt.s32.totalorder %s6694_s15, 3 }
   0xb   : > { %p6763_p6 = por %p93_p3, %p42_p0  ;;  %s6696_s21 = smov [#allocation7]  }
   0xc   : > { %s8299_s18 = scalar_select %p6758_p4, 1, 0 }
   0xd   : > { %s8300_s19 = scalar_select %p6763_p6, 1, 0 }
   0xe   : > { %p6769_p9 = pnand %p5460_p5, %p121_p7  ;;  %s133_s22 = sshll.u32 %s6696_s21, 4  ;;  %s6773_s22 = int_to_ptr.vmem [resolvable:$true] %s133_s22 }
   0xf   : > { %s6785_s24 = sadd.s32 1, %s6694_s15   ;;  %s29_s25 = sadd.s32 1, %s6690_s14 }
  0x10   : > { %s8301_s20 = scalar_select %p6769_p9, 1, 0 }
  0x11   : > { %p6356_p10 = pneg %p6769_p9  ;;  %s26_s26 = ssub.s32 %s6694_s15, %s6785_s24 }
  0x12   : > { %s6536_s29 = scalar_lea.hbm %s8293_s1, 9216 }
  0x13   : > { %p6780_p12 = pnand %p6356_p10, %p8296_p1  ;;  %p6537_p13 = scmp.ne.s32.totalorder %s8293_s1, %s6536_s29 }
  0x14   : > { %p6543_p7 = scmp.lt.u32.totalorder %s6536_s29, %s8293_s1 }
  0x15   : > { %p6538_p0 = pneg %p6780_p12 }
  0x17   : > { %p6539_p3 = pnand %p6538_p0, %p6537_p13 }
  0x19   : > { %p6540_p5 = pneg %p6539_p3 }
  0x1b   : > { %p6545_p10 = pnand %p6543_p7, %p6540_p5 }
  0x1d   : > { %6548 = shalt.err (!%p6545_p10)
}
  0x1e   : > { %s6549_s7 = scalar_lea.vmem %s6773_s22, 9216  ;;  %p6557_p2 = scmp.lt.s32.totalorder %s6773_s22, %s6773_s22 }
  0x1f   : > { %p6550_p11 = scmp.ne.s32.totalorder %s6773_s22, %s6549_s7  ;;  %p6558_p6 = scmp.lt.s32.totalorder %s6549_s7, %s6549_s7 }
  0x21   : > { %p6552_p8 = pnand %p6550_p11, %p6538_p0  ;;  %p6559_p4 = por %p6558_p6, %p6557_p2 }
  0x23   : > { %p6553_p1 = pneg %p6552_p8 }
  0x25   : > { %p6560_p9 = pnand %p6559_p4, %p6553_p1 }
  0x27   : > { %6563 = shalt.err (!%p6560_p9)
}
  0x28   : > { %s6697_s8 = smov 64   ;;  %s6698_s9 = smov 4  }
  0x29   : > { %6359 = dma.hbm_to_vmem [thread:$0]  (!%p6780_p12), %s8293_s1, 9216, %s6773_s22, [#allocation8], %s6697_s8, %s6697_s8, %s6698_s9  }
  0x2a   : > { %p27_p2 = scmp.eq.s32.totalorder %s26_s26, 0  ;;  %p36_p1 = scmp.ne.s32.totalorder %s6690_s14, %s6686_s13 }
  0x2b   : > { %p37_p4 = scmp.eq.s32.totalorder %s6694_s15, 0  ;;  %p6369_p6 = scmp.lt.s32.totalorder %s6694_s15, 2 }
  0x2c   : > { %s6816_s17 = scalar_select %p27_p2, %s6690_s14, %s29_s25  }
  0x2d   : > { %p38_p8 = por %p37_p4, %p36_p1  ;;  %p8303_p9 = scmp.eq.s32.totalorder %s6749_s16, 1 }
  0x2e   : > { %s147_s27 = sand.u32 1, %s6690_s14   ;;  %s5774_s28 = sshll.u32 %s6694_s15, 12 }
  0x2f   : > { %p6820_p11 = por %p8303_p9, %p36_p1  ;;  %s5463_s29 = sshll.u32 %s147_s27, 8 }
  0x30   : > { %s6829_s4 = scalar_lea.hbm %s8292_s0, %s5774_s28  ;;  %s151_s22 = scalar_lea.vmem [#allocation4], %s5463_s29 }
  0x31   : > { %s158_s25 = sshll.u32 %s151_s22, 4  ;;  %p6831_p12 = pnand %p6369_p6, %p38_p8  ;;  %s6835_s25 = int_to_ptr.vmem [resolvable:$true] %s158_s25 }
  0x32   : > { %s6837_s5 = scalar_lea.sflag [#allocation5], %s147_s27  ;;  %s6564_s6 = scalar_lea.hbm %s6829_s4, 4096 }
  0x33   : > { %p6565_p13 = scmp.ne.s32.totalorder %s6829_s4, %s6564_s6  ;;  %p6566_p0 = pneg %p6831_p12 }
  0x34   : > { %s6569_s9 = scalar_lea.hbm %s8292_s0, 8192  ;;  %p6570_p7 = scmp.lt.u32.totalorder %s6829_s4, %s8292_s0 }
  0x35   : > { %p6567_p3 = pnand %p6566_p0, %p6565_p13  ;;  %p6571_p10 = scmp.lt.u32.totalorder %s6569_s9, %s6564_s6 }
  0x36   : > { %p6573_p1 = scmp.lt.u32.totalorder %s6564_s6, %s6829_s4 }
  0x37   : > { %p6568_p5 = pneg %p6567_p3  ;;  %p6572_p2 = por %p6571_p10, %p6570_p7 }
  0x39   : > { %p6574_p4 = por %p6573_p1, %p6572_p2 }
  0x3b   : > { %p6575_p6 = pnand %p6574_p4, %p6568_p5 }
  0x3d   : > { %6578 = shalt.err (!%p6575_p6)
}
  0x3e   : > { %s6579_s27 = scalar_lea.vmem %s6835_s25, 4096  ;;  %s6699_s28 = smov [#allocation4]  }
  0x3f   : > { %p6580_p8 = scmp.ne.s32.totalorder %s6835_s25, %s6579_s27  ;;  %s6584_s29 = sshll.u32 %s6699_s28, 4  ;;  %s6585_s29 = int_to_ptr.vmem [resolvable:$false] %s6584_s29 }
  0x40   : > { %s6586_s23 = scalar_lea.vmem %s6585_s29, 8192  ;;  %p6587_p3 = scmp.lt.s32.totalorder %s6835_s25, %s6585_s29 }
  0x41   : > { %p6582_p9 = pnand %p6580_p8, %p6566_p0  ;;  %p6588_p7 = scmp.lt.s32.totalorder %s6586_s23, %s6579_s27 }
  0x43   : > { %p6583_p13 = pneg %p6582_p9  ;;  %p6589_p10 = por %p6588_p7, %p6587_p3 }
  0x45   : > { %p6590_p2 = pnand %p6589_p10, %p6583_p13 }
  0x47   : > { %6593 = shalt.err (!%p6590_p2)
}
  0x48   : > { %s6700_s30 = smov 128   ;;  %s6701_s22 = smov 8  }
  0x49   : > { %6363 = dma.hbm_to_vmem [thread:$0]  (!%p6831_p12), %s6829_s4, 4096, %s6835_s25, %s6837_s5, %s6700_s30, %s6700_s30, %s6701_s22  }
  0x4a   : > { %p8306_p0 = scmp.ne.s32.totalorder %s8301_s20, 0 }
  0x4c   : > { %170 = sbr.rel (%p8306_p0) target bundleno = 765 (0x2fd), region = 28 }
  0x53   : > { %s6868_s6 = sand.u32 1, %s6686_s13   ;;  %p8307_p5 = scmp.ne.s32.totalorder %s8299_s18, 0 }
  0x54   : > { %s5467_s7 = sshll.u32 %s6868_s6, 8  ;;  %s173_s8 = scalar_lea.sflag [#allocation5], %s6868_s6 }
  0x55   : > { %s6872_s9 = scalar_lea.vmem [#allocation4], %s5467_s7 }
  0x56   : > { %6665 = dma.done.wait (%p8307_p5), %s173_s8, 4096  }
  0x57   : > { %6667 = vsyncadd (%p8307_p5), %s173_s8, 4294963200  ;;  %p8308_p12 = scmp.eq.s32.totalorder %s6749_s16, 0 }
  0x59   : > { %6669 = dma.done.wait (%p8308_p12), [#allocation8], 9216   ;;  %p8309_p1 = pmov %p8308_p12 }
  0x5a   : > { %s6882_s20 = scalar_lea.vmem [#allocation9], %s5467_s7  ;;  %p8310_p4 = scmp.ne.s32.totalorder %s6749_s16, 0 }
  0x5b   : > { %6671 = vsyncadd (%p8309_p1), [#allocation8], 4294958080  ;;  %v6702_v0 = vmov (!%p8310_p4), 0   ;;  %v6703_v1 = vmov (!%p8310_p4), 0.0  }
  0x5c   : > { %207 = sbr.rel (%p8310_p4) target bundleno = 120 (0x78), region = 40  ;;  %208 = vst [vmem:[#allocation2] sm:$0xf] (!%p8310_p4), %v6702_v0  ;;  %209 = vst [vmem:[#allocation2 + $0x4] sm:$0xf] (!%p8310_p4), %v6702_v0 }
  0x5d   : > { %210 = vst [vmem:[#allocation2 + $0x8] sm:$0xf] (!%p8310_p4), %v6702_v0  ;;  %211 = vst [vmem:[#allocation2 + $0xc] sm:$0xf] (!%p8310_p4), %v6702_v0 }
  0x5e   : > { %212 = vst [vmem:[#allocation2 + $0x10] sm:$0xf] (!%p8310_p4), %v6702_v0  ;;  %213 = vst [vmem:[#allocation2 + $0x14] sm:$0xf] (!%p8310_p4), %v6702_v0 }
  0x5f   : > { %214 = vst [vmem:[#allocation2 + $0x18] sm:$0xf] (!%p8310_p4), %v6702_v0  ;;  %215 = vst [vmem:[#allocation2 + $0x1c] sm:$0xf] (!%p8310_p4), %v6702_v0 }
  0x60   : > { %216 = vst [vmem:[#allocation2 + $0x20] sm:$0xf] (!%p8310_p4), %v6702_v0  ;;  %217 = vst [vmem:[#allocation2 + $0x24] sm:$0xf] (!%p8310_p4), %v6702_v0 }
  0x61   : > { %218 = vst [vmem:[#allocation2 + $0x28] sm:$0xf] (!%p8310_p4), %v6702_v0  ;;  %219 = vst [vmem:[#allocation2 + $0x2c] sm:$0xf] (!%p8310_p4), %v6702_v0 }
  0x62   : > { %220 = vst [vmem:[#allocation2 + $0x30] sm:$0xf] (!%p8310_p4), %v6702_v0  ;;  %221 = vst [vmem:[#allocation2 + $0x34] sm:$0xf] (!%p8310_p4), %v6702_v0 }
  0x63   : > { %222 = vst [vmem:[#allocation2 + $0x38] sm:$0xf] %v6702_v0  ;;  %223 = vst [vmem:[#allocation2 + $0x3c] sm:$0xf] %v6702_v0 }
  0x64   : > { %224 = vst [vmem:[#allocation2 + $0x40] sm:$0xf] %v6702_v0  ;;  %225 = vst [vmem:[#allocation2 + $0x44] sm:$0xf] %v6702_v0 }
  0x65   : > { %226 = vst [vmem:[#allocation2 + $0x48] sm:$0xf] %v6702_v0  ;;  %227 = vst [vmem:[#allocation2 + $0x4c] sm:$0xf] %v6702_v0 }
  0x66   : > { %228 = vst [vmem:[#allocation2 + $0x50] sm:$0xf] %v6702_v0  ;;  %229 = vst [vmem:[#allocation2 + $0x54] sm:$0xf] %v6702_v0 }
  0x67   : > { %230 = vst [vmem:[#allocation2 + $0x58] sm:$0xf] %v6702_v0  ;;  %231 = vst [vmem:[#allocation2 + $0x5c] sm:$0xf] %v6702_v0 }
  0x68   : > { %232 = vst [vmem:[#allocation2 + $0x60] sm:$0xf] %v6702_v0  ;;  %233 = vst [vmem:[#allocation2 + $0x64] sm:$0xf] %v6702_v0 }
  0x69   : > { %234 = vst [vmem:[#allocation2 + $0x68] sm:$0xf] %v6702_v0  ;;  %235 = vst [vmem:[#allocation2 + $0x6c] sm:$0xf] %v6702_v0 }
  0x6a   : > { %236 = vst [vmem:[#allocation2 + $0x70] sm:$0xf] %v6702_v0  ;;  %237 = vst [vmem:[#allocation2 + $0x74] sm:$0xf] %v6702_v0 }
  0x6b   : > { %238 = vst [vmem:[#allocation2 + $0x78] sm:$0xf] %v6702_v0  ;;  %239 = vst [vmem:[#allocation2 + $0x7c] sm:$0xf] %v6702_v0 }
  0x6c   : > { %240 = vst [vmem:[#allocation2 + $0x80] sm:$0xf] %v6702_v0  ;;  %241 = vst [vmem:[#allocation2 + $0x84] sm:$0xf] %v6702_v0 }
  0x6d   : > { %242 = vst [vmem:[#allocation2 + $0x88] sm:$0xf] %v6702_v0  ;;  %243 = vst [vmem:[#allocation2 + $0x8c] sm:$0xf] %v6702_v0 }
  0x6e   : > { %244 = vst [vmem:[#allocation2 + $0x90] sm:$0xf] %v6702_v0  ;;  %245 = vst [vmem:[#allocation2 + $0x94] sm:$0xf] %v6702_v0 }
  0x6f   : > { %246 = vst [vmem:[#allocation2 + $0x98] sm:$0xf] %v6702_v0  ;;  %247 = vst [vmem:[#allocation2 + $0x9c] sm:$0xf] %v6702_v0 }
  0x70   : > { %248 = vst [vmem:[#allocation2 + $0xa0] sm:$0xf] %v6702_v0  ;;  %249 = vst [vmem:[#allocation2 + $0xa4] sm:$0xf] %v6702_v0 }
  0x71   : > { %250 = vst [vmem:[#allocation2 + $0xa8] sm:$0xf] %v6702_v0  ;;  %251 = vst [vmem:[#allocation2 + $0xac] sm:$0xf] %v6702_v0 }
  0x72   : > { %252 = vst [vmem:[#allocation2 + $0xb0] sm:$0xf] %v6702_v0  ;;  %253 = vst [vmem:[#allocation2 + $0xb4] sm:$0xf] %v6702_v0 }
  0x73   : > { %254 = vst [vmem:[#allocation2 + $0xb8] sm:$0xf] %v6702_v0  ;;  %255 = vst [vmem:[#allocation2 + $0xbc] sm:$0xf] %v6702_v0 }
  0x74   : > { %256 = vst [vmem:[#allocation2 + $0xc0] sm:$0xf] %v6702_v0  ;;  %257 = vst [vmem:[#allocation2 + $0xc4] sm:$0xf] %v6702_v0 }
  0x75   : > { %258 = vst [vmem:[#allocation2 + $0xc8] sm:$0xf] %v6702_v0  ;;  %259 = vst [vmem:[#allocation2 + $0xcc] sm:$0xf] %v6702_v0 }
  0x76   : > { %260 = vst [vmem:[#allocation2 + $0xd0] sm:$0xf] %v6702_v0  ;;  %261 = vst [vmem:[#allocation2 + $0xd4] sm:$0xf] %v6702_v0 }
  0x77   : > { %262 = vst [vmem:[#allocation10] sm:$0x3] %v6703_v1 }
  0x78 PF: > { %v6416_v2 = vld [vmem:[#allocation7 + $0x40] sm:$0xff]   ;;  %v6418_v4 = vld [vmem:[#allocation7 + $0x48] sm:$0xff]   ;;  %v6420_v6 = vld [vmem:[#allocation7 + $0x50] sm:$0xff]   ;;  %vm715_vm0 = vcmask 1043456   ;;  %vm1024_vm1 = vsmask.f32 3328 }
  0x79   : > { %v6417_v3 = vld [vmem:[#allocation7] sm:$0xff]   ;;  %5808 = vmatprep.subr.bf16.mxu0 %v6416_v2  ;;  %6328 = vmatprep.subr.bf16.mxu1 %v6416_v2  ;;  %v6419_v5 = vld [vmem:[#allocation7 + $0x8] sm:$0xff]   ;;  %v6421_v7 = vld [vmem:[#allocation7 + $0x10] sm:$0xff]   ;;  %vm1025_vm2 = vsmask.f32 7440  ;;  %vm722_vm3 = vcmask 1040384  }
  0x7a   : > { %5809 = vmatpush3.bf16.msra.mxu0 %v6417_v3  ;;  %6336 = vmatpush3.bf16.msra.mxu1 %v6417_v3  ;;  %v6422_v8 = vld [vmem:[#allocation7 + $0x58] sm:$0xff]   ;;  %v6424_v10 = vld [vmem:[#allocation7 + $0x60] sm:$0xff]   ;;  %v6426_v12 = vld [vmem:[#allocation7 + $0x68] sm:$0xff]   ;;  %vm391_vm4 = vsmask.f32 256  ;;  %vm1587_vm11 = vcmask 1042432  }
  0x7b   : > { %5810 = vmatprep.subr.bf16.mxu0 %v6418_v4  ;;  %6329 = vmatprep.subr.bf16.mxu1 %v6418_v4  ;;  %v6423_v9 = vld [vmem:[#allocation7 + $0x18] sm:$0xff]   ;;  %v6425_v11 = vld [vmem:[#allocation7 + $0x20] sm:$0xff]   ;;  %v976_v13 = vld [vmem:[#allocation2] sm:$0xf]  ;;  %vm392_vm5 = vsmask.f32 4368 }
  0x7c   : > { %v977_v14 = vld [vmem:[#allocation2 + $0x4] sm:$0xf]  ;;  %v978_v15 = vld [vmem:[#allocation2 + $0x8] sm:$0x1]  ;;  %v1028_v16 = vshrl.u32 %v976_v13, 16  ;;  %v1031_v17 = vshll.u32 %v976_v13, 16  ;;  %vm6890_vm6 = vmor %vm1024_vm1, %vm1025_vm2 }
  0x7d   : > { %v1037_v18 = vshll.u32 %v977_v14, 16  ;;  %v1041_v19 = vshrl.u32 %v977_v14, 16  ;;  %v1047_v20 = vshll.u32 %v978_v15, 16  ;;  %v285_v21 = vld [vmem:[%s6872_s9 + $0xb0] sm:$0xff]  ;;  %v286_v22 = vld [vmem:[%s6872_s9 + $0xb8] sm:$0xff]  ;;  %v6427_v23 = vld [vmem:[#allocation7 + $0x28] sm:$0xff]  }
  0x7e   : > { %5811 = vmatpush3.bf16.msra.mxu0 %v6419_v5  ;;  %6337 = vmatpush3.bf16.msra.mxu1 %v6419_v5  ;;  %v1030_v24 = vrot.slane %v1028_v16, 4  ;;  %v1033_v25 = vrot.slane %v1031_v17, 5  ;;  %v5797_v26 = vpack.c.bf16 %v285_v21, %v285_v21  ;;  %v5798_v27 = vpack.c.bf16 %v286_v22, %v286_v22  ;;  %v6428_v28 = vld [vmem:[#allocation7 + $0x70] sm:$0xff]   ;;  %v6430_v36 = vld [vmem:[#allocation7 + $0x78] sm:$0xff]   ;;  %vm6896_vm8 = vmand %vm722_vm3, %vm391_vm4  ;;  %s5807_s18 = sshll.u32 %s6749_s16, 12  ;;  %s5354_s4 = sshll.u32 %s6882_s20, 4  ;;  %s8224_s4 = int_to_ptr.vmem [resolvable:$true] %s5354_s4 }
  0x7f   : > { %5812 = vmatprep.subr.bf16.mxu0 %v6420_v6  ;;  %6330 = vmatprep.subr.bf16.mxu1 %v6420_v6  ;;  %v1039_v29 = vrot.slane %v1037_v18, 5  ;;  %v1043_v30 = vrot.slane %v1041_v19, 4  ;;  %v1049_v31 = vrot.slane %v1047_v20, 5  ;;  %v6429_v32 = vld [vmem:[#allocation7 + $0x30] sm:$0xff]   ;;  %vm716_vm7 = vsmask.f32 7938  ;;  %vm6909_vm10 = vmor %vm391_vm4, %vm392_vm5  ;;  %s8222_s5 = scalar_lea.hbm %s8294_s2, %s5807_s18 }
  0x80   : > { %v1034_v33 = vor.u32 %v1033_v25, %v1030_v24  ;;  %v582_v34 = vshrl.u32 %v5797_v26, 16  ;;  %v585_v35 = vshll.u32 %v5797_v26, 16  ;;  %v590_v39 = vshrl.u32 %v5798_v27, 16  ;;  %v797_v41 = vld [vmem:[#allocation2 + $0x90] sm:$0xf]  ;;  %vm6901_vm9 = vmand %vm715_vm0, %vm716_vm7  ;;  %v6434_v57 = vld [vmem:[#allocation7 + $0xc0] sm:$0xff]  }
  0x81   : > { %v1044_v38 = vor.u32 %v1043_v30, %v1039_v29  ;;  %v593_v40 = vshll.u32 %v5798_v27, 16  ;;  %v801_v48 = vld [vmem:[#allocation2 + $0x98] sm:$0x1]  ;;  %v6431_v49 = vld [vmem:[#allocation7 + $0x38] sm:$0xff]   ;;  %v264_v0 = vld [vmem:[%s6872_s9 + $0x8] sm:$0xff]  ;;  %vm1588_vm12 = vcmask 1046532  }
  0x82   : > { %5813 = vmatpush3.bf16.msra.mxu0 %v6421_v7  ;;  %6338 = vmatpush3.bf16.msra.mxu1 %v6421_v7  ;;  %v1035_v42 = vrot.slane %v1034_v33, 4  ;;  %v584_v43 = vrot.slane %v582_v34, 7  ;;  %v592_v46 = vrot.slane %v590_v39, 7  ;;  %v6435_v62 = vld [vmem:[#allocation7 + $0x140] sm:$0xff]   ;;  %v6432_v1 = vld [vmem:[#allocation2] sm:$0xff]   ;;  %v5776_v3 = vpack.c.bf16 %v264_v0, %v264_v0  ;;  %vm7029_vm13 = vmor %vm1587_vm11, %vm1588_vm12  ;;  %s5341_s10 = scalar_lea.sflag [#allocation6], %s6868_s6 }
  0x83   : > { %5814 = vmatprep.subr.bf16.mxu0 %v6422_v8  ;;  %6331 = vmatprep.subr.bf16.mxu1 %v6422_v8  ;;  %v1045_v45 = vrot.slane %v1044_v38, 4  ;;  %v263_v63 = vld [vmem:[%s6872_s9] sm:$0xff]  ;;  %v288_v6 = vld [vmem:[%s6872_s9 + $0xc8] sm:$0xff]  ;;  %v718_v17 = vld [vmem:[#allocation2 + $0xc] sm:$0xf]  ;;  %s6594_s11 = scalar_lea.vmem %s8224_s4, 4096 }
  0x84   : > { %v1040_v50 = vsel %vm6890_vm6, %v1035_v42, %v1039_v29  ;;  %v587_v52 = vor.u32 %v585_v35, %v584_v43  ;;  %v588_v53 = vrot.slane %v584_v43, 4  ;;  %v595_v55 = vor.u32 %v593_v40, %v592_v46  ;;  %v287_v4 = vld [vmem:[%s6872_s9 + $0xc0] sm:$0xff]  ;;  %v724_v19 = vld [vmem:[#allocation2 + $0x14] sm:$0x1]  ;;  %p6595_p6 = scmp.ne.s32.totalorder %s8224_s4, %s6594_s11  ;;  %s6704_s27 = smov [#allocation9]  }
  0x85   : > { %v1050_v54 = vsel %vm6890_vm6, %v1045_v45, %v1049_v31  ;;  %v597_v56 = vrot.slane %v592_v46, 4  ;;  %v5775_v2 = vpack.c.bf16 %v263_v63, %v263_v63  ;;  %v6437_v5 = vld [vmem:[#allocation7 + $0x100] sm:$0xff]   ;;  %v5799_v7 = vpack.c.bf16 %v287_v4, %v287_v4  ;;  %s6598_s28 = sshll.u32 %s6704_s27, 4  ;;  %s6599_s28 = int_to_ptr.vmem [resolvable:$false] %s6598_s28 }
  0x86   : > { %5815 = vmatpush3.bf16.msra.mxu0 %v6423_v9  ;;  %6339 = vmatpush3.bf16.msra.mxu1 %v6423_v9  ;;  %v5519_v58 = vcombine.low %v1040_v50, %v1050_v54  ;;  %v798_v59 = vsel %vm6901_vm9, %v587_v52, %v797_v41  ;;  %v596_v60 = vsel %vm6909_vm10, %v588_v53, %v595_v55  ;;  %p6596_p8 = pnand %p6595_p6, %p6820_p11  ;;  %s6600_s29 = scalar_lea.vmem %s6599_s28, 8192 }
  0x87   : > { %5816 = vmatprep.subr.bf16.mxu0 %v6424_v10  ;;  %6332 = vmatprep.subr.bf16.mxu1 %v6424_v10  ;;  %799 = vst [vmem:[#allocation2 + $0x90] sm:$0xf] %v798_v59  ;;  %v802_v61 = vsel %vm6896_vm8, %v597_v56, %v801_v48  ;;  %800 = vst [vmem:[#allocation2 + $0x94] sm:$0xf] %v596_v60  ;;  %v395_v8 = vshrl.u32 %v5775_v2, 16  ;;  %v398_v9 = vshll.u32 %v5775_v2, 16  ;;  %p6601_p13 = scmp.lt.s32.totalorder %s8224_s4, %s6599_s28  ;;  %p6602_p3 = scmp.lt.s32.totalorder %s6600_s29, %s6594_s11 }
  0x88   : > { %4423 = vmatprep.mubr.bf16.mxu0 %v5519_v58  ;;  %803 = vst [vmem:[#allocation2 + $0x98] sm:$0x1] %v802_v61  ;;  %v403_v10 = vshrl.u32 %v5776_v3, 16  ;;  %v599_v13 = vshrl.u32 %v5799_v7, 16  ;;  %v602_v14 = vshll.u32 %v5799_v7, 16  ;;  %v6447_v59 = vld [vmem:[#allocation7 + $0x108] sm:$0xff]   ;;  %p6597_p9 = pneg %p6596_p8 }
  0x89   : > { %v397_v15 = vrot.slane %v395_v8, 7  ;;  %v808_v48 = vld [vmem:[#allocation2 + $0xa4] sm:$0x1]  ;;  %v265_v60 = vld [vmem:[%s6872_s9 + $0x10] sm:$0xff]  ;;  %v266_v61 = vld [vmem:[%s6872_s9 + $0x18] sm:$0xff]  ;;  %p6603_p7 = por %p6602_p3, %p6601_p13 }
  0x8a   : > { %5817 = vmatpush3.bf16.msra.mxu0 %v6425_v11  ;;  %6340 = vmatpush3.bf16.msra.mxu1 %v6425_v11  ;;  %v406_v11 = vshll.u32 %v5776_v3, 16  ;;  %v405_v16 = vrot.slane %v403_v10, 7  ;;  %v601_v20 = vrot.slane %v599_v13, 7  ;;  %v5777_v63 = vpack.c.bf16 %v265_v60, %v265_v60  ;;  %v6436_v8 = vld [vmem:[#allocation7 + $0x80] sm:$0xff]  }
  0x8b   : > { %5818 = vmatprep.subr.bf16.mxu0 %v6426_v12  ;;  %6333 = vmatprep.subr.bf16.mxu1 %v6426_v12  ;;  %v5800_v12 = vpack.c.bf16 %v288_v6, %v288_v6  ;;  %v400_v26 = vor.u32 %v398_v9, %v397_v15  ;;  %v401_v35 = vrot.slane %v397_v15, 4  ;;  %v6937_v0 = vpack.c.bf16 %v266_v61, %v266_v61  ;;  %v6438_v9 = vld [vmem:[#allocation7 + $0xc8] sm:$0xff]   ;;  %p6604_p10 = pnand %p6603_p7, %p6597_p9 }
  0x8c   : > { %v408_v27 = vor.u32 %v406_v11, %v405_v16  ;;  %v605_v46 = vrot.slane %v601_v20, 4  ;;  %v412_v10 = vshrl.u32 %v5777_v63, 16  ;;  %v415_v11 = vshll.u32 %v5777_v63, 16  ;;  %v6439_v15 = vld [vmem:[#allocation7 + $0x88] sm:$0xff]  }
  0x8d   : > { %v607_v21 = vshrl.u32 %v5800_v12, 16  ;;  %v719_v41 = vsel %vm6901_vm9, %v400_v26, %v718_v17  ;;  %v610_v53 = vshll.u32 %v5800_v12, 16  ;;  %v420_v13 = vshrl.u32 %v6937_v0, 16 }
  0x8e   : > { %5819 = vmatpush3.bf16.msra.mxu0 %v6427_v23  ;;  %6341 = vmatpush3.bf16.msra.mxu1 %v6427_v23  ;;  %v1012_v18 = vld [vmem:[#allocation2 + $0x90] sm:$0xf]  ;;  %v1013_v22 = vld [vmem:[#allocation2 + $0x94] sm:$0xf]  ;;  %v409_v43 = vsel %vm6909_vm10, %v401_v35, %v408_v27  ;;  %720 = vst [vmem:[#allocation2 + $0xc] sm:$0xf] %v719_v41 }
  0x8f   : > { %5820 = vmatprep.subr.bf16.mxu0 %v6428_v28  ;;  %6334 = vmatprep.subr.bf16.mxu1 %v6428_v28  ;;  %v1014_v23 = vld [vmem:[#allocation2 + $0x98] sm:$0x1]  ;;  %v1316_v24 = vshrl.u32 %v1012_v18, 16  ;;  %v1319_v25 = vshll.u32 %v1012_v18, 16  ;;  %v804_v28 = vld [vmem:[#allocation2 + $0x9c] sm:$0xf] }
  0x90   : > { %v1325_v29 = vshll.u32 %v1013_v22, 16  ;;  %v1329_v30 = vshrl.u32 %v1013_v22, 16  ;;  %v1335_v31 = vshll.u32 %v1014_v23, 16  ;;  %721 = vst [vmem:[#allocation2 + $0x10] sm:$0xf] %v409_v43  ;;  %v609_v52 = vrot.slane %v607_v21, 7 }
  0x91   : > { %v1318_v33 = vrot.slane %v1316_v24, 4  ;;  %v1321_v34 = vrot.slane %v1319_v25, 5  ;;  %v6433_v3 = vld [vmem:[#allocation2 + $0x90] sm:$0xff]   ;;  %v6442_v25 = vld [vmem:[#allocation7 + $0xd0] sm:$0xff]  }
  0x92   : > { %5821 = vmatpush3.bf16.msra.mxu0 %v6429_v32  ;;  %6342 = vmatpush3.bf16.msra.mxu1 %v6429_v32  ;;  %v604_v32 = vor.u32 %v602_v14, %v601_v20  ;;  %v1327_v38 = vrot.slane %v1325_v29, 5  ;;  %v1331_v39 = vrot.slane %v1329_v30, 4  ;;  %v1337_v40 = vrot.slane %v1335_v31, 5  ;;  %v290_v20 = vld [vmem:[%s6872_s9 + $0xd8] sm:$0xff] }
  0x93   : > { %5822 = vmatprep.subr.bf16.mxu0 %v6430_v36  ;;  %6335 = vmatprep.subr.bf16.mxu1 %v6430_v36  ;;  %v410_v36 = vrot.slane %v405_v16, 4  ;;  %v1322_v42 = vor.u32 %v1321_v34, %v1318_v33  ;;  %v614_v58 = vrot.slane %v609_v52, 4  ;;  %v423_v14 = vshll.u32 %v6937_v0, 16 }
  0x94   : > { %v1332_v50 = vor.u32 %v1331_v39, %v1327_v38  ;;  %v805_v54 = vsel %vm6901_vm9, %v604_v32, %v804_v28  ;;  %v414_v34 = vrot.slane %v412_v10, 7  ;;  %v422_v39 = vrot.slane %v420_v13, 7 }
  0x95   : > { %v725_v45 = vsel %vm6896_vm8, %v410_v36, %v724_v19  ;;  %v1323_v55 = vrot.slane %v1322_v42, 4  ;;  %806 = vst [vmem:[#allocation2 + $0x9c] sm:$0xf] %v805_v54  ;;  %v979_v12 = vld [vmem:[#allocation2 + $0xc] sm:$0xf] }
  0x96   : > { %5823 = vmatpush3.bf16.msra.mxu0 %v6431_v49  ;;  %6343 = vmatpush3.bf16.msra.mxu1 %v6431_v49  ;;  %v6445_v49 = vld [vmem:[#allocation7 + $0x148] sm:$0xff]   ;;  %726 = vst [vmem:[#allocation2 + $0x14] sm:$0x1] %v725_v45  ;;  %v1333_v56 = vrot.slane %v1332_v50, 4  ;;  %v1052_v18 = vshrl.u32 %v979_v12, 16  ;;  %v1055_v19 = vshll.u32 %v979_v12, 16  ;;  %v417_v43 = vor.u32 %v415_v11, %v414_v34 }
  0x97   : > { %5920 = vmatprep.subr.bf16.mxu1 %v6434_v57  ;;  %6032 = vmatprep.subr.bf16.mxu0 %v6435_v62  ;;  %v612_v57 = vor.u32 %v610_v53, %v609_v52  ;;  %v1328_v62 = vsel %vm6890_vm6, %v1323_v55, %v1327_v38  ;;  %v980_v16 = vld [vmem:[#allocation2 + $0x10] sm:$0xf]  ;;  %v727_v45 = vld [vmem:[#allocation2 + $0x18] sm:$0xf]  ;;  %v6443_v53 = vld [vmem:[#allocation7 + $0x90] sm:$0xff]  }
  0x98   : > { %v1338_v2 = vsel %vm6890_vm6, %v1333_v56, %v1337_v40  ;;  %v1061_v21 = vshll.u32 %v980_v16, 16  ;;  %v1065_v22 = vshrl.u32 %v980_v16, 16  ;;  %v1054_v27 = vrot.slane %v1052_v18, 4  ;;  %v731_v54 = vld [vmem:[#allocation2 + $0x20] sm:$0x1]  ;;  %v6440_v0 = vld [vmem:[#allocation2 + $0xc] sm:$0xff]  }
  0x99   : > { %4424 = vmatmul.mubr.bf16.vlgmr.msra.gmra.mrb[0].mxu0 %v6432_v1  ;;  %v289_v1 = vld [vmem:[%s6872_s9 + $0xd0] sm:$0xff]  ;;  %v613_v4 = vsel %vm6909_vm10, %v605_v46, %v612_v57  ;;  %v5531_v7 = vcombine.low %v1328_v62, %v1338_v2  ;;  %v1057_v28 = vrot.slane %v1055_v19, 5  ;;  %v6952_v46 = vpack.c.bf16 %v290_v20, %v290_v20  ;;  %v6444_v57 = vld [vmem:[#allocation7 + $0xd8] sm:$0xff]   ;;  %v267_v11 = vld [vmem:[%s6872_s9 + $0x20] sm:$0xff] }
  0x9a   : > { %6033 = vmatpush3.bf16.msra.mxu0 %v6437_v5  ;;  %v809_v5 = vsel %vm6896_vm8, %v614_v58, %v808_v48  ;;  %v6946_v6 = vpack.c.bf16 %v289_v1, %v289_v1  ;;  %807 = vst [vmem:[#allocation2 + $0xa0] sm:$0xf] %v613_v4  ;;  %v1063_v31 = vrot.slane %v1061_v21, 5  ;;  %v1067_v32 = vrot.slane %v1065_v22, 4  ;;  %v6446_v1 = vld [vmem:[#allocation7 + $0x98] sm:$0xff]   ;;  %v268_v12 = vld [vmem:[%s6872_s9 + $0x28] sm:$0xff] }
  0x9b   : > { %6034 = vmatprep.subr.bf16.mxu0 %v6445_v49  ;;  %810 = vst [vmem:[#allocation2 + $0xa4] sm:$0x1] %v809_v5  ;;  %4519 = vmatprep.mubr.bf16.mxu1 %v5531_v7  ;;  %v1058_v35 = vor.u32 %v1057_v28, %v1054_v27  ;;  %v418_v58 = vrot.slane %v414_v34, 4  ;;  %v427_v5 = vrot.slane %v422_v39, 4  ;;  %v728_v10 = vsel %vm6901_vm9, %v417_v43, %v727_v45  ;;  %v291_v18 = vld [vmem:[%s6872_s9 + $0xe0] sm:$0xff] }
  0x9c   : > { %4520 = vmatmul.mubr.bf16.vlgmr.msra.gmra.mrb[0].mxu1 %v6433_v3  ;;  %v1015_v24 = vld [vmem:[#allocation2 + $0x9c] sm:$0xf]  ;;  %v616_v26 = vshrl.u32 %v6946_v6, 16  ;;  %v1068_v40 = vor.u32 %v1067_v32, %v1063_v31  ;;  %729 = vst [vmem:[#allocation2 + $0x18] sm:$0xf] %v728_v10  ;;  %v624_v16 = vshrl.u32 %v6952_v46, 16 }
  0x9d   : > { %v981_v17 = vld [vmem:[#allocation2 + $0x14] sm:$0x1]  ;;  %5921 = vmatpush3.bf16.msra.mxu1 %v6436_v8  ;;  %v1340_v29 = vshrl.u32 %v1015_v24, 16  ;;  %v1343_v30 = vshll.u32 %v1015_v24, 16  ;;  %v1059_v48 = vrot.slane %v1058_v35, 4  ;;  %v732_v13 = vsel %vm6896_vm8, %v427_v5, %v731_v54  ;;  %v6457_v35 = vld [vmem:[#allocation7 + $0x150] sm:$0xff]  }
  0x9e   : > { %6035 = vmatpush3.bf16.msra.mxu0 %v6447_v59  ;;  %v1071_v23 = vshll.u32 %v981_v17, 16  ;;  %5922 = vmatprep.subr.bf16.mxu1 %v6438_v9  ;;  %v1069_v55 = vrot.slane %v1068_v40, 4  ;;  %v425_v59 = vor.u32 %v423_v14, %v422_v39  ;;  %v618_v14 = vrot.slane %v616_v26, 7  ;;  %v6450_v17 = vld [vmem:[#allocation7 + $0xe0] sm:$0xff]   ;;  %733 = vst [vmem:[#allocation2 + $0x20] sm:$0x1] %v732_v13 }
  0x9f   : > { %v1342_v36 = vrot.slane %v1340_v29, 4  ;;  %v1345_v38 = vrot.slane %v1343_v30, 5  ;;  %v1064_v60 = vsel %vm6890_vm6, %v1059_v48, %v1063_v31  ;;  %v627_v20 = vshll.u32 %v6952_v46, 16  ;;  %v811_v21 = vld [vmem:[#allocation2 + $0xa8] sm:$0xf]  ;;  %v292_v29 = vld [vmem:[%s6872_s9 + $0xe8] sm:$0xff]  ;;  %6036 = vmatprep.subr.bf16.mxu0 %v6457_v35 }
  0xa0   : > { %v1073_v33 = vrot.slane %v1071_v23, 5  ;;  %v426_v4 = vsel %vm6909_vm10, %v418_v58, %v425_v59  ;;  %v815_v22 = vld [vmem:[#allocation2 + $0xb0] sm:$0x1]  ;;  %v5779_v23 = vpack.c.bf16 %v267_v11, %v267_v11  ;;  %v5780_v24 = vpack.c.bf16 %v268_v12, %v268_v12  ;;  %v734_v46 = vld [vmem:[#allocation2 + $0x24] sm:$0xf]  ;;  %v6459_v48 = vld [vmem:[#allocation7 + $0x110] sm:$0xff]  }
  0xa1   : > { %v1016_v41 = vld [vmem:[#allocation2 + $0xa0] sm:$0xf]  ;;  %5923 = vmatpush3.bf16.msra.mxu1 %v6439_v15  ;;  %v1346_v49 = vor.u32 %v1345_v38, %v1342_v36  ;;  %730 = vst [vmem:[#allocation2 + $0x1c] sm:$0xf] %v426_v4  ;;  %v619_v15 = vshll.u32 %v6946_v6, 16  ;;  %v622_v26 = vrot.slane %v618_v14, 4  ;;  %v6973_v30 = vpack.c.bf16 %v291_v18, %v291_v18 }
  0xa2   : > { %v1017_v42 = vld [vmem:[#allocation2 + $0xa4] sm:$0x1]  ;;  %v1349_v50 = vshll.u32 %v1016_v41, 16  ;;  %v1353_v52 = vshrl.u32 %v1016_v41, 16  ;;  %5924 = vmatprep.subr.bf16.mxu1 %v6442_v25  ;;  %v1074_v2 = vsel %vm6890_vm6, %v1069_v55, %v1073_v33  ;;  %v6441_v25 = vld [vmem:[#allocation2 + $0x9c] sm:$0xff]   ;;  %v626_v28 = vrot.slane %v624_v16, 7  ;;  %6037 = vmatpush3.bf16.msra.mxu0 %v6459_v48 }
  0xa3   : > { %v1359_v56 = vshll.u32 %v1017_v42, 16  ;;  %v1347_v61 = vrot.slane %v1346_v49, 4  ;;  %v5520_v7 = vcombine.low %v1064_v60, %v1074_v2  ;;  %v621_v27 = vor.u32 %v619_v15, %v618_v14  ;;  %v6451_v6 = vld [vmem:[#allocation7 + $0xa0] sm:$0xff]   ;;  %v6452_v41 = vld [vmem:[#allocation7 + $0xe8] sm:$0xff]   ;;  %v738_v54 = vld [vmem:[#allocation2 + $0x2c] sm:$0x1] }
  0xa4   : > { %v1351_v62 = vrot.slane %v1349_v50, 5  ;;  %v1355_v63 = vrot.slane %v1353_v52, 4  ;;  %v429_v32 = vshrl.u32 %v5779_v23, 16  ;;  %v432_v33 = vshll.u32 %v5779_v23, 16  ;;  %v6461_v35 = vld [vmem:[#allocation7 + $0xb8] sm:$0xff]  }
  0xa5   : > { %v1361_v3 = vrot.slane %v1359_v56, 5  ;;  %5925 = vmatpush3.bf16.msra.mxu1 %v6443_v53  ;;  %4431 = vmatprep.mubr.bf16.mxu0 %v5520_v7  ;;  %v437_v34 = vshrl.u32 %v5780_v24, 16  ;;  %v629_v38 = vor.u32 %v627_v20, %v626_v28  ;;  %v631_v39 = vrot.slane %v626_v28, 4  ;;  %v6453_v53 = vld [vmem:[#allocation7 + $0xa8] sm:$0xff]   ;;  %v6458_v20 = vld [vmem:[#allocation7 + $0xb0] sm:$0xff]  }
  0xa6   : > { %v1352_v8 = vsel %vm6890_vm6, %v1347_v61, %v1351_v62  ;;  %v1356_v9 = vor.u32 %v1355_v63, %v1351_v62  ;;  %5926 = vmatprep.subr.bf16.mxu1 %v6444_v57  ;;  %4432 = vmatmul.mubr.bf16.gmra.mrb[4].mxu0 %v6440_v0  ;;  %v812_v40 = vsel %vm6901_vm9, %v621_v27, %v811_v21  ;;  %v431_v42 = vrot.slane %v429_v32, 7  ;;  %v982_v57 = vld [vmem:[#allocation2 + $0x18] sm:$0xf]  ;;  %v6456_v62 = vld [vmem:[#allocation7 + $0xf0] sm:$0xff]   ;;  %v984_v63 = vld [vmem:[#allocation2 + $0x20] sm:$0x1] }
  0xa7   : > { %813 = vst [vmem:[#allocation2 + $0xa8] sm:$0xf] %v812_v40  ;;  %v439_v43 = vrot.slane %v437_v34, 7  ;;  %v440_v45 = vshll.u32 %v5780_v24, 16  ;;  %v630_v50 = vsel %vm6909_vm10, %v622_v26, %v629_v38  ;;  %v816_v52 = vsel %vm6896_vm8, %v631_v39, %v815_v22  ;;  %v818_v24 = vld [vmem:[#allocation2 + $0xb4] sm:$0xf] }
  0xa8   : > { %v1357_v19 = vrot.slane %v1356_v9, 4  ;;  %v983_v49 = vld [vmem:[#allocation2 + $0x1c] sm:$0xf]  ;;  %v6983_v55 = vpack.c.bf16 %v292_v29, %v292_v29  ;;  %v633_v56 = vshrl.u32 %v6973_v30, 16  ;;  %814 = vst [vmem:[#allocation2 + $0xac] sm:$0xf] %v630_v50  ;;  %v434_v60 = vor.u32 %v432_v33, %v431_v42 }
  0xa9   : > { %5927 = vmatpush3.bf16.msra.mxu1 %v6446_v1  ;;  %v1085_v58 = vshll.u32 %v983_v49, 16  ;;  %v1089_v59 = vshrl.u32 %v983_v49, 16  ;;  %817 = vst [vmem:[#allocation2 + $0xb0] sm:$0x1] %v816_v52  ;;  %v442_v61 = vor.u32 %v440_v45, %v439_v43  ;;  %v1076_v0 = vshrl.u32 %v982_v57, 16 }
  0xaa   : > { %v1362_v31 = vsel %vm6890_vm6, %v1357_v19, %v1361_v3  ;;  %5928 = vmatprep.subr.bf16.mxu1 %v6450_v17  ;;  %v1079_v1 = vshll.u32 %v982_v57, 16  ;;  %v435_v2 = vrot.slane %v431_v42, 4  ;;  %v636_v3 = vshll.u32 %v6973_v30, 16 }
  0xab   : > { %v5532_v36 = vcombine.low %v1352_v8, %v1362_v31  ;;  %v1087_v4 = vrot.slane %v1085_v58, 5  ;;  %v1091_v5 = vrot.slane %v1089_v59, 4  ;;  %v1095_v7 = vshll.u32 %v984_v63, 16 }
  0xac   : > { %v444_v8 = vrot.slane %v439_v43, 4  ;;  %v1078_v9 = vrot.slane %v1076_v0, 4  ;;  %v1081_v10 = vrot.slane %v1079_v1, 5  ;;  %v443_v11 = vsel %vm6909_vm10, %v435_v2, %v442_v61 }
  0xad   : > { %4527 = vmatprep.mubr.bf16.mxu1 %v5532_v36  ;;  %5929 = vmatpush3.bf16.msra.mxu1 %v6451_v6  ;;  %v735_v12 = vsel %vm6901_vm9, %v434_v60, %v734_v46  ;;  %v1092_v13 = vor.u32 %v1091_v5, %v1087_v4  ;;  %v1097_v14 = vrot.slane %v1095_v7, 5  ;;  %737 = vst [vmem:[#allocation2 + $0x28] sm:$0xf] %v443_v11  ;;  %v6993_v16 = vrot.slane %v633_v56, 7  ;;  %v6448_v6 = vld [vmem:[#allocation2 + $0x18] sm:$0xff]  }
  0xae   : > { %4528 = vmatmul.mubr.bf16.gmra.mrb[4].mxu1 %v6441_v25  ;;  %5930 = vmatprep.subr.bf16.mxu1 %v6452_v41  ;;  %736 = vst [vmem:[#allocation2 + $0x24] sm:$0xf] %v735_v12  ;;  %v739_v15 = vsel %vm6896_vm8, %v444_v8, %v738_v54  ;;  %v1082_v17 = vor.u32 %v1081_v10, %v1078_v9  ;;  %v1018_v18 = vld [vmem:[#allocation2 + $0xa8] sm:$0xf]  ;;  %v641_v19 = vshrl.u32 %v6983_v55, 16  ;;  %v6460_v25 = vld [vmem:[#allocation7 + $0xf8] sm:$0xff]  }
  0xaf   : > { %740 = vst [vmem:[#allocation2 + $0x2c] sm:$0x1] %v739_v15  ;;  %v1093_v21 = vrot.slane %v1092_v13, 4  ;;  %v1364_v22 = vshrl.u32 %v1018_v18, 16  ;;  %v1367_v23 = vshll.u32 %v1018_v18, 16  ;;  %v638_v29 = vor.u32 %v636_v3, %v6993_v16  ;;  %v269_v41 = vld [vmem:[%s6872_s9 + $0x30] sm:$0xff] }
  0xb0   : > { %v1083_v27 = vrot.slane %v1082_v17, 4  ;;  %v1019_v26 = vld [vmem:[#allocation2 + $0xac] sm:$0xf]  ;;  %v1020_v28 = vld [vmem:[#allocation2 + $0xb0] sm:$0x1]  ;;  %v644_v30 = vshll.u32 %v6983_v55, 16  ;;  %v5781_v55 = vpack.c.bf16 %v269_v41, %v269_v41 }
  0xb1   : > { %5931 = vmatpush3.bf16.msra.mxu1 %v6453_v53  ;;  %v1098_v31 = vsel %vm6890_vm6, %v1093_v21, %v1097_v14  ;;  %v1366_v32 = vrot.slane %v1364_v22, 4  ;;  %v1369_v33 = vrot.slane %v1367_v23, 5  ;;  %v1373_v34 = vshll.u32 %v1019_v26, 16  ;;  %v270_v54 = vld [vmem:[%s6872_s9 + $0x38] sm:$0xff]  ;;  %v822_v9 = vld [vmem:[#allocation2 + $0xbc] sm:$0x1] }
  0xb2   : > { %5932 = vmatprep.subr.bf16.mxu1 %v6456_v62  ;;  %v1088_v36 = vsel %vm6890_vm6, %v1083_v27, %v1087_v4  ;;  %v1377_v38 = vshrl.u32 %v1019_v26, 16  ;;  %v1383_v39 = vshll.u32 %v1020_v28, 16  ;;  %v639_v40 = vrot.slane %v6993_v16, 4  ;;  %v6464_v10 = vld [vmem:[#allocation7 + $0x1c0] sm:$0xff]   ;;  %v6449_v16 = vld [vmem:[#allocation2 + $0xa8] sm:$0xff]   ;;  %v6466_v41 = vld [vmem:[#allocation7 + $0x158] sm:$0xff]  }
  0xb3   : > { %v5521_v42 = vcombine.low %v1088_v36, %v1098_v31  ;;  %v1370_v43 = vor.u32 %v1369_v33, %v1366_v32  ;;  %v1375_v45 = vrot.slane %v1373_v34, 5  ;;  %v643_v46 = vrot.slane %v641_v19, 7  ;;  %v745_v33 = vld [vmem:[#allocation2 + $0x38] sm:$0x1]  ;;  %v1492_v34 = vld [vmem:[#allocation2 + $0x4] sm:$0xf]  ;;  %6038 = vmatprep.subr.bf16.mxu0 %v6466_v41 }
  0xb4   : > { %v1379_v48 = vrot.slane %v1377_v38, 4  ;;  %v1385_v49 = vrot.slane %v1383_v39, 5  ;;  %v986_v52 = vld [vmem:[#allocation2 + $0x28] sm:$0xf]  ;;  %v819_v53 = vsel %vm6901_vm9, %v638_v29, %v818_v24  ;;  %v5782_v13 = vpack.c.bf16 %v270_v54, %v270_v54  ;;  %v741_v24 = vld [vmem:[#allocation2 + $0x30] sm:$0xf] }
  0xb5   : > { %5933 = vmatpush3.bf16.msra.mxu1 %v6458_v20  ;;  %v985_v50 = vld [vmem:[#allocation2 + $0x24] sm:$0xf]  ;;  %4439 = vmatprep.mubr.bf16.mxu0 %v5521_v42  ;;  %v1371_v56 = vrot.slane %v1370_v43, 4  ;;  %v1109_v60 = vshll.u32 %v986_v52, 16  ;;  %820 = vst [vmem:[#allocation2 + $0xb4] sm:$0xf] %v819_v53  ;;  %v646_v0 = vor.u32 %v644_v30, %v643_v46 }
  0xb6   : > { %5934 = vmatprep.subr.bf16.mxu1 %v6460_v25  ;;  %v987_v57 = vld [vmem:[#allocation2 + $0x2c] sm:$0x1]  ;;  %v1100_v58 = vshrl.u32 %v985_v50, 16  ;;  %v1103_v59 = vshll.u32 %v985_v50, 16  ;;  %v1380_v61 = vor.u32 %v1379_v48, %v1375_v45  ;;  %4440 = vmatmul.mubr.bf16.gmra.mrb[8].mxu0 %v6448_v6  ;;  %v1113_v62 = vshrl.u32 %v986_v52, 16  ;;  %v6454_v26 = vld [vmem:[#allocation2 + $0x24] sm:$0xff]  }
  0xb7   : > { %v1119_v63 = vshll.u32 %v987_v57, 16  ;;  %v1111_v3 = vrot.slane %v1109_v60, 5  ;;  %v1376_v4 = vsel %vm6890_vm6, %v1371_v56, %v1375_v45  ;;  %v647_v8 = vsel %vm6909_vm10, %v639_v40, %v646_v0  ;;  %v1491_v6 = vld [vmem:[#allocation2] sm:$0xe]  ;;  %v6467_v56 = vld [vmem:[#allocation7 + $0x118] sm:$0xff]  }
  0xb8   : > { %v1102_v1 = vrot.slane %v1100_v58, 4  ;;  %v1105_v2 = vrot.slane %v1103_v59, 5  ;;  %v1381_v5 = vrot.slane %v1380_v61, 4  ;;  %v1115_v7 = vrot.slane %v1113_v62, 4  ;;  %821 = vst [vmem:[#allocation2 + $0xb8] sm:$0xf] %v647_v8  ;;  %6039 = vmatpush3.bf16.msra.mxu0 %v6467_v56 }
  0xb9   : > { %5935 = vmatpush3.bf16.msra.mxu1 %v6461_v35  ;;  %v648_v12 = vrot.slane %v643_v46, 4  ;;  %v446_v14 = vshrl.u32 %v5781_v55, 16  ;;  %v1121_v18 = vrot.slane %v1119_v63, 5  ;;  %v449_v19 = vshll.u32 %v5781_v55, 16  ;;  %v1493_v35 = vld [vmem:[#allocation2 + $0x8] sm:$0x1] }
  0xba   : > { %v1106_v11 = vor.u32 %v1105_v2, %v1102_v1  ;;  %v1386_v15 = vsel %vm6890_vm6, %v1381_v5, %v1385_v49  ;;  %v1116_v17 = vor.u32 %v1115_v7, %v1111_v3  ;;  %6144 = vmatprep.subr.bf16.mxu1 %v6464_v10  ;;  %v454_v28 = vshrl.u32 %v5782_v13, 16  ;;  %v271_v61 = vld [vmem:[%s6872_s9 + $0x40] sm:$0xff]  ;;  %v272_v62 = vld [vmem:[%s6872_s9 + $0x48] sm:$0xff] }
  0xbb   : > { %v5533_v20 = vcombine.low %v1376_v4, %v1386_v15  ;;  %v823_v22 = vsel %vm6896_vm8, %v648_v12, %v822_v9  ;;  %v448_v23 = vrot.slane %v446_v14, 7  ;;  %v457_v40 = vshll.u32 %v5782_v13, 16 }
  0xbc   : > { %v1107_v21 = vrot.slane %v1106_v11, 4  ;;  %v1117_v25 = vrot.slane %v1116_v17, 4  ;;  %824 = vst [vmem:[#allocation2 + $0xbc] sm:$0x1] %v823_v22  ;;  %v1021_v27 = vld [vmem:[#allocation2 + $0xb4] sm:$0xf]  ;;  %v5783_v4 = vpack.c.bf16 %v271_v61, %v271_v61  ;;  %v5784_v8 = vpack.c.bf16 %v272_v62, %v272_v62 }
  0xbd   : > { %4535 = vmatprep.mubr.bf16.mxu1 %v5533_v20  ;;  %v1388_v30 = vshrl.u32 %v1021_v27, 16  ;;  %v1391_v31 = vshll.u32 %v1021_v27, 16  ;;  %v451_v32 = vor.u32 %v449_v19, %v448_v23  ;;  %v452_v38 = vrot.slane %v448_v23, 4  ;;  %v273_v17 = vld [vmem:[%s6872_s9 + $0x50] sm:$0xff] }
  0xbe   : > { %v1112_v29 = vsel %vm6890_vm6, %v1107_v21, %v1111_v3  ;;  %4536 = vmatmul.mubr.bf16.gmra.mrb[8].mxu1 %v6449_v16  ;;  %v1122_v36 = vsel %vm6890_vm6, %v1117_v25, %v1121_v18  ;;  %v456_v39 = vrot.slane %v454_v28, 7  ;;  %v5535_v55 = vrot.slane %v1491_v6, 9  ;;  %v748_v16 = vld [vmem:[#allocation2 + $0x3c] sm:$0xf]  ;;  %v6462_v27 = vld [vmem:[#allocation2 + $0xc] sm:$0xff]  }
  0xbf   : > { %v5522_v42 = vcombine.low %v1112_v29, %v1122_v36  ;;  %v1390_v43 = vrot.slane %v1388_v30, 4  ;;  %v1393_v45 = vrot.slane %v1391_v31, 5  ;;  %v742_v46 = vsel %vm6901_vm9, %v451_v32, %v741_v24  ;;  %v1022_v48 = vld [vmem:[#allocation2 + $0xb8] sm:$0xf]  ;;  %v1495_v28 = vld [vmem:[#allocation2 + $0x10] sm:$0xf] }
  0xc0   : > { %v459_v49 = vor.u32 %v457_v40, %v456_v39  ;;  %v461_v50 = vrot.slane %v456_v39, 4  ;;  %743 = vst [vmem:[#allocation2 + $0x30] sm:$0xf] %v742_v46  ;;  %v1397_v53 = vshll.u32 %v1022_v48, 16  ;;  %v1401_v54 = vshrl.u32 %v1022_v48, 16  ;;  %v6455_v23 = vld [vmem:[#allocation2 + $0xb4] sm:$0xff]  }
  0xc1   : > { %4447 = vmatprep.mubr.bf16.mxu0 %v5522_v42  ;;  %v1394_v52 = vor.u32 %v1393_v45, %v1390_v43  ;;  %v1592_v59 = vrot.slane %v1492_v34, 5  ;;  %v1595_v60 = vrot.slane %v1493_v35, 5  ;;  %v463_v10 = vshrl.u32 %v5783_v4, 16  ;;  %v752_v32 = vld [vmem:[#allocation2 + $0x44] sm:$0x1] }
  0xc2   : > { %4448 = vmatmul.mubr.bf16.gmra.mrb[12].mxu0 %v6454_v26  ;;  %v460_v57 = vsel %vm6909_vm10, %v452_v38, %v459_v49  ;;  %v746_v58 = vsel %vm6896_vm8, %v461_v50, %v745_v33  ;;  %v1399_v1 = vrot.slane %v1397_v53, 5  ;;  %v1403_v2 = vrot.slane %v1401_v54, 4  ;;  %v1494_v33 = vld [vmem:[#allocation2 + $0xc] sm:$0xe]  ;;  %v1496_v34 = vld [vmem:[#allocation2 + $0x14] sm:$0x1] }
  0xc3   : > { %v1023_v63 = vld [vmem:[#allocation2 + $0xbc] sm:$0x1]  ;;  %v1395_v0 = vrot.slane %v1394_v52, 4  ;;  %744 = vst [vmem:[#allocation2 + $0x34] sm:$0xf] %v460_v57  ;;  %v1594_v7 = vrot.slane %v1592_v59, 4  ;;  %v7035_v13 = vsel %vm7029_vm13, %v5535_v55, %v1592_v59  ;;  %v7044_v6 = vpack.c.bf16 %v273_v17, %v273_v17 }
  0xc4   : > { %747 = vst [vmem:[#allocation2 + $0x38] sm:$0x1] %v746_v58  ;;  %v1407_v5 = vshll.u32 %v1023_v63, 16  ;;  %v1404_v9 = vor.u32 %v1403_v2, %v1399_v1  ;;  %v466_v11 = vshll.u32 %v5783_v4, 16  ;;  %v471_v14 = vshrl.u32 %v5784_v8, 16  ;;  %v274_v49 = vld [vmem:[%s6872_s9 + $0x58] sm:$0xff] }
  0xc5   : > { %v474_v15 = vshll.u32 %v5784_v8, 16  ;;  %v1400_v18 = vsel %vm6890_vm6, %v1395_v0, %v1399_v1  ;;  %v7042_v21 = vsel %vm7029_vm13, %v1594_v7, %v1595_v60  ;;  %v465_v22 = vrot.slane %v463_v10, 7  ;;  %v6472_v55 = vld [vmem:[#allocation7 + $0x160] sm:$0xff]   ;;  %v7061_v7 = vld [vmem:[#allocation2 + $0x20] sm:$0x1] }
  0xc6   : > { %v1409_v12 = vrot.slane %v1407_v5, 5  ;;  %v1405_v19 = vrot.slane %v1404_v9, 4  ;;  %v473_v26 = vrot.slane %v471_v14, 7  ;;  %v1599_v35 = vrot.slane %v1495_v28, 5  ;;  %v7055_v0 = vld [vmem:[#allocation2 + $0x18] sm:$0xe]  ;;  %6040 = vmatprep.subr.bf16.mxu0 %v6472_v55 }
  0xc7   : > { %v988_v20 = vld [vmem:[#allocation2 + $0x30] sm:$0xf]  ;;  %v468_v30 = vor.u32 %v466_v11, %v465_v22  ;;  %v469_v31 = vrot.slane %v465_v22, 4  ;;  %v5536_v54 = vrot.slane %v1494_v33, 9  ;;  %v1602_v62 = vrot.slane %v1496_v34, 5  ;;  %v6465_v9 = vld [vmem:[#allocation7 + $0x180] sm:$0xff]  }
  0xc8   : > { %v1124_v24 = vshrl.u32 %v988_v20, 16  ;;  %v1127_v25 = vshll.u32 %v988_v20, 16  ;;  %v1410_v29 = vsel %vm6890_vm6, %v1405_v19, %v1409_v12  ;;  %v476_v42 = vor.u32 %v474_v15, %v473_v26  ;;  %v7059_v5 = vld [vmem:[#allocation2 + $0x1c] sm:$0xf]  ;;  %v755_v12 = vld [vmem:[#allocation2 + $0x48] sm:$0xf] }
  0xc9   : > { %v5534_v36 = vcombine.low %v1400_v18, %v1410_v29  ;;  %v749_v48 = vsel %vm6901_vm9, %v468_v30, %v748_v16  ;;  %v478_v53 = vrot.slane %v473_v26, 4  ;;  %v1601_v59 = vrot.slane %v1599_v35, 4  ;;  %v6468_v17 = vld [vmem:[#allocation2 + $0x18] sm:$0xff]   ;;  %v759_v22 = vld [vmem:[#allocation2 + $0x50] sm:$0x1] }
  0xca   : > { %v989_v38 = vld [vmem:[#allocation2 + $0x34] sm:$0xf]  ;;  %v1126_v40 = vrot.slane %v1124_v24, 4  ;;  %v1129_v41 = vrot.slane %v1127_v25, 5  ;;  %v477_v52 = vsel %vm6909_vm10, %v469_v31, %v476_v42  ;;  %750 = vst [vmem:[#allocation2 + $0x3c] sm:$0xf] %v749_v48  ;;  %v5786_v63 = vpack.c.bf16 %v274_v49, %v274_v49 }
  0xcb   : > { %v990_v39 = vld [vmem:[#allocation2 + $0x38] sm:$0x1]  ;;  %v1133_v43 = vshll.u32 %v989_v38, 16  ;;  %v1137_v45 = vshrl.u32 %v989_v38, 16  ;;  %4543 = vmatprep.mubr.bf16.mxu1 %v5534_v36  ;;  %751 = vst [vmem:[#allocation2 + $0x40] sm:$0xf] %v477_v52  ;;  %v753_v61 = vsel %vm6896_vm8, %v478_v53, %v752_v32  ;;  %v5551_v8 = vcombine.low %v7035_v13, %v7042_v21 }
  0xcc   : > { %v1143_v46 = vshll.u32 %v990_v39, 16  ;;  %v1130_v50 = vor.u32 %v1129_v41, %v1126_v40  ;;  %4544 = vmatmul.mubr.bf16.gmra.mrb[12].mxu1 %v6455_v23  ;;  %754 = vst [vmem:[#allocation2 + $0x44] sm:$0x1] %v753_v61  ;;  %v480_v2 = vshrl.u32 %v7044_v6, 16  ;;  %v483_v4 = vshll.u32 %v7044_v6, 16  ;;  %v6463_v16 = vld [vmem:[#allocation2 + $0x30] sm:$0xff]  }
  0xcd   : > { %v1135_v56 = vrot.slane %v1133_v43, 5  ;;  %v1139_v57 = vrot.slane %v1137_v45, 4  ;;  %4584 = vmatprep.mubr.bf16.mxu1 %v6462_v27  ;;  %v488_v10 = vshrl.u32 %v5786_v63, 16  ;;  %v491_v11 = vshll.u32 %v5786_v63, 16  ;;  %v6473_v24 = vld [vmem:[#allocation7 + $0x1c8] sm:$0xff]   ;;  %v6474_v25 = vld [vmem:[#allocation7 + $0x120] sm:$0xff]  }
  0xce   : > { %v1145_v58 = vrot.slane %v1143_v46, 5  ;;  %v1131_v60 = vrot.slane %v1130_v50, 4  ;;  %v482_v18 = vrot.slane %v480_v2, 7  ;;  %v5537_v19 = vrot.slane %v7055_v0, 9  ;;  %6041 = vmatpush3.bf16.msra.mxu0 %v6474_v25  ;;  %v6475_v40 = vld [vmem:[#allocation7 + $0x188] sm:$0xff]   ;;  %v275_v52 = vld [vmem:[%s6872_s9 + $0x60] sm:$0xff] }
  0xcf   : > { %v1140_v1 = vor.u32 %v1139_v57, %v1135_v56  ;;  %v7070_v20 = vsel %vm7029_vm13, %v5536_v54, %v1599_v35  ;;  %v7074_v13 = vsel %vm7029_vm13, %v1601_v59, %v1602_v62  ;;  %v490_v21 = vrot.slane %v488_v10, 7  ;;  %v1500_v10 = vld [vmem:[#allocation2 + $0x24] sm:$0xe] }
  0xd0   : > { %v1136_v14 = vsel %vm6890_vm6, %v1131_v60, %v1135_v56  ;;  %v1606_v23 = vrot.slane %v7059_v5, 5  ;;  %v485_v28 = vor.u32 %v483_v4, %v482_v18  ;;  %v486_v6 = vrot.slane %v482_v18, 4  ;;  %v276_v56 = vld [vmem:[%s6872_s9 + $0x68] sm:$0xff] }
  0xd1   : > { %v1141_v15 = vrot.slane %v1140_v1, 4  ;;  %v991_v26 = vld [vmem:[#allocation2 + $0x3c] sm:$0xf]  ;;  %v1609_v29 = vrot.slane %v7061_v7, 5  ;;  %v493_v34 = vor.u32 %v491_v11, %v490_v21  ;;  %v495_v38 = vrot.slane %v490_v21, 4  ;;  %v6470_v60 = vld [vmem:[#allocation2 + $0x24] sm:$0xff]  }
  0xd2   : > { %v992_v31 = vld [vmem:[#allocation2 + $0x40] sm:$0xf]  ;;  %v1148_v32 = vshrl.u32 %v991_v26, 16  ;;  %v1151_v33 = vshll.u32 %v991_v26, 16  ;;  %v756_v39 = vsel %vm6901_vm9, %v485_v28, %v755_v12  ;;  %v5552_v54 = vcombine.low %v7070_v20, %v7074_v13  ;;  %v766_v21 = vld [vmem:[#allocation2 + $0x5c] sm:$0x1] }
  0xd3   : > { %v1146_v27 = vsel %vm6890_vm6, %v1141_v15, %v1145_v58  ;;  %v1157_v35 = vshll.u32 %v992_v31, 16  ;;  %v1161_v36 = vshrl.u32 %v992_v31, 16  ;;  %v993_v41 = vld [vmem:[#allocation2 + $0x44] sm:$0x1]  ;;  %v494_v45 = vsel %vm6909_vm10, %v486_v6, %v493_v34  ;;  %757 = vst [vmem:[#allocation2 + $0x48] sm:$0xf] %v756_v39 }
  0xd4   : > { %v5523_v30 = vcombine.low %v1136_v14, %v1146_v27  ;;  %4585 = vmatmul.mubr.bf16.vlgmr.msra.gmra.mrb[16].mxu1 %v5551_v8  ;;  %v1150_v42 = vrot.slane %v1148_v32, 4  ;;  %v1153_v43 = vrot.slane %v1151_v33, 5  ;;  %v1167_v49 = vshll.u32 %v993_v41, 16  ;;  %758 = vst [vmem:[#allocation2 + $0x4c] sm:$0xf] %v494_v45  ;;  %v6478_v4 = vld [vmem:[#allocation7 + $0x168] sm:$0xff]  }
  0xd5   : > { %6145 = vmatpush3.bf16.msra.mxu1 %v6465_v9  ;;  %v1159_v46 = vrot.slane %v1157_v35, 5  ;;  %v1163_v48 = vrot.slane %v1161_v36, 4  ;;  %4592 = vmatprep.mubr.bf16.mxu1 %v6468_v17  ;;  %v760_v50 = vsel %vm6896_vm8, %v495_v38, %v759_v22  ;;  %v1608_v55 = vrot.slane %v1606_v23, 4  ;;  %v6469_v7 = vld [vmem:[#allocation2 + $0x3c] sm:$0xff]   ;;  %v762_v15 = vld [vmem:[#allocation2 + $0x54] sm:$0xf] }
  0xd6   : > { %4455 = vmatprep.mubr.bf16.mxu0 %v5523_v30  ;;  %v1154_v53 = vor.u32 %v1153_v43, %v1150_v42  ;;  %761 = vst [vmem:[#allocation2 + $0x50] sm:$0x1] %v760_v50  ;;  %6146 = vmatprep.subr.bf16.mxu1 %v6473_v24  ;;  %v5787_v57 = vpack.c.bf16 %v275_v52, %v275_v52  ;;  %v1169_v59 = vrot.slane %v1167_v49, 5  ;;  %v6479_v11 = vld [vmem:[#allocation7 + $0x128] sm:$0xff]   ;;  %v5538_v17 = vrot.slane %v1500_v10, 9  ;;  %v6476_v38 = vld [vmem:[#allocation2 + $0x30] sm:$0xff]  }
  0xd7   : > { %4456 = vmatmul.mubr.bf16.gmra.mrb[16].mxu0 %v6463_v16  ;;  %v1164_v58 = vor.u32 %v1163_v48, %v1159_v46  ;;  %v7092_v61 = vsel %vm7029_vm13, %v5537_v19, %v1606_v23  ;;  %v5788_v62 = vpack.c.bf16 %v276_v56, %v276_v56  ;;  %v7096_v0 = vsel %vm7029_vm13, %v1608_v55, %v1609_v29  ;;  %v1501_v16 = vld [vmem:[#allocation2 + $0x28] sm:$0xf]  ;;  %v1502_v28 = vld [vmem:[#allocation2 + $0x2c] sm:$0x1]  ;;  %v278_v49 = vld [vmem:[%s6872_s9 + $0x78] sm:$0xff] }
  0xd8   : > { %v1155_v63 = vrot.slane %v1154_v53, 4  ;;  %v497_v1 = vshrl.u32 %v5787_v57, 16  ;;  %v500_v2 = vshll.u32 %v5787_v57, 16  ;;  %6042 = vmatprep.subr.bf16.mxu0 %v6478_v4  ;;  %v5553_v20 = vcombine.low %v7092_v61, %v7096_v0  ;;  %v277_v48 = vld [vmem:[%s6872_s9 + $0x70] sm:$0xff] }
  0xd9   : > { %6147 = vmatpush3.bf16.msra.mxu1 %v6475_v40  ;;  %v1165_v5 = vrot.slane %v1164_v58, 4  ;;  %v505_v8 = vshrl.u32 %v5788_v62, 16  ;;  %v508_v9 = vshll.u32 %v5788_v62, 16  ;;  %v1613_v22 = vrot.slane %v1501_v16, 5  ;;  %6043 = vmatpush3.bf16.msra.mxu0 %v6479_v11  ;;  %v1503_v62 = vld [vmem:[#allocation2 + $0x30] sm:$0xe] }
  0xda   : > { %v1160_v12 = vsel %vm6890_vm6, %v1155_v63, %v1159_v46  ;;  %v499_v14 = vrot.slane %v497_v1, 7  ;;  %v994_v19 = vld [vmem:[#allocation2 + $0x48] sm:$0xf]  ;;  %v1616_v53 = vrot.slane %v1502_v28, 5  ;;  %v5790_v56 = vpack.c.bf16 %v278_v49, %v278_v49  ;;  %v769_v16 = vld [vmem:[#allocation2 + $0x60] sm:$0xf] }
  0xdb   : > { %v1170_v18 = vsel %vm6890_vm6, %v1165_v5, %v1169_v59  ;;  %v507_v13 = vrot.slane %v505_v8, 7  ;;  %v995_v24 = vld [vmem:[#allocation2 + $0x4c] sm:$0xf]  ;;  %v1172_v25 = vshrl.u32 %v994_v19, 16  ;;  %v1175_v27 = vshll.u32 %v994_v19, 16 }
  0xdc   : > { %4593 = vmatmul.mubr.bf16.gmra.mrb[20].mxu1 %v5552_v54  ;;  %v5524_v23 = vcombine.low %v1160_v12, %v1170_v18  ;;  %v502_v26 = vor.u32 %v500_v2, %v499_v14  ;;  %v1181_v29 = vshll.u32 %v995_v24, 16  ;;  %v1185_v30 = vshrl.u32 %v995_v24, 16  ;;  %v6471_v58 = vld [vmem:[#allocation2 + $0x48] sm:$0xff]   ;;  %v1504_v5 = vld [vmem:[#allocation2 + $0x34] sm:$0xf]  ;;  %v6480_v18 = vld [vmem:[#allocation2 + $0x3c] sm:$0xff]  }
  0xdd   : > { %4600 = vmatprep.mubr.bf16.mxu1 %v6470_v60  ;;  %v996_v6 = vld [vmem:[#allocation2 + $0x50] sm:$0x1]  ;;  %v503_v31 = vrot.slane %v499_v14, 4  ;;  %v510_v32 = vor.u32 %v508_v9, %v507_v13  ;;  %v1174_v33 = vrot.slane %v1172_v25, 4  ;;  %v1177_v34 = vrot.slane %v1175_v27, 5  ;;  %v6482_v63 = vld [vmem:[#allocation7 + $0x1d0] sm:$0xff]  }
  0xde   : > { %4463 = vmatprep.mubr.bf16.mxu0 %v5524_v23  ;;  %v1191_v35 = vshll.u32 %v996_v6, 16  ;;  %v512_v36 = vrot.slane %v507_v13, 4  ;;  %v1183_v39 = vrot.slane %v1181_v29, 5  ;;  %v1187_v40 = vrot.slane %v1185_v30, 4  ;;  %6148 = vmatprep.subr.bf16.mxu1 %v6482_v63  ;;  %v6483_v12 = vld [vmem:[#allocation7 + $0x190] sm:$0xff]  }
  0xdf   : > { %4464 = vmatmul.mubr.bf16.gmra.mrb[20].mxu0 %v6469_v7  ;;  %v511_v41 = vsel %vm6909_vm10, %v503_v31, %v510_v32  ;;  %v763_v42 = vsel %vm6901_vm9, %v502_v26, %v762_v15  ;;  %v1178_v43 = vor.u32 %v1177_v34, %v1174_v33  ;;  %v1615_v52 = vrot.slane %v1613_v22, 4  ;;  %v1505_v7 = vld [vmem:[#allocation2 + $0x38] sm:$0x1]  ;;  %6149 = vmatpush3.bf16.msra.mxu1 %v6483_v12  ;;  %v281_v12 = vld [vmem:[%s6872_s9 + $0x90] sm:$0xff] }
  0xe0   : > { %v1193_v45 = vrot.slane %v1191_v35, 5  ;;  %764 = vst [vmem:[#allocation2 + $0x54] sm:$0xf] %v763_v42  ;;  %765 = vst [vmem:[#allocation2 + $0x58] sm:$0xf] %v511_v41  ;;  %v767_v46 = vsel %vm6896_vm8, %v512_v36, %v766_v21  ;;  %v1188_v50 = vor.u32 %v1187_v40, %v1183_v39  ;;  %v5789_v54 = vpack.c.bf16 %v277_v48, %v277_v48  ;;  %v279_v41 = vld [vmem:[%s6872_s9 + $0x80] sm:$0xff] }
  0xe1   : > { %768 = vst [vmem:[#allocation2 + $0x5c] sm:$0x1] %v767_v46  ;;  %v1179_v55 = vrot.slane %v1178_v43, 4  ;;  %v1614_v59 = vsel %vm7029_vm13, %v5538_v17, %v1613_v22  ;;  %v1617_v1 = vsel %vm7029_vm13, %v1615_v52, %v1616_v53  ;;  %v522_v2 = vshrl.u32 %v5790_v56, 16  ;;  %v773_v17 = vld [vmem:[#allocation2 + $0x68] sm:$0x1] }
  0xe2   : > { %v1189_v57 = vrot.slane %v1188_v50, 4  ;;  %v514_v60 = vshrl.u32 %v5789_v54, 16  ;;  %v517_v61 = vshll.u32 %v5789_v54, 16  ;;  %v525_v4 = vshll.u32 %v5790_v56, 16  ;;  %v280_v42 = vld [vmem:[%s6872_s9 + $0x88] sm:$0xff] }
  0xe3   : > { %v1184_v0 = vsel %vm6890_vm6, %v1179_v55, %v1183_v39  ;;  %v5539_v10 = vrot.slane %v1503_v62, 9  ;;  %v1620_v11 = vrot.slane %v1504_v5, 5  ;;  %v524_v15 = vrot.slane %v522_v2, 7  ;;  %v1506_v50 = vld [vmem:[#allocation2 + $0x3c] sm:$0xe] }
  0xe4   : > { %4601 = vmatmul.mubr.bf16.gmra.mrb[24].mxu1 %v5553_v20  ;;  %v1194_v8 = vsel %vm6890_vm6, %v1189_v57, %v1193_v45  ;;  %v516_v9 = vrot.slane %v514_v60, 7  ;;  %v1623_v19 = vrot.slane %v1505_v7, 5  ;;  %v5554_v21 = vcombine.low %v1614_v59, %v1617_v1  ;;  %v1507_v52 = vld [vmem:[#allocation2 + $0x40] sm:$0xf]  ;;  %v7134_v59 = vld [vmem:[#allocation2 + $0x44] sm:$0x1] }
  0xe5   : > { %4608 = vmatprep.mubr.bf16.mxu1 %v6476_v38  ;;  %v5525_v14 = vcombine.low %v1184_v0, %v1194_v8  ;;  %v7122_v23 = vsel %vm7029_vm13, %v5539_v10, %v1620_v11  ;;  %v527_v30 = vor.u32 %v525_v4, %v524_v15  ;;  %v529_v31 = vrot.slane %v524_v15, 4  ;;  %v6486_v60 = vld [vmem:[#allocation7 + $0x170] sm:$0xff]  }
  0xe6   : > { %v519_v22 = vor.u32 %v517_v61, %v516_v9  ;;  %v520_v29 = vrot.slane %v516_v9, 4  ;;  %v1622_v46 = vrot.slane %v1620_v11, 4  ;;  %v5791_v48 = vpack.c.bf16 %v279_v41, %v279_v41  ;;  %v6487_v1 = vld [vmem:[#allocation7 + $0x130] sm:$0xff]   ;;  %6044 = vmatprep.subr.bf16.mxu0 %v6486_v60 }
  0xe7   : > { %v997_v20 = vld [vmem:[#allocation2 + $0x54] sm:$0xf]  ;;  %v998_v13 = vld [vmem:[#allocation2 + $0x58] sm:$0xf]  ;;  %4471 = vmatprep.mubr.bf16.mxu0 %v5525_v14  ;;  %v774_v40 = vsel %vm6896_vm8, %v529_v31, %v773_v17  ;;  %v5792_v49 = vpack.c.bf16 %v280_v42, %v280_v42  ;;  %v776_v7 = vld [vmem:[#allocation2 + $0x6c] sm:$0xf]  ;;  %6045 = vmatpush3.bf16.msra.mxu0 %v6487_v1 }
  0xe8   : > { %v999_v24 = vld [vmem:[#allocation2 + $0x5c] sm:$0x1]  ;;  %v1196_v25 = vshrl.u32 %v997_v20, 16  ;;  %v1199_v27 = vshll.u32 %v997_v20, 16  ;;  %v1205_v26 = vshll.u32 %v998_v13, 16  ;;  %v1209_v28 = vshrl.u32 %v998_v13, 16  ;;  %4472 = vmatmul.mubr.bf16.gmra.mrb[24].mxu0 %v6471_v58 }
  0xe9   : > { %v1215_v6 = vshll.u32 %v999_v24, 16  ;;  %v528_v38 = vsel %vm6909_vm10, %v520_v29, %v527_v30  ;;  %v770_v39 = vsel %vm6901_vm9, %v519_v22, %v769_v16  ;;  %775 = vst [vmem:[#allocation2 + $0x68] sm:$0x1] %v774_v40  ;;  %v6477_v55 = vld [vmem:[#allocation2 + $0x54] sm:$0xff]   ;;  %v1624_v56 = vsel %vm7029_vm13, %v1622_v46, %v1623_v19  ;;  %v6484_v58 = vld [vmem:[#allocation2 + $0x48] sm:$0xff]  }
  0xea   : > { %v1198_v32 = vrot.slane %v1196_v25, 4  ;;  %v1201_v33 = vrot.slane %v1199_v27, 5  ;;  %v1207_v34 = vrot.slane %v1205_v26, 5  ;;  %v1211_v35 = vrot.slane %v1209_v28, 4  ;;  %771 = vst [vmem:[#allocation2 + $0x60] sm:$0xf] %v770_v39 }
  0xeb   : > { %v1217_v36 = vrot.slane %v1215_v6, 5  ;;  %772 = vst [vmem:[#allocation2 + $0x64] sm:$0xf] %v528_v38  ;;  %v531_v57 = vshrl.u32 %v5791_v48, 16  ;;  %v5555_v61 = vcombine.low %v7122_v23, %v1624_v56  ;;  %v534_v62 = vshll.u32 %v5791_v48, 16  ;;  %v6488_v41 = vld [vmem:[#allocation2 + $0x54] sm:$0xff]  }
  0xec   : > { %4609 = vmatmul.mubr.bf16.gmra.mrb[28].mxu1 %v5554_v21  ;;  %v1202_v43 = vor.u32 %v1201_v33, %v1198_v32  ;;  %v1212_v45 = vor.u32 %v1211_v35, %v1207_v34  ;;  %v539_v63 = vshrl.u32 %v5792_v49, 16  ;;  %v542_v0 = vshll.u32 %v5792_v49, 16  ;;  %v780_v16 = vld [vmem:[#allocation2 + $0x74] sm:$0x1]  ;;  %v783_v49 = vld [vmem:[#allocation2 + $0x78] sm:$0xf] }
  0xed   : > { %4616 = vmatprep.mubr.bf16.mxu1 %v6480_v18  ;;  %v533_v5 = vrot.slane %v531_v57, 7  ;;  %v5540_v8 = vrot.slane %v1506_v50, 9  ;;  %v1627_v11 = vrot.slane %v1507_v52, 5  ;;  %v1630_v17 = vrot.slane %v7134_v59, 5  ;;  %v282_v18 = vld [vmem:[%s6872_s9 + $0x98] sm:$0xff] }
  0xee   : > { %v1203_v53 = vrot.slane %v1202_v43, 4  ;;  %v1213_v54 = vrot.slane %v1212_v45, 4  ;;  %v541_v10 = vrot.slane %v539_v63, 7  ;;  %v5793_v19 = vpack.c.bf16 %v281_v12, %v281_v12  ;;  %v6490_v42 = vld [vmem:[#allocation7 + $0x1d8] sm:$0xff]   ;;  %v1509_v50 = vld [vmem:[#allocation2 + $0x48] sm:$0xe] }
  0xef   : > { %v536_v14 = vor.u32 %v534_v62, %v533_v5  ;;  %v537_v15 = vrot.slane %v533_v5, 4  ;;  %v1628_v23 = vsel %vm7029_vm13, %v5540_v8, %v1627_v11  ;;  %v5794_v24 = vpack.c.bf16 %v282_v18, %v282_v18  ;;  %v1510_v52 = vld [vmem:[#allocation2 + $0x4c] sm:$0xf]  ;;  %v1511_v56 = vld [vmem:[#allocation2 + $0x50] sm:$0x1]  ;;  %6150 = vmatprep.subr.bf16.mxu1 %v6490_v42 }
  0xf0   : > { %v1208_v2 = vsel %vm6890_vm6, %v1203_v53, %v1207_v34  ;;  %v1218_v4 = vsel %vm6890_vm6, %v1213_v54, %v1217_v36  ;;  %v1002_v21 = vld [vmem:[#allocation2 + $0x68] sm:$0x1]  ;;  %v544_v22 = vor.u32 %v542_v0, %v541_v10  ;;  %v546_v30 = vrot.slane %v541_v10, 4  ;;  %v787_v0 = vld [vmem:[#allocation2 + $0x80] sm:$0x1]  ;;  %v6492_v1 = vld [vmem:[#allocation7 + $0x178] sm:$0xff]  }
  0xf1   : > { %v5526_v9 = vcombine.low %v1208_v2, %v1218_v4  ;;  %v1000_v20 = vld [vmem:[#allocation2 + $0x60] sm:$0xf]  ;;  %v1239_v6 = vshll.u32 %v1002_v21, 16  ;;  %v777_v31 = vsel %vm6901_vm9, %v536_v14, %v776_v7  ;;  %v1629_v39 = vrot.slane %v1627_v11, 4  ;;  %v6493_v8 = vld [vmem:[#allocation7 + $0x138] sm:$0xff]   ;;  %6046 = vmatprep.subr.bf16.mxu0 %v6492_v1  ;;  %v283_v14 = vld [vmem:[%s6872_s9 + $0xa0] sm:$0xff] }
  0xf2   : > { %v1001_v13 = vld [vmem:[#allocation2 + $0x64] sm:$0xf]  ;;  %v1220_v25 = vshrl.u32 %v1000_v20, 16  ;;  %v1223_v27 = vshll.u32 %v1000_v20, 16  ;;  %v545_v29 = vsel %vm6909_vm10, %v537_v15, %v544_v22  ;;  %778 = vst [vmem:[#allocation2 + $0x6c] sm:$0xf] %v777_v31  ;;  %v781_v38 = vsel %vm6896_vm8, %v546_v30, %v780_v16  ;;  %6047 = vmatpush3.bf16.msra.mxu0 %v6493_v8 }
  0xf3   : > { %4479 = vmatprep.mubr.bf16.mxu0 %v5526_v9  ;;  %v1229_v26 = vshll.u32 %v1001_v13, 16  ;;  %v1233_v28 = vshrl.u32 %v1001_v13, 16  ;;  %779 = vst [vmem:[#allocation2 + $0x70] sm:$0xf] %v545_v29  ;;  %v1241_v36 = vrot.slane %v1239_v6, 5  ;;  %v548_v40 = vshrl.u32 %v5793_v19, 16 }
  0xf4   : > { %4617 = vmatmul.mubr.bf16.gmra.mrb[32].mxu1 %v5555_v61  ;;  %4480 = vmatmul.mubr.bf16.gmra.mrb[28].mxu0 %v6477_v55  ;;  %v1222_v32 = vrot.slane %v1220_v25, 4  ;;  %v1225_v33 = vrot.slane %v1223_v27, 5  ;;  %782 = vst [vmem:[#allocation2 + $0x74] sm:$0x1] %v781_v38  ;;  %v551_v46 = vshll.u32 %v5793_v19, 16  ;;  %v556_v48 = vshrl.u32 %v5794_v24, 16 }
  0xf5   : > { %4624 = vmatprep.mubr.bf16.mxu1 %v6484_v58  ;;  %v1231_v34 = vrot.slane %v1229_v26, 5  ;;  %v1235_v35 = vrot.slane %v1233_v28, 4  ;;  %v1631_v53 = vsel %vm7029_vm13, %v1629_v39, %v1630_v17  ;;  %v550_v54 = vrot.slane %v548_v40, 7  ;;  %v6491_v58 = vld [vmem:[#allocation7 + $0x198] sm:$0xff]   ;;  %v6481_v61 = vld [vmem:[#allocation2 + $0x60] sm:$0xff]  }
  0xf6   : > { %v1226_v43 = vor.u32 %v1225_v33, %v1222_v32  ;;  %v559_v55 = vshll.u32 %v5794_v24, 16  ;;  %v5541_v57 = vrot.slane %v1509_v50, 9  ;;  %v5556_v62 = vcombine.low %v1628_v23, %v1631_v53  ;;  %6151 = vmatpush3.bf16.msra.mxu1 %v6491_v58  ;;  %v284_v33 = vld [vmem:[%s6872_s9 + $0xa8] sm:$0xff]  ;;  %v1512_v50 = vld [vmem:[#allocation2 + $0x54] sm:$0xe] }
  0xf7   : > { %v1236_v45 = vor.u32 %v1235_v35, %v1231_v34  ;;  %v558_v63 = vrot.slane %v556_v48, 7  ;;  %v553_v2 = vor.u32 %v551_v46, %v550_v54  ;;  %v554_v4 = vrot.slane %v550_v54, 4  ;;  %v6494_v42 = vld [vmem:[#allocation2 + $0x60] sm:$0xff]   ;;  %v1514_v8 = vld [vmem:[#allocation2 + $0x5c] sm:$0x1] }
  0xf8   : > { %v1227_v59 = vrot.slane %v1226_v43, 4  ;;  %v1634_v5 = vrot.slane %v1510_v52, 5  ;;  %v1637_v7 = vrot.slane %v1511_v56, 5  ;;  %v5795_v26 = vpack.c.bf16 %v283_v14, %v283_v14  ;;  %v6497_v14 = vld [vmem:[#allocation7 + $0x1e0] sm:$0xff]  }
  0xf9   : > { %v1237_v60 = vrot.slane %v1236_v45, 4  ;;  %v561_v11 = vor.u32 %v559_v55, %v558_v63  ;;  %v563_v12 = vrot.slane %v558_v63, 4  ;;  %v1003_v16 = vld [vmem:[#allocation2 + $0x6c] sm:$0xf]  ;;  %v784_v18 = vsel %vm6901_vm9, %v553_v2, %v783_v49  ;;  %6152 = vmatprep.subr.bf16.mxu1 %v6497_v14 }
  0xfa   : > { %v1232_v9 = vsel %vm6890_vm6, %v1227_v59, %v1231_v34  ;;  %v1004_v17 = vld [vmem:[#allocation2 + $0x70] sm:$0xf]  ;;  %v1635_v19 = vsel %vm7029_vm13, %v5541_v57, %v1634_v5  ;;  %v1244_v20 = vshrl.u32 %v1003_v16, 16  ;;  %v1247_v13 = vshll.u32 %v1003_v16, 16  ;;  %785 = vst [vmem:[#allocation2 + $0x78] sm:$0xf] %v784_v18 }
  0xfb   : > { %v1242_v10 = vsel %vm6890_vm6, %v1237_v60, %v1241_v36  ;;  %v1253_v21 = vshll.u32 %v1004_v17, 16  ;;  %v1257_v22 = vshrl.u32 %v1004_v17, 16  ;;  %v1005_v23 = vld [vmem:[#allocation2 + $0x74] sm:$0x1]  ;;  %v562_v24 = vsel %vm6909_vm10, %v554_v4, %v561_v11  ;;  %v6485_v46 = vld [vmem:[#allocation2 + $0x6c] sm:$0xff]  }
  0xfc   : > { %4625 = vmatmul.mubr.bf16.gmra.mrb[36].mxu1 %v5556_v62  ;;  %v5527_v15 = vcombine.low %v1232_v9, %v1242_v10  ;;  %v788_v25 = vsel %vm6896_vm8, %v563_v12, %v787_v0  ;;  %v1636_v27 = vrot.slane %v1634_v5, 4  ;;  %v1246_v28 = vrot.slane %v1244_v20, 4  ;;  %786 = vst [vmem:[#allocation2 + $0x7c] sm:$0xf] %v562_v24  ;;  %v790_v59 = vld [vmem:[#allocation2 + $0x84] sm:$0xf] }
  0xfd   : > { %4632 = vmatprep.mubr.bf16.mxu1 %v6488_v41  ;;  %v1249_v6 = vrot.slane %v1247_v13, 5  ;;  %v1255_v29 = vrot.slane %v1253_v21, 5  ;;  %v1259_v30 = vrot.slane %v1257_v22, 4  ;;  %789 = vst [vmem:[#allocation2 + $0x80] sm:$0x1] %v788_v25  ;;  %v1263_v31 = vshll.u32 %v1005_v23, 16 }
  0xfe   : > { %4487 = vmatprep.mubr.bf16.mxu0 %v5527_v15  ;;  %v1638_v32 = vsel %vm7029_vm13, %v1636_v27, %v1637_v7  ;;  %v5796_v38 = vpack.c.bf16 %v284_v33, %v284_v33  ;;  %v565_v40 = vshrl.u32 %v5795_v26, 16  ;;  %v568_v41 = vshll.u32 %v5795_v26, 16  ;;  %v1513_v60 = vld [vmem:[#allocation2 + $0x58] sm:$0xf]  ;;  %v794_v7 = vld [vmem:[#allocation2 + $0x8c] sm:$0x1] }
  0xff   : > { %4488 = vmatmul.mubr.bf16.gmra.mrb[32].mxu0 %v6481_v61  ;;  %v1250_v34 = vor.u32 %v1249_v6, %v1246_v28  ;;  %v1260_v35 = vor.u32 %v1259_v30, %v1255_v29  ;;  %v5557_v36 = vcombine.low %v1635_v19, %v1638_v32  ;;  %v1265_v39 = vrot.slane %v1263_v31, 5  ;;  %v7176_v19 = vld [vmem:[#allocation7 + $0x200] sm:$0xff]   ;;  %v7178_v23 = vld [vmem:[#allocation2 + $0xc] sm:$0xe]  ;;  %v7184_v30 = vld [vmem:[#allocation2 + $0x14] sm:$0x1] }
 0x100   : > { %v573_v48 = vshrl.u32 %v5796_v38, 16  ;;  %v576_v49 = vshll.u32 %v5796_v38, 16  ;;  %v567_v53 = vrot.slane %v565_v40, 7  ;;  %v5542_v54 = vrot.slane %v1512_v50, 9  ;;  %v6499_v24 = vld [vmem:[#allocation7 + $0x1a0] sm:$0xff]   ;;  %v6496_v6 = vld [vmem:[#allocation2 + $0x6c] sm:$0xff]   ;;  %6280 = vmatprep.subr.bf16.mxu0 %v7176_v19 }
 0x101   : > { %v1251_v43 = vrot.slane %v1250_v34, 4  ;;  %v1261_v45 = vrot.slane %v1260_v35, 4  ;;  %v1006_v52 = vld [vmem:[#allocation2 + $0x78] sm:$0xf]  ;;  %v1641_v18 = vrot.slane %v1513_v60, 5  ;;  %v1644_v22 = vrot.slane %v1514_v8, 5  ;;  %6153 = vmatpush3.bf16.msra.mxu1 %v6499_v24 }
 0x102   : > { %v1268_v57 = vshrl.u32 %v1006_v52, 16  ;;  %v1271_v58 = vshll.u32 %v1006_v52, 16  ;;  %v570_v0 = vor.u32 %v568_v41, %v567_v53  ;;  %v571_v10 = vrot.slane %v567_v53, 4  ;;  %v1515_v35 = vld [vmem:[#allocation2 + $0x60] sm:$0xe] }
 0x103   : > { %v1256_v55 = vsel %vm6890_vm6, %v1251_v43, %v1255_v29  ;;  %v1266_v56 = vsel %vm6890_vm6, %v1261_v45, %v1265_v39  ;;  %v1007_v62 = vld [vmem:[#allocation2 + $0x7c] sm:$0xf]  ;;  %v575_v11 = vrot.slane %v573_v48, 7  ;;  %v1642_v26 = vsel %vm7029_vm13, %v5542_v54, %v1641_v18  ;;  %v7182_v29 = vld [vmem:[#allocation2 + $0x10] sm:$0xf] }
 0x104   : > { %4633 = vmatmul.mubr.bf16.gmra.mrb[40].mxu1 %v5557_v36  ;;  %v5528_v61 = vcombine.low %v1256_v55, %v1266_v56  ;;  %v1008_v63 = vld [vmem:[#allocation2 + $0x80] sm:$0x1]  ;;  %v1270_v1 = vrot.slane %v1268_v57, 4  ;;  %v1273_v2 = vrot.slane %v1271_v58, 5  ;;  %v1277_v4 = vshll.u32 %v1007_v62, 16  ;;  %v6489_v53 = vld [vmem:[#allocation2 + $0x78] sm:$0xff]  }
 0x105   : > { %4640 = vmatprep.mubr.bf16.mxu1 %v6494_v42  ;;  %v1281_v5 = vshrl.u32 %v1007_v62, 16  ;;  %v1287_v9 = vshll.u32 %v1008_v63, 16  ;;  %v791_v12 = vsel %vm6901_vm9, %v570_v0, %v790_v59  ;;  %v578_v13 = vor.u32 %v576_v49, %v575_v11  ;;  %v1516_v36 = vld [vmem:[#allocation2 + $0x64] sm:$0xf]  ;;  %v1517_v42 = vld [vmem:[#allocation2 + $0x68] sm:$0x1] }
 0x106   : > { %4495 = vmatprep.mubr.bf16.mxu0 %v5528_v61  ;;  %v1274_v15 = vor.u32 %v1273_v2, %v1270_v1  ;;  %v1279_v16 = vrot.slane %v1277_v4, 5  ;;  %792 = vst [vmem:[#allocation2 + $0x84] sm:$0xf] %v791_v12  ;;  %v580_v21 = vrot.slane %v575_v11, 4  ;;  %v1643_v28 = vrot.slane %v1641_v18, 4 }
 0x107   : > { %4496 = vmatmul.mubr.bf16.gmra.mrb[36].mxu0 %v6485_v46  ;;  %v1283_v17 = vrot.slane %v1281_v5, 4  ;;  %v1289_v20 = vrot.slane %v1287_v9, 5  ;;  %v579_v31 = vsel %vm6909_vm10, %v571_v10, %v578_v13  ;;  %v5599_v33 = vrot.slane %v7178_v23, 9  ;;  %v1926_v43 = vld [vmem:[#allocation2 + $0xc] sm:$0xf] }
 0x108   : > { %v1275_v25 = vrot.slane %v1274_v15, 4  ;;  %v795_v32 = vsel %vm6896_vm8, %v580_v21, %v794_v7  ;;  %v2536_v34 = vrot.slane %v7182_v29, 5  ;;  %793 = vst [vmem:[#allocation2 + $0x88] sm:$0xf] %v579_v31  ;;  %v1645_v40 = vsel %vm7029_vm13, %v1643_v28, %v1644_v22  ;;  %v1927_v49 = vld [vmem:[#allocation2 + $0x10] sm:$0xf] }
 0x109   : > { %v1284_v27 = vor.u32 %v1283_v17, %v1279_v16  ;;  %796 = vst [vmem:[#allocation2 + $0x8c] sm:$0x1] %v795_v32  ;;  %v2539_v41 = vrot.slane %v7184_v30, 5  ;;  %v5558_v45 = vcombine.low %v1642_v26, %v1645_v40  ;;  %v5543_v48 = vrot.slane %v1515_v35, 9  ;;  %v1928_v50 = vld [vmem:[#allocation2 + $0x14] sm:$0x1] }
 0x10a   : > { %v1280_v38 = vsel %vm6890_vm6, %v1275_v25, %v1279_v16  ;;  %v2538_v46 = vrot.slane %v2536_v34, 4  ;;  %v1648_v54 = vrot.slane %v1516_v36, 5  ;;  %v1651_v55 = vrot.slane %v1517_v42, 5  ;;  %v2442_v29 = vld [vmem:[#allocation2 + $0x1c] sm:$0xf] }
 0x10b   : > { %v1285_v39 = vrot.slane %v1284_v27, 4  ;;  %v1975_v56 = vshrl.u32 %v1926_v43, 16  ;;  %v1978_v59 = vshll.u32 %v1926_v43, 16  ;;  %v1984_v60 = vshll.u32 %v1927_v49, 16  ;;  %v2443_v30 = vld [vmem:[#allocation2 + $0x20] sm:$0x1] }
 0x10c   : > { %4641 = vmatmul.mubr.bf16.gmra.mrb[44].mxu1 %v5558_v45  ;;  %v1649_v63 = vsel %vm7029_vm13, %v5543_v48, %v1648_v54  ;;  %v1650_v0 = vrot.slane %v1648_v54, 4  ;;  %v1988_v8 = vshrl.u32 %v1927_v49, 16  ;;  %v1994_v9 = vshll.u32 %v1928_v50, 16  ;;  %v6502_v54 = vld [vmem:[#allocation7 + $0x1e8] sm:$0xff]  }
 0x10d   : > { %v1290_v52 = vsel %vm6890_vm6, %v1285_v39, %v1289_v20  ;;  %v1009_v58 = vld [vmem:[#allocation2 + $0x84] sm:$0xf]  ;;  %4648 = vmatprep.mubr.bf16.mxu1 %v6496_v6  ;;  %v1977_v1 = vrot.slane %v1975_v56, 4  ;;  %v1980_v2 = vrot.slane %v1978_v59, 5  ;;  %v7202_v4 = vrot.slane %v1984_v60, 5  ;;  %v6500_v20 = vld [vmem:[#allocation2 + $0x78] sm:$0xff]   ;;  %6154 = vmatprep.subr.bf16.mxu1 %v6502_v54 }
 0x10e   : > { %v5529_v57 = vcombine.low %v1280_v38, %v1290_v52  ;;  %v1292_v61 = vshrl.u32 %v1009_v58, 16  ;;  %v1295_v62 = vshll.u32 %v1009_v58, 16  ;;  %v1652_v12 = vsel %vm7029_vm13, %v1650_v0, %v1651_v55  ;;  %v2441_v6 = vld [vmem:[#allocation2 + $0x18] sm:$0xe]  ;;  %v1518_v38 = vld [vmem:[#allocation2 + $0x6c] sm:$0xe] }
 0x10f   : > { %v1010_v10 = vld [vmem:[#allocation2 + $0x88] sm:$0xf]  ;;  %v1981_v14 = vor.u32 %v1980_v2, %v1977_v1  ;;  %v5559_v13 = vcombine.low %v1649_v63, %v1652_v12  ;;  %v1990_v22 = vrot.slane %v1988_v8, 4  ;;  %v7208_v27 = vrot.slane %v1994_v9, 5  ;;  %v1519_v39 = vld [vmem:[#allocation2 + $0x70] sm:$0xf] }
 0x110   : > { %4503 = vmatprep.mubr.bf16.mxu0 %v5529_v57  ;;  %v1294_v5 = vrot.slane %v1292_v61, 4  ;;  %v1297_v7 = vrot.slane %v1295_v62, 5  ;;  %v1011_v11 = vld [vmem:[#allocation2 + $0x8c] sm:$0x1]  ;;  %v1301_v16 = vshll.u32 %v1010_v10, 16  ;;  %v1305_v17 = vshrl.u32 %v1010_v10, 16 }
 0x111   : > { %4504 = vmatmul.mubr.bf16.gmra.mrb[40].mxu0 %v6489_v53  ;;  %v1311_v18 = vshll.u32 %v1011_v11, 16  ;;  %v7206_v21 = vrot.slane %v1981_v14, 4  ;;  %v7212_v26 = vsel %vm7029_vm13, %v5599_v33, %v2536_v34  ;;  %v1991_v28 = vor.u32 %v1990_v22, %v7202_v4  ;;  %v1520_v33 = vld [vmem:[#allocation2 + $0x74] sm:$0x1]  ;;  %v6495_v49 = vld [vmem:[#allocation2 + $0x84] sm:$0xff]  }
 0x112   : > { %v1298_v15 = vor.u32 %v1297_v7, %v1294_v5  ;;  %v1303_v24 = vrot.slane %v1301_v16, 5  ;;  %v1307_v25 = vrot.slane %v1305_v17, 4  ;;  %v2540_v35 = vsel %vm7029_vm13, %v2538_v46, %v2539_v41  ;;  %v1929_v53 = vld [vmem:[#allocation2 + $0x18] sm:$0xf]  ;;  %v1930_v55 = vld [vmem:[#allocation2 + $0x1c] sm:$0xf] }
 0x113   : > { %v1313_v32 = vrot.slane %v1311_v18, 5  ;;  %v2543_v36 = vrot.slane %v2442_v29, 5  ;;  %v7217_v40 = vrot.slane %v1991_v28, 4  ;;  %v5600_v42 = vrot.slane %v2441_v6, 9  ;;  %v1931_v56 = vld [vmem:[#allocation2 + $0x20] sm:$0x1] }
 0x114   : > { %v1299_v23 = vrot.slane %v1298_v15, 4  ;;  %4649 = vmatmul.mubr.bf16.gmra.mrb[48].mxu1 %v5559_v13  ;;  %v1308_v31 = vor.u32 %v1307_v25, %v1303_v24  ;;  %v5544_v34 = vrot.slane %v1518_v38, 9  ;;  %v1655_v43 = vrot.slane %v1519_v39, 5  ;;  %v6501_v58 = vld [vmem:[#allocation2 + $0x84] sm:$0xff]   ;;  %v7236_v14 = vld [vmem:[#allocation2 + $0x2c] sm:$0x1] }
 0x115   : > { %4656 = vmatprep.mubr.bf16.mxu1 %v6500_v20  ;;  %v2546_v50 = vrot.slane %v2443_v30, 5  ;;  %v1658_v52 = vrot.slane %v1520_v33, 5  ;;  %v1999_v57 = vshrl.u32 %v1929_v53, 16  ;;  %v5615_v60 = vcombine.low %v7212_v26, %v2540_v35  ;;  %v7232_v5 = vld [vmem:[#allocation2 + $0x24] sm:$0xe] }
 0x116   : > { %v1304_v45 = vsel %vm6890_vm6, %v1299_v23, %v1303_v24  ;;  %v1309_v48 = vrot.slane %v1308_v31, 4  ;;  %v1656_v41 = vsel %vm7029_vm13, %v5544_v34, %v1655_v43  ;;  %v1657_v46 = vrot.slane %v1655_v43, 4  ;;  %v7234_v7 = vld [vmem:[#allocation2 + $0x28] sm:$0xf]  ;;  %v6504_v8 = vld [vmem:[#allocation7 + $0x1a8] sm:$0xff]  }
 0x117   : > { %v2545_v61 = vrot.slane %v2543_v36, 4  ;;  %v2002_v62 = vshll.u32 %v1929_v53, 16  ;;  %v1987_v0 = vsel %vm6890_vm6, %v7206_v21, %v7202_v4  ;;  %v2001_v2 = vrot.slane %v1999_v57, 4  ;;  %v1521_v18 = vld [vmem:[#allocation2 + $0x78] sm:$0xe]  ;;  %6155 = vmatpush3.bf16.msra.mxu1 %v6504_v8 }
 0x118   : > { %v1314_v59 = vsel %vm6890_vm6, %v1309_v48, %v1313_v32  ;;  %v1659_v1 = vsel %vm7029_vm13, %v1657_v46, %v1658_v52  ;;  %v2008_v11 = vshll.u32 %v1930_v55, 16  ;;  %v2012_v12 = vshrl.u32 %v1930_v55, 16  ;;  %v1522_v23 = vld [vmem:[#allocation2 + $0x7c] sm:$0xf]  ;;  %v1523_v24 = vld [vmem:[#allocation2 + $0x80] sm:$0x1] }
 0x119   : > { %v5530_v63 = vcombine.low %v1304_v45, %v1314_v59  ;;  %v5560_v9 = vcombine.low %v1656_v41, %v1659_v1  ;;  %v2004_v10 = vrot.slane %v2002_v62, 5  ;;  %v1997_v4 = vsel %vm6890_vm6, %v7217_v40, %v7208_v27  ;;  %v1932_v6 = vld [vmem:[#allocation2 + $0x24] sm:$0xf]  ;;  %v1933_v35 = vld [vmem:[#allocation2 + $0x28] sm:$0xf]  ;;  %v6505_v46 = vld [vmem:[#allocation2 + $0x90] sm:$0xff]  }
 0x11a   : > { %v2544_v15 = vsel %vm7029_vm13, %v5600_v42, %v2543_v36  ;;  %v2018_v16 = vshll.u32 %v1931_v56, 16  ;;  %v2550_v17 = vrot.slane %v7234_v7, 5  ;;  %v2547_v20 = vsel %vm7029_vm13, %v2545_v61, %v2546_v50  ;;  %v6507_v36 = vld [vmem:[#allocation7 + $0x1f0] sm:$0xff]   ;;  %v2449_v7 = vld [vmem:[#allocation2 + $0x38] sm:$0x1] }
 0x11b   : > { %4511 = vmatprep.mubr.bf16.mxu0 %v5530_v63  ;;  %v2005_v13 = vor.u32 %v2004_v10, %v2001_v2  ;;  %v7247_v21 = vrot.slane %v2008_v11, 5  ;;  %v2014_v22 = vrot.slane %v2012_v12, 4  ;;  %v5601_v27 = vrot.slane %v7232_v5, 9  ;;  %v1934_v39 = vld [vmem:[#allocation2 + $0x2c] sm:$0x1]  ;;  %6156 = vmatprep.subr.bf16.mxu1 %v6507_v36  ;;  %v6513_v36 = vld [vmem:[#allocation7 + $0x218] sm:$0xff]  }
 0x11c   : > { %4512 = vmatmul.mubr.bf16.gmra.mrb[44].mxu0 %v6495_v49  ;;  %4657 = vmatmul.mubr.bf16.gmra.mrb[52].mxu1 %v5560_v9  ;;  %v2020_v25 = vrot.slane %v2018_v16, 5  ;;  %v2553_v26 = vrot.slane %v7236_v14, 5  ;;  %v5545_v28 = vrot.slane %v1521_v18, 9  ;;  %v2552_v31 = vrot.slane %v2550_v17, 4  ;;  %v6503_v49 = vld [vmem:[#allocation7 + $0x208] sm:$0xff]   ;;  %v6509_v50 = vld [vmem:[#allocation7 + $0x1b0] sm:$0xff]  }
 0x11d   : > { %4745 = vmatprep.mubr.bf16.mxu0 %v5615_v60  ;;  %4664 = vmatprep.mubr.bf16.mxu1 %v6501_v58  ;;  %v2006_v29 = vrot.slane %v2005_v13, 4  ;;  %v2015_v30 = vor.u32 %v2014_v22, %v7247_v21  ;;  %v1662_v32 = vrot.slane %v1522_v23, 5  ;;  %v1665_v38 = vrot.slane %v1523_v24, 5  ;;  %v2447_v63 = vld [vmem:[#allocation2 + $0x30] sm:$0xe]  ;;  %v6508_v9 = vld [vmem:[#allocation7 + $0x210] sm:$0xff]  }
 0x11e   : > { %v2023_v40 = vshrl.u32 %v1932_v6, 16  ;;  %v2026_v42 = vshll.u32 %v1932_v6, 16  ;;  %v2032_v33 = vshll.u32 %v1933_v35, 16  ;;  %v5583_v34 = vcombine.low %v1987_v0, %v1997_v4  ;;  %6157 = vmatpush3.bf16.msra.mxu1 %v6509_v50  ;;  %v2448_v0 = vld [vmem:[#allocation2 + $0x34] sm:$0xf] }
 0x11f   : > { %v5616_v43 = vcombine.low %v2544_v15, %v2547_v20  ;;  %v2016_v45 = vrot.slane %v2015_v30, 4  ;;  %v1663_v48 = vsel %vm7029_vm13, %v5545_v28, %v1662_v32  ;;  %v1664_v52 = vrot.slane %v1662_v32, 4  ;;  %v1524_v14 = vld [vmem:[#allocation2 + $0x84] sm:$0xe]  ;;  %v1525_v4 = vld [vmem:[#allocation2 + $0x88] sm:$0xf] }
 0x120   : > { %v2025_v53 = vrot.slane %v2023_v40, 4  ;;  %v2028_v54 = vrot.slane %v2026_v42, 5  ;;  %v7254_v41 = vrot.slane %v2032_v33, 5  ;;  %v2036_v55 = vshrl.u32 %v1933_v35, 16  ;;  %v1935_v20 = vld [vmem:[#allocation2 + $0x30] sm:$0xf] }
 0x121   : > { %v2042_v56 = vshll.u32 %v1934_v39, 16  ;;  %v1666_v57 = vsel %vm7029_vm13, %v1664_v52, %v1665_v38  ;;  %v2011_v59 = vsel %vm6890_vm6, %v2006_v29, %v7247_v21  ;;  %v2021_v60 = vsel %vm6890_vm6, %v2016_v45, %v2020_v25  ;;  %v1936_v23 = vld [vmem:[#allocation2 + $0x34] sm:$0xf]  ;;  %v6506_v35 = vld [vmem:[#allocation2 + $0x9c] sm:$0xff]   ;;  %v2452_v52 = vld [vmem:[#allocation2 + $0x44] sm:$0x1] }
 0x122   : > { %v2029_v58 = vor.u32 %v2028_v54, %v2025_v53  ;;  %v5561_v61 = vcombine.low %v1663_v48, %v1666_v57  ;;  %v2038_v62 = vrot.slane %v2036_v55, 4  ;;  %v2551_v1 = vsel %vm7029_vm13, %v5601_v27, %v2550_v17  ;;  %v1526_v17 = vld [vmem:[#allocation2 + $0x8c] sm:$0x1]  ;;  %v1937_v27 = vld [vmem:[#allocation2 + $0x38] sm:$0x1]  ;;  %v6512_v29 = vld [vmem:[#allocation7 + $0x1f8] sm:$0xff]  }
 0x123   : > { %v7268_v5 = vrot.slane %v2042_v56, 5  ;;  %v2557_v8 = vrot.slane %v2448_v0, 5  ;;  %v2554_v10 = vsel %vm7029_vm13, %v2552_v31, %v2553_v26  ;;  %v5602_v12 = vrot.slane %v2447_v63, 9  ;;  %v2450_v33 = vld [vmem:[#allocation2 + $0x3c] sm:$0xe]  ;;  %6158 = vmatprep.subr.bf16.mxu1 %v6512_v29 }
 0x124   : > { %4746 = vmatmul.mubr.bf16.vlgmr.msra.gmra.mrb[48].mxu0 %v5583_v34  ;;  %v7266_v2 = vrot.slane %v2029_v58, 4  ;;  %4665 = vmatmul.mubr.bf16.gmra.mrb[56].mxu1 %v5561_v61  ;;  %v2039_v11 = vor.u32 %v2038_v62, %v7254_v41  ;;  %v5584_v15 = vcombine.low %v2011_v59, %v2021_v60  ;;  %v5546_v18 = vrot.slane %v1524_v14, 9  ;;  %v6514_v34 = vld [vmem:[#allocation7 + $0x1b8] sm:$0xff]   ;;  %v2451_v50 = vld [vmem:[#allocation2 + $0x40] sm:$0xf] }
 0x125   : > { %6281 = vmatpush3.bf16.msra.mxu0 %v7176_v19  ;;  %4753 = vmatprep.mubr.bf16.mxu0 %v5616_v43  ;;  %v2560_v19 = vrot.slane %v2449_v7, 5  ;;  %v2559_v16 = vrot.slane %v2557_v8, 4  ;;  %v1669_v21 = vrot.slane %v1525_v4, 5  ;;  %v1672_v22 = vrot.slane %v1526_v17, 5  ;;  %v1527_v55 = vld [vmem:[#allocation2 + $0x90] sm:$0xe] }
 0x126   : > { %6282 = vmatprep.subr.bf16.mxu0 %v6503_v49  ;;  %4672 = vmatprep.mubr.bf16.mxu1 %v6505_v46  ;;  %v2040_v13 = vrot.slane %v2039_v11, 4  ;;  %v2047_v24 = vshrl.u32 %v1935_v20, 16  ;;  %v5617_v25 = vcombine.low %v2551_v1, %v2554_v10  ;;  %v2050_v26 = vshll.u32 %v1935_v20, 16  ;;  %v1528_v56 = vld [vmem:[#allocation2 + $0x94] sm:$0xf]  ;;  %v293_v4 = vld [vmem:[%s6872_s9 + $0xf0] sm:$0xff] }
 0x127   : > { %v2056_v28 = vshll.u32 %v1936_v23, 16  ;;  %v2060_v6 = vshrl.u32 %v1936_v23, 16  ;;  %v2035_v30 = vsel %vm6890_vm6, %v7266_v2, %v7254_v41  ;;  %v1670_v31 = vsel %vm7029_vm13, %v5546_v18, %v1669_v21  ;;  %v1529_v60 = vld [vmem:[#allocation2 + $0x98] sm:$0x1]  ;;  %6159 = vmatpush3.bf16.msra.mxu1 %v6514_v34  ;;  %v1938_v2 = vld [vmem:[#allocation2 + $0x3c] sm:$0xf] }
 0x128   : > { %v1671_v32 = vrot.slane %v1669_v21, 4  ;;  %v2558_v38 = vsel %vm7029_vm13, %v5602_v12, %v2557_v8  ;;  %v2049_v39 = vrot.slane %v2047_v24, 4  ;;  %v2052_v40 = vrot.slane %v2050_v26, 5  ;;  %v1940_v10 = vld [vmem:[#allocation2 + $0x44] sm:$0x1]  ;;  %v6510_v20 = vld [vmem:[#allocation2 + $0xa8] sm:$0xff]  }
 0x129   : > { %6283 = vmatpush3.bf16.msra.mxu0 %v6503_v49  ;;  %v7281_v42 = vrot.slane %v2056_v28, 5  ;;  %v2045_v43 = vsel %vm6890_vm6, %v2040_v13, %v7268_v5  ;;  %v2062_v48 = vrot.slane %v2060_v6, 4  ;;  %v2066_v49 = vshll.u32 %v1937_v27, 16  ;;  %v6517_v28 = vld [vmem:[#allocation7 + $0x220] sm:$0xff]  }
 0x12a   : > { %6284 = vmatprep.subr.bf16.mxu0 %v6508_v9  ;;  %v1673_v45 = vsel %vm7029_vm13, %v1671_v32, %v1672_v22  ;;  %v2053_v54 = vor.u32 %v2052_v40, %v2049_v39  ;;  %v5603_v41 = vrot.slane %v2450_v33, 9  ;;  %v2564_v46 = vrot.slane %v2451_v50, 5  ;;  %v2455_v39 = vld [vmem:[#allocation2 + $0x50] sm:$0x1] }
 0x12b   : > { %v5562_v53 = vcombine.low %v1670_v31, %v1673_v45  ;;  %v2561_v57 = vsel %vm7029_vm13, %v2559_v16, %v2560_v19  ;;  %v2063_v58 = vor.u32 %v2062_v48, %v7281_v42  ;;  %v2567_v59 = vrot.slane %v2452_v52, 5  ;;  %v294_v40 = vld [vmem:[%s6872_s9 + $0xf8] sm:$0xff]  ;;  %v1530_v45 = vld [vmem:[#allocation2 + $0x9c] sm:$0xe]  ;;  %v1531_v48 = vld [vmem:[#allocation2 + $0xa0] sm:$0xf] }
 0x12c   : > { %4754 = vmatmul.mubr.bf16.gmra.mrb[52].mxu0 %v5584_v15  ;;  %v5547_v61 = vrot.slane %v1527_v55, 9  ;;  %v2054_v62 = vrot.slane %v2053_v54, 4  ;;  %v2068_v63 = vrot.slane %v2066_v49, 5  ;;  %v2566_v0 = vrot.slane %v2564_v46, 4  ;;  %v1532_v52 = vld [vmem:[#allocation2 + $0xa4] sm:$0x1] }
 0x12d   : > { %4761 = vmatprep.mubr.bf16.mxu0 %v5617_v25  ;;  %6285 = vmatpush3.bf16.msra.mxu0 %v6508_v9  ;;  %v1676_v1 = vrot.slane %v1528_v56, 5  ;;  %v5585_v5 = vcombine.low %v2035_v30, %v2045_v43  ;;  %v2064_v7 = vrot.slane %v2063_v58, 4  ;;  %v1679_v8 = vrot.slane %v1529_v60, 5  ;;  %v1939_v9 = vld [vmem:[#allocation2 + $0x40] sm:$0xf] }
 0x12e   : > { %6286 = vmatprep.subr.bf16.mxu0 %v6513_v36  ;;  %4673 = vmatmul.mubr.bf16.gmra.mrb[60].mxu1 %v5562_v53  ;;  %v5618_v11 = vcombine.low %v2558_v38, %v2561_v57  ;;  %v7293_v12 = vsel %vm7029_vm13, %v5603_v41, %v2564_v46  ;;  %v2059_v15 = vsel %vm6890_vm6, %v2054_v62, %v7281_v42  ;;  %v2071_v17 = vshrl.u32 %v1938_v2, 16  ;;  %v2453_v30 = vld [vmem:[#allocation2 + $0x48] sm:$0xe]  ;;  %v2454_v38 = vld [vmem:[#allocation2 + $0x4c] sm:$0xf] }
 0x12f   : > { %4680 = vmatprep.mubr.bf16.mxu1 %v6506_v35  ;;  %v1677_v19 = vsel %vm7029_vm13, %v5547_v61, %v1676_v1  ;;  %v1678_v14 = vrot.slane %v1676_v1, 4  ;;  %v7303_v16 = vsel %vm7029_vm13, %v2566_v0, %v2567_v59  ;;  %v2074_v18 = vshll.u32 %v1938_v2, 16  ;;  %v1941_v56 = vld [vmem:[#allocation2 + $0x48] sm:$0xf]  ;;  %v1942_v60 = vld [vmem:[#allocation2 + $0x4c] sm:$0xf] }
 0x130   : > { %v2069_v13 = vsel %vm6890_vm6, %v2064_v7, %v2068_v63  ;;  %v2080_v22 = vshll.u32 %v1939_v9, 16  ;;  %v2084_v23 = vshrl.u32 %v1939_v9, 16  ;;  %v2073_v25 = vrot.slane %v2071_v17, 4  ;;  %v1943_v61 = vld [vmem:[#allocation2 + $0x50] sm:$0x1] }
 0x131   : > { %6287 = vmatpush3.bf16.msra.mxu0 %v6513_v36  ;;  %v1680_v21 = vsel %vm7029_vm13, %v1678_v14, %v1679_v8  ;;  %v2076_v27 = vrot.slane %v2074_v18, 5  ;;  %v2090_v26 = vshll.u32 %v1940_v10, 16  ;;  %v7309_v31 = vpack.c.bf16 %v293_v4, %v293_v4  ;;  %v2458_v17 = vld [vmem:[#allocation2 + $0x5c] sm:$0x1]  ;;  %v6520_v18 = vld [vmem:[#allocation7 + $0x228] sm:$0xff]  }
 0x132   : > { %v5563_v24 = vcombine.low %v1677_v19, %v1680_v21  ;;  %v2082_v6 = vrot.slane %v2080_v22, 5  ;;  %v2086_v29 = vrot.slane %v2084_v23, 4  ;;  %v5619_v32 = vcombine.low %v7293_v12, %v7303_v16  ;;  %6288 = vmatprep.subr.bf16.mxu0 %v6517_v28  ;;  %v2456_v12 = vld [vmem:[#allocation2 + $0x54] sm:$0xe]  ;;  %v2457_v19 = vld [vmem:[#allocation2 + $0x58] sm:$0xf] }
 0x133   : > { %v2077_v35 = vor.u32 %v2076_v27, %v2073_v25  ;;  %v2092_v36 = vrot.slane %v2090_v26, 5  ;;  %v5586_v42 = vcombine.low %v2059_v15, %v2069_v13  ;;  %v5604_v34 = vrot.slane %v2453_v30, 9  ;;  %v1533_v23 = vld [vmem:[#allocation2 + $0xa8] sm:$0xe]  ;;  %v1534_v26 = vld [vmem:[#allocation2 + $0xac] sm:$0xf] }
 0x134   : > { %4762 = vmatmul.mubr.bf16.gmra.mrb[56].mxu0 %v5585_v5  ;;  %v2087_v33 = vor.u32 %v2086_v29, %v2082_v6  ;;  %v2571_v43 = vrot.slane %v2454_v38, 5  ;;  %v2574_v50 = vrot.slane %v2455_v39, 5  ;;  %v5548_v53 = vrot.slane %v1530_v45, 9 }
 0x135   : > { %4769 = vmatprep.mubr.bf16.mxu0 %v5618_v11  ;;  %6289 = vmatpush3.bf16.msra.mxu0 %v6517_v28  ;;  %v2078_v49 = vrot.slane %v2077_v35, 4  ;;  %v1683_v54 = vrot.slane %v1531_v48, 5  ;;  %v1686_v55 = vrot.slane %v1532_v52, 5  ;;  %v650_v57 = vshrl.u32 %v7309_v31, 16  ;;  %v6511_v11 = vld [vmem:[#allocation2 + $0xb4] sm:$0xff]  }
 0x136   : > { %4681 = vmatmul.mubr.bf16.gmra.mrb[64].mxu1 %v5563_v24  ;;  %v2088_v41 = vrot.slane %v2087_v33, 4  ;;  %v2573_v46 = vrot.slane %v2571_v43, 4  ;;  %v2095_v62 = vshrl.u32 %v1941_v56, 16  ;;  %v7317_v63 = vpack.c.bf16 %v294_v40, %v294_v40  ;;  %v1535_v28 = vld [vmem:[#allocation2 + $0xb0] sm:$0x1]  ;;  %6290 = vmatprep.subr.bf16.mxu0 %v6520_v18 }
 0x137   : > { %4688 = vmatprep.mubr.bf16.mxu1 %v6510_v20  ;;  %v1684_v58 = vsel %vm7029_vm13, %v5548_v53, %v1683_v54  ;;  %v1685_v59 = vrot.slane %v1683_v54, 4  ;;  %v2083_v0 = vsel %vm6890_vm6, %v2078_v49, %v2082_v6  ;;  %v2572_v1 = vsel %vm7029_vm13, %v5604_v34, %v2571_v43  ;;  %v1945_v33 = vld [vmem:[#allocation2 + $0x58] sm:$0xf]  ;;  %v1946_v34 = vld [vmem:[#allocation2 + $0x5c] sm:$0x1] }
 0x138   : > { %v2098_v2 = vshll.u32 %v1941_v56, 16  ;;  %v2104_v5 = vshll.u32 %v1942_v60, 16  ;;  %v2093_v7 = vsel %vm6890_vm6, %v2088_v41, %v2092_v36  ;;  %v2575_v8 = vsel %vm7029_vm13, %v2573_v46, %v2574_v50  ;;  %v1944_v36 = vld [vmem:[#allocation2 + $0x54] sm:$0xf] }
 0x139   : > { %v1687_v9 = vsel %vm7029_vm13, %v1685_v59, %v1686_v55  ;;  %v2097_v10 = vrot.slane %v2095_v62, 4  ;;  %v2108_v16 = vshrl.u32 %v1942_v60, 16  ;;  %v2114_v20 = vshll.u32 %v1943_v61, 16  ;;  %6291 = vmatpush3.bf16.msra.mxu0 %v6520_v18 }
 0x13a   : > { %v5564_v14 = vcombine.low %v1684_v58, %v1687_v9  ;;  %v2100_v4 = vrot.slane %v2098_v2, 5  ;;  %v2106_v15 = vrot.slane %v2104_v5, 5  ;;  %v5605_v13 = vrot.slane %v2456_v12, 9  ;;  %v825_v5 = vld [vmem:[#allocation2 + $0xc0] sm:$0xf] }
 0x13b   : > { %v2578_v21 = vrot.slane %v2457_v19, 5  ;;  %v2581_v22 = vrot.slane %v2458_v17, 5  ;;  %v5587_v24 = vcombine.low %v2083_v0, %v2093_v7  ;;  %v2110_v27 = vrot.slane %v2108_v16, 4  ;;  %v2459_v7 = vld [vmem:[#allocation2 + $0x60] sm:$0xe] }
 0x13c   : > { %4770 = vmatmul.mubr.bf16.gmra.mrb[60].mxu0 %v5586_v42  ;;  %v2101_v25 = vor.u32 %v2100_v4, %v2097_v10  ;;  %v5549_v6 = vrot.slane %v1533_v23, 9  ;;  %v2116_v29 = vrot.slane %v2114_v20, 5  ;;  %v1690_v35 = vrot.slane %v1534_v26, 5  ;;  %v2460_v19 = vld [vmem:[#allocation2 + $0x64] sm:$0xf] }
 0x13d   : > { %4777 = vmatprep.mubr.bf16.mxu0 %v5619_v32  ;;  %v7331_v30 = vsel %vm7029_vm13, %v5605_v13, %v2578_v21  ;;  %v2580_v32 = vrot.slane %v2578_v21, 4  ;;  %v5620_v38 = vcombine.low %v2572_v1, %v2575_v8  ;;  %v2111_v40 = vor.u32 %v2110_v27, %v2106_v15  ;;  %v6523_v8 = vld [vmem:[#allocation7 + $0x230] sm:$0xff]   ;;  %v1536_v21 = vld [vmem:[#allocation2 + $0xb4] sm:$0xe] }
 0x13e   : > { %4689 = vmatmul.mubr.bf16.gmra.mrb[68].mxu1 %v5564_v14  ;;  %v2102_v39 = vrot.slane %v2101_v25, 4  ;;  %v1693_v42 = vrot.slane %v1535_v28, 5  ;;  %v1691_v45 = vsel %vm7029_vm13, %v5549_v6, %v1690_v35  ;;  %v1692_v48 = vrot.slane %v1690_v35, 4  ;;  %v2461_v16 = vld [vmem:[#allocation2 + $0x68] sm:$0x1]  ;;  %6292 = vmatprep.subr.bf16.mxu0 %v6523_v8 }
 0x13f   : > { %4696 = vmatprep.mubr.bf16.mxu1 %v6511_v11  ;;  %v2582_v43 = vsel %vm7029_vm13, %v2580_v32, %v2581_v22  ;;  %v2119_v49 = vshrl.u32 %v1944_v36, 16  ;;  %v2112_v52 = vrot.slane %v2111_v40, 4  ;;  %v2122_v54 = vshll.u32 %v1944_v36, 16  ;;  %6293 = vmatpush3.bf16.msra.mxu0 %v6523_v8  ;;  %v6526_v22 = vld [vmem:[#allocation7 + $0x238] sm:$0xff]   ;;  %v1538_v25 = vld [vmem:[#allocation2 + $0xbc] sm:$0x1] }
 0x140   : > { %v2107_v50 = vsel %vm6890_vm6, %v2102_v39, %v2106_v15  ;;  %v5621_v53 = vcombine.low %v7331_v30, %v2582_v43  ;;  %v1694_v41 = vsel %vm7029_vm13, %v1692_v48, %v1693_v42  ;;  %v2128_v55 = vshll.u32 %v1945_v33, 16  ;;  %v1947_v6 = vld [vmem:[#allocation2 + $0x60] sm:$0xf]  ;;  %6294 = vmatprep.subr.bf16.mxu0 %v6526_v22  ;;  %v1949_v42 = vld [vmem:[#allocation2 + $0x68] sm:$0x1] }
 0x141   : > { %v2121_v46 = vrot.slane %v2119_v49, 4  ;;  %v2132_v56 = vshrl.u32 %v1945_v33, 16  ;;  %v2117_v58 = vsel %vm6890_vm6, %v2112_v52, %v2116_v29  ;;  %v5565_v59 = vcombine.low %v1691_v45, %v1694_v41  ;;  %v1948_v29 = vld [vmem:[#allocation2 + $0x64] sm:$0xf]  ;;  %v2462_v33 = vld [vmem:[#allocation2 + $0x6c] sm:$0xe] }
 0x142   : > { %v2124_v60 = vrot.slane %v2122_v54, 5  ;;  %v2138_v61 = vshll.u32 %v1946_v34, 16  ;;  %v5588_v62 = vcombine.low %v2107_v50, %v2117_v58  ;;  %v2130_v0 = vrot.slane %v2128_v55, 5  ;;  %v2463_v49 = vld [vmem:[#allocation2 + $0x70] sm:$0xf] }
 0x143   : > { %v2134_v1 = vrot.slane %v2132_v56, 4  ;;  %v652_v2 = vrot.slane %v650_v57, 7  ;;  %v653_v11 = vshll.u32 %v7309_v31, 16  ;;  %v658_v12 = vshrl.u32 %v7317_v63, 16  ;;  %6295 = vmatpush3.bf16.msra.mxu0 %v6526_v22  ;;  %v2464_v54 = vld [vmem:[#allocation2 + $0x74] sm:$0x1] }
 0x144   : > { %4778 = vmatmul.mubr.bf16.gmra.mrb[64].mxu0 %v5587_v24  ;;  %v2125_v9 = vor.u32 %v2124_v60, %v2121_v46  ;;  %v2140_v10 = vrot.slane %v2138_v61, 5  ;;  %v661_v15 = vshll.u32 %v7317_v63, 16  ;;  %v5606_v17 = vrot.slane %v2459_v7, 9  ;;  %v1537_v24 = vld [vmem:[#allocation2 + $0xb8] sm:$0xf] }
 0x145   : > { %4785 = vmatprep.mubr.bf16.mxu0 %v5620_v38  ;;  %v2135_v14 = vor.u32 %v2134_v1, %v2130_v0  ;;  %v656_v4 = vrot.slane %v652_v2, 4  ;;  %v655_v57 = vor.u32 %v653_v11, %v652_v2  ;;  %v7349_v20 = vrot.slane %v658_v12, 7  ;;  %v2871_v41 = vld [vmem:[#allocation2 + $0x18] sm:$0xf]  ;;  %v2873_v1 = vld [vmem:[#allocation2 + $0x20] sm:$0x1] }
 0x146   : > { %4697 = vmatmul.mubr.bf16.gmra.mrb[72].mxu1 %v5565_v59  ;;  %v2126_v18 = vrot.slane %v2125_v9, 4  ;;  %v2585_v13 = vrot.slane %v2460_v19, 5  ;;  %v2588_v31 = vrot.slane %v2461_v16, 5  ;;  %v5550_v36 = vrot.slane %v1536_v21, 9  ;;  %v2872_v59 = vld [vmem:[#allocation2 + $0x1c] sm:$0xf] }
 0x147   : > { %v2136_v23 = vrot.slane %v2135_v14, 4  ;;  %v663_v63 = vor.u32 %v661_v15, %v7349_v20  ;;  %v665_v26 = vrot.slane %v7349_v20, 4  ;;  %v826_v28 = vsel %vm6901_vm9, %v655_v57, %v825_v5  ;;  %v1950_v9 = vld [vmem:[#allocation2 + $0x6c] sm:$0xf]  ;;  %v1951_v14 = vld [vmem:[#allocation2 + $0x70] sm:$0xf] }
 0x148   : > { %v2131_v27 = vsel %vm6890_vm6, %v2126_v18, %v2130_v0  ;;  %827 = vst [vmem:[#allocation2 + $0xc0] sm:$0xf] %v826_v28  ;;  %v2586_v32 = vsel %vm7029_vm13, %v5606_v17, %v2585_v13  ;;  %v2587_v35 = vrot.slane %v2585_v13, 4  ;;  %v1697_v47 = vrot.slane %v1537_v24, 5 }
 0x149   : > { %v2141_v30 = vsel %vm6890_vm6, %v2136_v23, %v2140_v10  ;;  %v664_v39 = vsel %vm6909_vm10, %v656_v4, %v663_v63  ;;  %v1700_v40 = vrot.slane %v1538_v25, 5  ;;  %v2143_v43 = vshrl.u32 %v1947_v6, 16 }
 0x14a   : > { %v5589_v38 = vcombine.low %v2131_v27, %v2141_v30  ;;  %828 = vst [vmem:[#allocation2 + $0xc4] sm:$0xf] %v664_v39  ;;  %v2589_v34 = vsel %vm7029_vm13, %v2587_v35, %v2588_v31  ;;  %v2146_v45 = vshll.u32 %v1947_v6, 16  ;;  %v2152_v48 = vshll.u32 %v1948_v29, 16  ;;  %v1952_v27 = vld [vmem:[#allocation2 + $0x74] sm:$0x1] }
 0x14b   : > { %v5622_v50 = vcombine.low %v2586_v32, %v2589_v34  ;;  %v1698_v52 = vsel %vm7029_vm13, %v5550_v36, %v1697_v47  ;;  %v2156_v51 = vshrl.u32 %v1948_v29, 16  ;;  %v2145_v46 = vrot.slane %v2143_v43, 4  ;;  %v2465_v30 = vld [vmem:[#allocation2 + $0x78] sm:$0xe] }
 0x14c   : > { %4786 = vmatmul.mubr.bf16.gmra.mrb[68].mxu0 %v5588_v62  ;;  %v2148_v55 = vrot.slane %v2146_v45, 5  ;;  %v2154_v56 = vrot.slane %v2152_v48, 5  ;;  %v2162_v58 = vshll.u32 %v1949_v42, 16  ;;  %v5607_v62 = vrot.slane %v2462_v33, 9  ;;  %v2874_v45 = vld [vmem:[#allocation2 + $0x24] sm:$0xf] }
 0x14d   : > { %4793 = vmatprep.mubr.bf16.mxu0 %v5621_v53  ;;  %v1699_v53 = vrot.slane %v1697_v47, 4  ;;  %v2158_v61 = vrot.slane %v2156_v51, 4  ;;  %v2592_v0 = vrot.slane %v2463_v49, 5  ;;  %v2595_v8 = vrot.slane %v2464_v54, 5  ;;  %v2466_v47 = vld [vmem:[#allocation2 + $0x7c] sm:$0xf] }
 0x14e   : > { %v2149_v5 = vor.u32 %v2148_v55, %v2145_v46  ;;  %v2164_v7 = vrot.slane %v2162_v58, 5  ;;  %v2920_v19 = vshrl.u32 %v2871_v41, 16  ;;  %v2923_v15 = vshll.u32 %v2871_v41, 16  ;;  %v6516_v46 = vld [vmem:[#allocation2 + $0x18] sm:$0xff]  }
 0x14f   : > { %v1701_v60 = vsel %vm7029_vm13, %v1699_v53, %v1700_v40  ;;  %v2159_v10 = vor.u32 %v2158_v61, %v2154_v56  ;;  %v2593_v11 = vsel %vm7029_vm13, %v5607_v62, %v2592_v0  ;;  %v2594_v12 = vrot.slane %v2592_v0, 4  ;;  %v2467_v40 = vld [vmem:[#allocation2 + $0x80] sm:$0x1]  ;;  %v2876_v61 = vld [vmem:[#allocation2 + $0x2c] sm:$0x1] }
 0x150   : > { %v5566_v2 = vcombine.low %v1698_v52, %v1701_v60  ;;  %v2150_v4 = vrot.slane %v2149_v5, 4  ;;  %v2929_v16 = vshll.u32 %v2872_v59, 16  ;;  %v2933_v17 = vshrl.u32 %v2872_v59, 16  ;;  %v2875_v60 = vld [vmem:[#allocation2 + $0x28] sm:$0xf] }
 0x151   : > { %v6515_v18 = vld [vmem:[#allocation2 + $0xc0] sm:$0xff]   ;;  %v2160_v57 = vrot.slane %v2159_v10, 4  ;;  %v2596_v13 = vsel %vm7029_vm13, %v2594_v12, %v2595_v8  ;;  %v2922_v21 = vrot.slane %v2920_v19, 4  ;;  %v2939_v22 = vshll.u32 %v2873_v1, 16  ;;  %v1953_v12 = vld [vmem:[#allocation2 + $0x78] sm:$0xf] }
 0x152   : > { %v2155_v23 = vsel %vm6890_vm6, %v2150_v4, %v2154_v56  ;;  %v5623_v31 = vcombine.low %v2593_v11, %v2596_v13  ;;  %v2925_v24 = vrot.slane %v2923_v15, 5  ;;  %v2931_v25 = vrot.slane %v2929_v16, 5  ;;  %4704 = vmatprep.mubr.bf16.mxu1 %v6515_v18 }
 0x153   : > { %v2165_v63 = vsel %vm6890_vm6, %v2160_v57, %v2164_v7  ;;  %v2935_v28 = vrot.slane %v2933_v17, 4  ;;  %v2941_v6 = vrot.slane %v2939_v22, 5  ;;  %v2167_v29 = vshrl.u32 %v1950_v9, 16  ;;  %4705 = vmatmul.mubr.bf16.gmra.mrb[76].mxu1 %v5566_v2  ;;  %v1955_v22 = vld [vmem:[#allocation2 + $0x80] sm:$0x1] }
 0x154   : > { %4794 = vmatmul.mubr.bf16.gmra.mrb[72].mxu0 %v5589_v38  ;;  %v5590_v35 = vcombine.low %v2155_v23, %v2165_v63  ;;  %v2926_v36 = vor.u32 %v2925_v24, %v2922_v21  ;;  %v2170_v38 = vshll.u32 %v1950_v9, 16  ;;  %v2176_v39 = vshll.u32 %v1951_v14, 16  ;;  %v1954_v21 = vld [vmem:[#allocation2 + $0x7c] sm:$0xf] }
 0x155   : > { %4801 = vmatprep.mubr.bf16.mxu0 %v5622_v50  ;;  %v2936_v42 = vor.u32 %v2935_v28, %v2931_v25  ;;  %v2169_v33 = vrot.slane %v2167_v29, 4  ;;  %v2180_v34 = vshrl.u32 %v1951_v14, 16  ;;  %v2186_v43 = vshll.u32 %v1952_v27, 16  ;;  %v2468_v27 = vld [vmem:[#allocation2 + $0x84] sm:$0xe] }
 0x156   : > { %v2927_v49 = vrot.slane %v2926_v36, 4  ;;  %v2172_v50 = vrot.slane %v2170_v38, 5  ;;  %v2178_v52 = vrot.slane %v2176_v39, 5  ;;  %v5608_v53 = vrot.slane %v2465_v30, 9  ;;  %v2469_v30 = vld [vmem:[#allocation2 + $0x88] sm:$0xf] }
 0x157   : > { %v2937_v51 = vrot.slane %v2936_v42, 4  ;;  %v2182_v54 = vrot.slane %v2180_v34, 4  ;;  %v2188_v41 = vrot.slane %v2186_v43, 5  ;;  %v2599_v55 = vrot.slane %v2466_v47, 5 }
 0x158   : > { %v2932_v56 = vsel %vm6890_vm6, %v2927_v49, %v2931_v25  ;;  %v2173_v58 = vor.u32 %v2172_v50, %v2169_v33  ;;  %v2602_v59 = vrot.slane %v2467_v40, 5  ;;  %v2944_v62 = vshrl.u32 %v2874_v45, 16  ;;  %v2877_v40 = vld [vmem:[#allocation2 + $0x30] sm:$0xf]  ;;  %v2878_v49 = vld [vmem:[#allocation2 + $0x34] sm:$0xf] }
 0x159   : > { %v2942_v0 = vsel %vm6890_vm6, %v2937_v51, %v2941_v6  ;;  %v2183_v1 = vor.u32 %v2182_v54, %v2178_v52  ;;  %v2600_v2 = vsel %vm7029_vm13, %v5608_v53, %v2599_v55  ;;  %v2601_v5 = vrot.slane %v2599_v55, 4 }
 0x15a   : > { %v5647_v8 = vcombine.low %v2932_v56, %v2942_v0  ;;  %v2174_v9 = vrot.slane %v2173_v58, 4  ;;  %v2946_v10 = vrot.slane %v2944_v62, 4  ;;  %v2947_v11 = vshll.u32 %v2874_v45, 16 }
 0x15b   : > { %v2184_v14 = vrot.slane %v2183_v1, 4  ;;  %v2603_v4 = vsel %vm7029_vm13, %v2601_v5, %v2602_v59  ;;  %v2953_v15 = vshll.u32 %v2875_v60, 16  ;;  %v2957_v16 = vshrl.u32 %v2875_v60, 16  ;;  %v6518_v59 = vld [vmem:[#allocation2 + $0x24] sm:$0xff]  }
 0x15c   : > { %4802 = vmatmul.mubr.bf16.gmra.mrb[76].mxu0 %v5590_v35  ;;  %4906 = vmatprep.mubr.bf16.mxu1 %v5647_v8  ;;  %v2179_v17 = vsel %vm6890_vm6, %v2174_v9, %v2178_v52  ;;  %v5624_v18 = vcombine.low %v2600_v2, %v2603_v4  ;;  %v2949_v57 = vrot.slane %v2947_v11, 5  ;;  %v2963_v13 = vshll.u32 %v2876_v61, 16  ;;  %v2470_v35 = vld [vmem:[#allocation2 + $0x8c] sm:$0x1]  ;;  %v2879_v2 = vld [vmem:[#allocation2 + $0x38] sm:$0x1] }
 0x15d   : > { %4809 = vmatprep.mubr.bf16.mxu0 %v5623_v31  ;;  %v2189_v23 = vsel %vm6890_vm6, %v2184_v14, %v2188_v41  ;;  %4907 = vmatmul.mubr.bf16.vlgmr.msra.gmra.mrb[80].mxu1 %v6516_v46  ;;  %v2955_v31 = vrot.slane %v2953_v15, 5  ;;  %v2959_v24 = vrot.slane %v2957_v16, 4  ;;  %v2191_v25 = vshrl.u32 %v1953_v12, 16  ;;  %v1956_v4 = vld [vmem:[#allocation2 + $0x84] sm:$0xf] }
 0x15e   : > { %v5591_v63 = vcombine.low %v2179_v17, %v2189_v23  ;;  %v2950_v28 = vor.u32 %v2949_v57, %v2946_v10  ;;  %v2965_v6 = vrot.slane %v2963_v13, 5  ;;  %v2194_v29 = vshll.u32 %v1953_v12, 16  ;;  %v1957_v13 = vld [vmem:[#allocation2 + $0x88] sm:$0xf] }
 0x15f   : > { %v2960_v36 = vor.u32 %v2959_v24, %v2955_v31  ;;  %v2193_v38 = vrot.slane %v2191_v25, 4  ;;  %v2200_v39 = vshll.u32 %v1954_v21, 16  ;;  %v2204_v47 = vshrl.u32 %v1954_v21, 16  ;;  %v1958_v21 = vld [vmem:[#allocation2 + $0x8c] sm:$0x1] }
 0x160   : > { %v2951_v33 = vrot.slane %v2950_v28, 4  ;;  %v2196_v34 = vrot.slane %v2194_v29, 5  ;;  %v2210_v43 = vshll.u32 %v1955_v22, 16  ;;  %v5609_v45 = vrot.slane %v2468_v27, 9  ;;  %v2471_v25 = vld [vmem:[#allocation2 + $0x90] sm:$0xe] }
 0x161   : > { %v2961_v50 = vrot.slane %v2960_v36, 4  ;;  %v2202_v52 = vrot.slane %v2200_v39, 5  ;;  %v2206_v53 = vrot.slane %v2204_v47, 4  ;;  %v2606_v51 = vrot.slane %v2469_v30, 5  ;;  %v2472_v29 = vld [vmem:[#allocation2 + $0x94] sm:$0xf] }
 0x162   : > { %v2956_v54 = vsel %vm6890_vm6, %v2951_v33, %v2955_v31  ;;  %v2197_v41 = vor.u32 %v2196_v34, %v2193_v38  ;;  %v2212_v46 = vrot.slane %v2210_v43, 5  ;;  %v2609_v55 = vrot.slane %v2470_v35, 5  ;;  %v2473_v30 = vld [vmem:[#allocation2 + $0x98] sm:$0x1]  ;;  %v2880_v47 = vld [vmem:[#allocation2 + $0x3c] sm:$0xf] }
 0x163   : > { %v2966_v56 = vsel %vm6890_vm6, %v2961_v50, %v2965_v6  ;;  %v2207_v58 = vor.u32 %v2206_v53, %v2202_v52  ;;  %v2607_v60 = vsel %vm7029_vm13, %v5609_v45, %v2606_v51  ;;  %v2608_v61 = vrot.slane %v2606_v51, 4 }
 0x164   : > { %4810 = vmatmul.mubr.bf16.gmra.mrb[80].mxu0 %v5591_v63  ;;  %v5648_v0 = vcombine.low %v2956_v54, %v2966_v56  ;;  %v2198_v1 = vrot.slane %v2197_v41, 4  ;;  %v2968_v5 = vshrl.u32 %v2877_v40, 16  ;;  %v2971_v8 = vshll.u32 %v2877_v40, 16 }
 0x165   : > { %4817 = vmatprep.mubr.bf16.mxu0 %v5624_v18  ;;  %v2208_v10 = vrot.slane %v2207_v58, 4  ;;  %v2610_v11 = vsel %vm7029_vm13, %v2608_v61, %v2609_v55  ;;  %v2977_v12 = vshll.u32 %v2878_v49, 16  ;;  %v2981_v14 = vshrl.u32 %v2878_v49, 16  ;;  %v6519_v58 = vld [vmem:[#allocation2 + $0x30] sm:$0xff]  }
 0x166   : > { %4914 = vmatprep.mubr.bf16.mxu1 %v5648_v0  ;;  %v2203_v16 = vsel %vm6890_vm6, %v2198_v1, %v2202_v52  ;;  %v5625_v17 = vcombine.low %v2607_v60, %v2610_v11  ;;  %v2970_v18 = vrot.slane %v2968_v5, 4  ;;  %v2973_v57 = vrot.slane %v2971_v8, 5  ;;  %v2882_v60 = vld [vmem:[#allocation2 + $0x44] sm:$0x1]  ;;  %v1959_v8 = vld [vmem:[#allocation2 + $0x90] sm:$0xf] }
 0x167   : > { %v2213_v22 = vsel %vm6890_vm6, %v2208_v10, %v2212_v46  ;;  %4915 = vmatmul.mubr.bf16.gmra.mrb[84].mxu1 %v6518_v59  ;;  %v2979_v23 = vrot.slane %v2977_v12, 5  ;;  %v2983_v31 = vrot.slane %v2981_v14, 4  ;;  %v2987_v24 = vshll.u32 %v2879_v2, 16  ;;  %v2881_v46 = vld [vmem:[#allocation2 + $0x40] sm:$0xf] }
 0x168   : > { %v5592_v27 = vcombine.low %v2203_v16, %v2213_v22  ;;  %v2974_v63 = vor.u32 %v2973_v57, %v2970_v18  ;;  %v2215_v28 = vshrl.u32 %v1956_v4, 16  ;;  %v2218_v6 = vshll.u32 %v1956_v4, 16  ;;  %v1960_v4 = vld [vmem:[#allocation2 + $0x94] sm:$0xf] }
 0x169   : > { %v2984_v35 = vor.u32 %v2983_v31, %v2979_v23  ;;  %v2989_v36 = vrot.slane %v2987_v24, 5  ;;  %v2224_v38 = vshll.u32 %v1957_v13, 16  ;;  %v2228_v39 = vshrl.u32 %v1957_v13, 16  ;;  %v1961_v13 = vld [vmem:[#allocation2 + $0x98] sm:$0x1] }
 0x16a   : > { %v2975_v40 = vrot.slane %v2974_v63, 4  ;;  %v2217_v33 = vrot.slane %v2215_v28, 4  ;;  %v2220_v34 = vrot.slane %v2218_v6, 5  ;;  %v2234_v43 = vshll.u32 %v1958_v21, 16  ;;  %v2474_v21 = vld [vmem:[#allocation2 + $0x9c] sm:$0xe] }
 0x16b   : > { %v2985_v45 = vrot.slane %v2984_v35, 4  ;;  %v2226_v49 = vrot.slane %v2224_v38, 5  ;;  %v2230_v50 = vrot.slane %v2228_v39, 4  ;;  %v5610_v52 = vrot.slane %v2471_v25, 9  ;;  %v2475_v25 = vld [vmem:[#allocation2 + $0xa0] sm:$0xf] }
 0x16c   : > { %v7377_v32 = vpop.f32.mrb[0].mxu0  ;;  %4818 = vmatmul.mubr.bf16.gmra.mrb[84].mxu0 %v5592_v27  ;;  %v2980_v53 = vsel %vm6890_vm6, %v2975_v40, %v2979_v23  ;;  %v2221_v51 = vor.u32 %v2220_v34, %v2217_v33  ;;  %v2236_v54 = vrot.slane %v2234_v43, 5  ;;  %v2613_v41 = vrot.slane %v2472_v29, 5  ;;  %v2476_v27 = vld [vmem:[#allocation2 + $0xa4] sm:$0x1] }
 0x16d   : > { %v7379_v48 = vpop.f32.mrb[1].mxu0  ;;  %4825 = vmatprep.mubr.bf16.mxu0 %v5625_v17  ;;  %v2990_v55 = vsel %vm6890_vm6, %v2985_v45, %v2989_v36  ;;  %v2231_v56 = vor.u32 %v2230_v50, %v2226_v49  ;;  %v2616_v59 = vrot.slane %v2473_v30, 5  ;;  %v2992_v61 = vshrl.u32 %v2880_v47, 16  ;;  %v2883_v45 = vld [vmem:[#allocation2 + $0x48] sm:$0xf] }
 0x16e   : > { %v7387_v7 = vpop.f32.mrb[2].mxu0  ;;  %v5649_v0 = vcombine.low %v2980_v53, %v2990_v55  ;;  %v2222_v1 = vrot.slane %v2221_v51, 4  ;;  %v2614_v2 = vsel %vm7029_vm13, %v5610_v52, %v2613_v41  ;;  %v2615_v5 = vrot.slane %v2613_v41, 4 }
 0x16f   : > { %v7389_v19 = vpop.f32.mrb[3].mxu0  ;;  %v7397_v42 = vpop.f32.mrb[0].mxu1  ;;  %v2232_v10 = vrot.slane %v2231_v56, 4  ;;  %v2994_v11 = vrot.slane %v2992_v61, 4  ;;  %v2995_v12 = vshll.u32 %v2880_v47, 16  ;;  %v3001_v14 = vshll.u32 %v2881_v46, 16 }
 0x170   : > { %v7405_v62 = vpop.f32.mrb[1].mxu1  ;;  %4922 = vmatprep.mubr.bf16.mxu1 %v5649_v0  ;;  %v2227_v16 = vsel %vm6890_vm6, %v2222_v1, %v2226_v49  ;;  %v2617_v17 = vsel %vm7029_vm13, %v2615_v5, %v2616_v59  ;;  %v3005_v18 = vshrl.u32 %v2881_v46, 16  ;;  %v3011_v57 = vshll.u32 %v2882_v60, 16  ;;  %v6521_v60 = vld [vmem:[#allocation2 + $0x3c] sm:$0xff]   ;;  %v2884_v61 = vld [vmem:[#allocation2 + $0x4c] sm:$0xf] }
 0x171   : > { %v7407_v9 = vpop.f32.mrb[2].mxu1  ;;  %v2237_v22 = vsel %vm6890_vm6, %v2232_v10, %v2236_v54  ;;  %4923 = vmatmul.mubr.bf16.gmra.mrb[88].mxu1 %v6519_v58  ;;  %v5626_v23 = vcombine.low %v2614_v2, %v2617_v17  ;;  %v2997_v31 = vrot.slane %v2995_v12, 5  ;;  %v3003_v24 = vrot.slane %v3001_v14, 5  ;;  %v2885_v10 = vld [vmem:[#allocation2 + $0x50] sm:$0x1] }
 0x172   : > { %v7411_v15 = vpop.f32.mrb[3].mxu1  ;;  %v5593_v63 = vcombine.low %v2227_v16, %v2237_v22  ;;  %v3007_v28 = vrot.slane %v3005_v18, 4  ;;  %v3013_v6 = vrot.slane %v3011_v57, 5  ;;  %v2239_v29 = vshrl.u32 %v1959_v8, 16  ;;  %v1962_v12 = vld [vmem:[#allocation2 + $0x9c] sm:$0xf] }
 0x173   : > { %v2998_v35 = vor.u32 %v2997_v31, %v2994_v11  ;;  %v2242_v36 = vshll.u32 %v1959_v8, 16  ;;  %v2248_v38 = vshll.u32 %v1960_v4, 16  ;;  %v2252_v39 = vshrl.u32 %v1960_v4, 16  ;;  %v1963_v18 = vld [vmem:[#allocation2 + $0xa0] sm:$0xf] }
 0x174   : > { %4826 = vmatmul.mubr.bf16.gmra.mrb[88].mxu0 %v5593_v63  ;;  %v3008_v40 = vor.u32 %v3007_v28, %v3003_v24  ;;  %v2241_v33 = vrot.slane %v2239_v29, 4  ;;  %v2258_v34 = vshll.u32 %v1961_v13, 16  ;;  %v5611_v43 = vrot.slane %v2474_v21, 9  ;;  %v1964_v31 = vld [vmem:[#allocation2 + $0xa4] sm:$0x1] }
 0x175   : > { %4833 = vmatprep.mubr.bf16.mxu0 %v5626_v23  ;;  %v2999_v50 = vrot.slane %v2998_v35, 4  ;;  %v2244_v52 = vrot.slane %v2242_v36, 5  ;;  %v2250_v53 = vrot.slane %v2248_v38, 5  ;;  %v2254_v51 = vrot.slane %v2252_v39, 4  ;;  %v2477_v39 = vld [vmem:[#allocation2 + $0xa8] sm:$0xe] }
 0x176   : > { %v3009_v54 = vrot.slane %v3008_v40, 4  ;;  %v2260_v41 = vrot.slane %v2258_v34, 5  ;;  %v2620_v46 = vrot.slane %v2475_v25, 5  ;;  %v2623_v55 = vrot.slane %v2476_v27, 5  ;;  %v2478_v40 = vld [vmem:[#allocation2 + $0xac] sm:$0xf] }
 0x177   : > { %v3004_v56 = vsel %vm6890_vm6, %v2999_v50, %v3003_v24  ;;  %v2245_v58 = vor.u32 %v2244_v52, %v2241_v33  ;;  %v2255_v59 = vor.u32 %v2254_v51, %v2250_v53  ;;  %v3016_v0 = vshrl.u32 %v2883_v45, 16  ;;  %v2479_v50 = vld [vmem:[#allocation2 + $0xb0] sm:$0x1] }
 0x178   : > { %v3014_v2 = vsel %vm6890_vm6, %v3009_v54, %v3013_v6  ;;  %v2621_v5 = vsel %vm7029_vm13, %v5611_v43, %v2620_v46  ;;  %v2622_v8 = vrot.slane %v2620_v46, 4  ;;  %v3019_v11 = vshll.u32 %v2883_v45, 16 }
 0x179   : > { %v7429_v30 = vpop.f32.mrb[4].mxu0  ;;  %v5650_v14 = vcombine.low %v3004_v56, %v3014_v2  ;;  %v2246_v4 = vrot.slane %v2245_v58, 4  ;;  %v2256_v16 = vrot.slane %v2255_v59, 4  ;;  %v3018_v17 = vrot.slane %v3016_v0, 4 }
 0x17a   : > { %v7433_v49 = vpop.f32.mrb[5].mxu0  ;;  %v2624_v13 = vsel %vm7029_vm13, %v2622_v8, %v2623_v55  ;;  %v3021_v21 = vrot.slane %v3019_v11, 5  ;;  %v3025_v22 = vshll.u32 %v2884_v61, 16  ;;  %v3029_v23 = vshrl.u32 %v2884_v61, 16  ;;  %v6522_v11 = vld [vmem:[#allocation2 + $0x48] sm:$0xff]  }
 0x17b   : > { %v7443_v57 = vpop.f32.mrb[6].mxu0  ;;  %4930 = vmatprep.mubr.bf16.mxu1 %v5650_v14  ;;  %v2251_v25 = vsel %vm6890_vm6, %v2246_v4, %v2250_v53  ;;  %v2261_v27 = vsel %vm6890_vm6, %v2256_v16, %v2260_v41  ;;  %v5627_v63 = vcombine.low %v2621_v5, %v2624_v13  ;;  %v3035_v28 = vshll.u32 %v2885_v10, 16  ;;  %v2886_v41 = vld [vmem:[#allocation2 + $0x54] sm:$0xf]  ;;  %v2888_v13 = vld [vmem:[#allocation2 + $0x5c] sm:$0x1] }
 0x17c   : > { %v7453_v6 = vpop.f32.mrb[7].mxu0  ;;  %v5594_v29 = vcombine.low %v2251_v25, %v2261_v27  ;;  %4931 = vmatmul.mubr.bf16.gmra.mrb[92].mxu1 %v6521_v60  ;;  %v3022_v35 = vor.u32 %v3021_v21, %v3018_v17  ;;  %v3027_v36 = vrot.slane %v3025_v22, 5  ;;  %v3031_v38 = vrot.slane %v3029_v23, 4  ;;  %v2887_v60 = vld [vmem:[#allocation2 + $0x58] sm:$0xf] }
 0x17d   : > { %v3037_v33 = vrot.slane %v3035_v28, 5  ;;  %v2263_v34 = vshrl.u32 %v1962_v12, 16  ;;  %v2266_v43 = vshll.u32 %v1962_v12, 16  ;;  %v2272_v45 = vshll.u32 %v1963_v18, 16  ;;  %v1965_v23 = vld [vmem:[#allocation2 + $0xa8] sm:$0xf] }
 0x17e   : > { %4834 = vmatmul.mubr.bf16.gmra.mrb[92].mxu0 %v5594_v29  ;;  %v3023_v52 = vrot.slane %v3022_v35, 4  ;;  %v3032_v53 = vor.u32 %v3031_v38, %v3027_v36  ;;  %v2276_v51 = vshrl.u32 %v1963_v18, 16  ;;  %v2282_v54 = vshll.u32 %v1964_v31, 16 }
 0x17f   : > { %4841 = vmatprep.mubr.bf16.mxu0 %v5627_v63  ;;  %v2265_v55 = vrot.slane %v2263_v34, 4  ;;  %v2268_v56 = vrot.slane %v2266_v43, 5  ;;  %v2274_v58 = vrot.slane %v2272_v45, 5  ;;  %v5612_v59 = vrot.slane %v2477_v39, 9  ;;  %v1966_v34 = vld [vmem:[#allocation2 + $0xac] sm:$0xf] }
 0x180   : > { %v3028_v61 = vsel %vm6890_vm6, %v3023_v52, %v3027_v36  ;;  %v3033_v0 = vrot.slane %v3032_v53, 4  ;;  %v2278_v2 = vrot.slane %v2276_v51, 4  ;;  %v2284_v5 = vrot.slane %v2282_v54, 5  ;;  %v1967_v52 = vld [vmem:[#allocation2 + $0xb0] sm:$0x1] }
 0x181   : > { %v7431_v47 = vpop.f32.mrb[4].mxu1  ;;  %v2269_v10 = vor.u32 %v2268_v56, %v2265_v55  ;;  %v2627_v12 = vrot.slane %v2478_v40, 5  ;;  %v2630_v14 = vrot.slane %v2479_v50, 5  ;;  %v3040_v4 = vshrl.u32 %v2886_v41, 16  ;;  %v2480_v51 = vld [vmem:[#allocation2 + $0xb4] sm:$0xe] }
 0x182   : > { %v7437_v1 = vpop.f32.mrb[5].mxu1  ;;  %v3038_v17 = vsel %vm6890_vm6, %v3033_v0, %v3037_v33  ;;  %v2279_v18 = vor.u32 %v2278_v2, %v2274_v58  ;;  %v3043_v21 = vshll.u32 %v2886_v41, 16  ;;  %v3049_v22 = vshll.u32 %v2887_v60, 16 }
 0x183   : > { %v7447_v24 = vpop.f32.mrb[6].mxu1  ;;  %v5651_v31 = vcombine.low %v3028_v61, %v3038_v17  ;;  %v2270_v25 = vrot.slane %v2269_v10, 4  ;;  %v2628_v27 = vsel %vm7029_vm13, %v5612_v59, %v2627_v12  ;;  %v2629_v63 = vrot.slane %v2627_v12, 4  ;;  %v2481_v59 = vld [vmem:[#allocation2 + $0xb8] sm:$0xf] }
 0x184   : > { %v7455_v46 = vpop.f32.mrb[7].mxu1  ;;  %v2280_v28 = vrot.slane %v2279_v18, 4  ;;  %v3042_v29 = vrot.slane %v3040_v4, 4  ;;  %v3045_v35 = vrot.slane %v3043_v21, 5  ;;  %v3051_v36 = vrot.slane %v3049_v22, 5 }
 0x185   : > { %4938 = vmatprep.mubr.bf16.mxu1 %v5651_v31  ;;  %v2275_v38 = vsel %vm6890_vm6, %v2270_v25, %v2274_v58  ;;  %v2631_v39 = vsel %vm7029_vm13, %v2629_v63, %v2630_v14  ;;  %v3053_v40 = vshrl.u32 %v2887_v60, 16  ;;  %v3059_v33 = vshll.u32 %v2888_v13, 16  ;;  %v2889_v17 = vld [vmem:[#allocation2 + $0x60] sm:$0xf]  ;;  %v2890_v31 = vld [vmem:[#allocation2 + $0x64] sm:$0xf] }
 0x186   : > { %v2285_v43 = vsel %vm6890_vm6, %v2280_v28, %v2284_v5  ;;  %4939 = vmatmul.mubr.bf16.gmra.mrb[96].mxu1 %v6522_v11  ;;  %v5628_v45 = vcombine.low %v2628_v27, %v2631_v39  ;;  %v3046_v50 = vor.u32 %v3045_v35, %v3042_v29  ;;  %v2287_v53 = vshrl.u32 %v1965_v23, 16  ;;  %v2482_v5 = vld [vmem:[#allocation2 + $0xbc] sm:$0x1]  ;;  %v6524_v29 = vld [vmem:[#allocation2 + $0x54] sm:$0xff]  }
 0x187   : > { %v5595_v41 = vcombine.low %v2275_v38, %v2285_v43  ;;  %v3055_v55 = vrot.slane %v3053_v40, 4  ;;  %v3061_v56 = vrot.slane %v3059_v33, 5  ;;  %v2290_v58 = vshll.u32 %v1965_v23, 16  ;;  %v2891_v38 = vld [vmem:[#allocation2 + $0x68] sm:$0x1] }
 0x188   : > { %v3047_v60 = vrot.slane %v3046_v50, 4  ;;  %v2289_v0 = vrot.slane %v2287_v53, 4  ;;  %v2296_v2 = vshll.u32 %v1966_v34, 16  ;;  %v2300_v10 = vshrl.u32 %v1966_v34, 16  ;;  %v1968_v53 = vld [vmem:[#allocation2 + $0xb4] sm:$0xf] }
 0x189   : > { %v7459_v8 = vpop.f32.mrb[8].mxu0  ;;  %4842 = vmatmul.mubr.bf16.gmra.mrb[96].mxu0 %v5595_v41  ;;  %v3056_v11 = vor.u32 %v3055_v55, %v3051_v36  ;;  %v2292_v12 = vrot.slane %v2290_v58, 5  ;;  %v2306_v14 = vshll.u32 %v1967_v52, 16  ;;  %v5613_v4 = vrot.slane %v2480_v51, 9 }
 0x18a   : > { %v7461_v16 = vpop.f32.mrb[9].mxu0  ;;  %4849 = vmatprep.mubr.bf16.mxu0 %v5628_v45  ;;  %v3052_v13 = vsel %vm6890_vm6, %v3047_v60, %v3051_v36  ;;  %v2298_v21 = vrot.slane %v2296_v2, 5  ;;  %v2302_v22 = vrot.slane %v2300_v10, 4  ;;  %v2634_v23 = vrot.slane %v2481_v59, 5  ;;  %v1969_v60 = vld [vmem:[#allocation2 + $0xb8] sm:$0xf] }
 0x18b   : > { %v7477_v18 = vpop.f32.mrb[10].mxu0  ;;  %v3057_v27 = vrot.slane %v3056_v11, 4  ;;  %v2293_v63 = vor.u32 %v2292_v12, %v2289_v0  ;;  %v2308_v28 = vrot.slane %v2306_v14, 5  ;;  %v2637_v35 = vrot.slane %v2482_v5, 5  ;;  %v1970_v14 = vld [vmem:[#allocation2 + $0xbc] sm:$0x1] }
 0x18c   : > { %v7483_v39 = vpop.f32.mrb[11].mxu0  ;;  %v2303_v40 = vor.u32 %v2302_v22, %v2298_v21  ;;  %v2635_v33 = vsel %vm7029_vm13, %v5613_v4, %v2634_v23  ;;  %v2636_v34 = vrot.slane %v2634_v23, 4  ;;  %v3064_v36 = vshrl.u32 %v2889_v17, 16 }
 0x18d   : > { %v3062_v43 = vsel %vm6890_vm6, %v3057_v27, %v3061_v56  ;;  %v2294_v45 = vrot.slane %v2293_v63, 4  ;;  %v3067_v50 = vshll.u32 %v2889_v17, 16  ;;  %v3073_v52 = vshll.u32 %v2890_v31, 16 }
 0x18e   : > { %v5652_v41 = vcombine.low %v3052_v13, %v3062_v43  ;;  %v2304_v55 = vrot.slane %v2303_v40, 4  ;;  %v2638_v58 = vsel %vm7029_vm13, %v2636_v34, %v2637_v35  ;;  %v3066_v59 = vrot.slane %v3064_v36, 4 }
 0x18f   : > { %v2299_v0 = vsel %vm6890_vm6, %v2294_v45, %v2298_v21  ;;  %v5629_v2 = vcombine.low %v2635_v33, %v2638_v58  ;;  %v3069_v10 = vrot.slane %v3067_v50, 5  ;;  %v3075_v5 = vrot.slane %v3073_v52, 5  ;;  %v829_v33 = vld [vmem:[#allocation2 + $0xc8] sm:$0x1]  ;;  %v2484_v52 = vld [vmem:[#allocation2 + $0xc4] sm:$0xf] }
 0x190   : > { %4946 = vmatprep.mubr.bf16.mxu1 %v5652_v41  ;;  %v2309_v56 = vsel %vm6890_vm6, %v2304_v55, %v2308_v28  ;;  %v3077_v11 = vshrl.u32 %v2890_v31, 16  ;;  %v3083_v12 = vshll.u32 %v2891_v38, 16  ;;  %v2311_v4 = vshrl.u32 %v1968_v53, 16  ;;  %v2483_v38 = vld [vmem:[#allocation2 + $0xc0] sm:$0xe] }
 0x191   : > { %v7473_v54 = vpop.f32.mrb[8].mxu1  ;;  %v5596_v13 = vcombine.low %v2299_v0, %v2309_v56  ;;  %4947 = vmatmul.mubr.bf16.gmra.mrb[100].mxu1 %v6524_v29  ;;  %v3070_v22 = vor.u32 %v3069_v10, %v3066_v59  ;;  %v2314_v23 = vshll.u32 %v1968_v53, 16  ;;  %v2320_v27 = vshll.u32 %v1969_v60, 16  ;;  %v2892_v53 = vld [vmem:[#allocation2 + $0x6c] sm:$0xf] }
 0x192   : > { %v7475_v61 = vpop.f32.mrb[9].mxu1  ;;  %v3079_v63 = vrot.slane %v3077_v11, 4  ;;  %v3085_v21 = vrot.slane %v3083_v12, 5  ;;  %v2313_v35 = vrot.slane %v2311_v4, 4  ;;  %v2324_v40 = vshrl.u32 %v1969_v60, 16 }
 0x193   : > { %v7481_v25 = vpop.f32.mrb[10].mxu1  ;;  %4850 = vmatmul.mubr.bf16.gmra.mrb[100].mxu0 %v5596_v13  ;;  %v3071_v34 = vrot.slane %v3070_v22, 4  ;;  %v2316_v36 = vrot.slane %v2314_v23, 5  ;;  %v2322_v28 = vrot.slane %v2320_v27, 5  ;;  %v2330_v31 = vshll.u32 %v1970_v14, 16 }
 0x194   : > { %v7489_v51 = vpop.f32.mrb[11].mxu1  ;;  %4857 = vmatprep.mubr.bf16.mxu0 %v5629_v2  ;;  %v3080_v43 = vor.u32 %v3079_v63, %v3075_v5  ;;  %v2326_v45 = vrot.slane %v2324_v40, 4  ;;  %v7501_v29 = vadd.f32 %v7379_v48, %v7377_v32  ;;  %v7505_v50 = vadd.f32 %v7405_v62, %v7397_v42  ;;  %v2893_v0 = vld [vmem:[#allocation2 + $0x70] sm:$0xf]  ;;  %v6525_v42 = vld [vmem:[#allocation2 + $0x60] sm:$0xff]  }
 0x195   : > { %v7497_v17 = vpop.f32.mrb[12].mxu0  ;;  %v3076_v55 = vsel %vm6890_vm6, %v3071_v34, %v3075_v5  ;;  %v2317_v58 = vor.u32 %v2316_v36, %v2313_v35  ;;  %v2332_v59 = vrot.slane %v2330_v31, 5  ;;  %v7513_v60 = vadd.f32 %v7389_v19, %v7387_v7  ;;  %v2894_v5 = vld [vmem:[#allocation2 + $0x74] sm:$0x1]  ;;  %v1971_v14 = vld [vmem:[#allocation2 + $0xc0] sm:$0xf] }
 0x196   : > { %8321 = vst [vmem:[#allocation16_spill] sm:$0xff] %v7505_v50  ;;  %v7515_v32 = vpop.f32.mrb[13].mxu0  ;;  %v3081_v48 = vrot.slane %v3080_v43, 4  ;;  %v2327_v2 = vor.u32 %v2326_v45, %v2322_v28  ;;  %v7519_v62 = vadd.f32 %v7411_v15, %v7407_v9  ;;  %v830_v10 = vsel %vm6896_vm8, %v665_v26, %v829_v33  ;;  %v1972_v27 = vld [vmem:[#allocation2 + $0xc4] sm:$0xf] }
 0x197   : > { %v2318_v7 = vrot.slane %v2317_v58, 4  ;;  %831 = vst [vmem:[#allocation2 + $0xc8] sm:$0x1] %v830_v10  ;;  %v5614_v19 = vrot.slane %v2483_v38, 9  ;;  %v2641_v11 = vrot.slane %v2484_v52, 5  ;;  %v3088_v12 = vshrl.u32 %v2892_v53, 16 }
 0x198   : > { %8322 = vst [vmem:[#allocation17_spill] sm:$0xff] %v7519_v62  ;;  %v3086_v4 = vsel %vm6890_vm6, %v3081_v48, %v3085_v21  ;;  %v2328_v13 = vrot.slane %v2327_v2, 4  ;;  %v3091_v9 = vshll.u32 %v2892_v53, 16  ;;  %v3097_v15 = vshll.u32 %v2893_v0, 16  ;;  %v7529_v22 = vpop.f32.mrb[14].mxu0 }
 0x199   : > { %v5653_v20 = vcombine.low %v3076_v55, %v3086_v4  ;;  %v2323_v44 = vsel %vm6890_vm6, %v2318_v7, %v2322_v28  ;;  %v7535_v26 = vsel %vm7029_vm13, %v5614_v19, %v2641_v11  ;;  %v2643_v23 = vrot.slane %v2641_v11, 4  ;;  %v7541_v34 = vpop.f32.mrb[15].mxu0 }
 0x19a   : > { %v2333_v21 = vsel %vm6890_vm6, %v2328_v13, %v2332_v59  ;;  %v3090_v35 = vrot.slane %v3088_v12, 4  ;;  %v3093_v40 = vrot.slane %v3091_v9, 5  ;;  %v3099_v33 = vrot.slane %v3097_v15, 5 }
 0x19b   : > { %4954 = vmatprep.mubr.bf16.mxu1 %v5653_v20  ;;  %v5597_v36 = vcombine.low %v2323_v44, %v2333_v21  ;;  %v3101_v31 = vshrl.u32 %v2893_v0, 16  ;;  %v3107_v28 = vshll.u32 %v2894_v5, 16  ;;  %v2335_v38 = vshrl.u32 %v1971_v14, 16  ;;  %v2895_v0 = vld [vmem:[#allocation2 + $0x78] sm:$0xf] }
 0x19c   : > { %4955 = vmatmul.mubr.bf16.gmra.mrb[104].mxu1 %v6525_v42  ;;  %v3094_v45 = vor.u32 %v3093_v40, %v3090_v35  ;;  %v2338_v52 = vshll.u32 %v1971_v14, 16  ;;  %v2344_v53 = vshll.u32 %v1972_v27, 16  ;;  %v2348_v55 = vshrl.u32 %v1972_v27, 16  ;;  %v3383_v21 = vld [vmem:[#allocation2 + $0x18] sm:$0xe] }
 0x19d   : > { %4858 = vmatmul.mubr.bf16.gmra.mrb[104].mxu0 %v5597_v36  ;;  %v3103_v59 = vrot.slane %v3101_v31, 4  ;;  %v3109_v48 = vrot.slane %v3107_v28, 5  ;;  %v2337_v2 = vrot.slane %v2335_v38, 4  ;;  %v7549_v10 = vadd.f32 %v7433_v49, %v7429_v30  ;;  %v2896_v49 = vld [vmem:[#allocation2 + $0x7c] sm:$0xf]  ;;  %v6527_v36 = vld [vmem:[#allocation2 + $0x6c] sm:$0xff]  }
 0x19e   : > { %v2485_v7 = vld [vmem:[#allocation2 + $0xc8] sm:$0x1]  ;;  %v3095_v19 = vrot.slane %v3094_v45, 4  ;;  %v2340_v11 = vrot.slane %v2338_v52, 5  ;;  %v7555_v12 = vadd.f32 %v7437_v1, %v7431_v47  ;;  %v7559_v14 = vadd.f32 %v7453_v6, %v7443_v57  ;;  %v2897_v1 = vld [vmem:[#allocation2 + $0x80] sm:$0x1] }
 0x19f   : > { %v7507_v41 = vpop.f32.mrb[12].mxu1  ;;  %v1973_v42 = vld [vmem:[#allocation2 + $0xc8] sm:$0x1]  ;;  %v2644_v4 = vrot.slane %v2485_v7, 5  ;;  %v3104_v13 = vor.u32 %v3103_v59, %v3099_v33  ;;  %v2346_v9 = vrot.slane %v2344_v53, 5  ;;  %v2350_v30 = vrot.slane %v2348_v55, 4 }
 0x1a0   : > { %v7525_v56 = vpop.f32.mrb[13].mxu1  ;;  %8323 = vst [vmem:[#allocation18_spill] sm:$0xff] %v7555_v12  ;;  %v3100_v20 = vsel %vm6890_vm6, %v3095_v19, %v3099_v33  ;;  %v2341_v44 = vor.u32 %v2340_v11, %v2337_v2  ;;  %v2354_v27 = vshll.u32 %v1973_v42, 16  ;;  %v7567_v47 = vadd.f32 %v7455_v46, %v7447_v24  ;;  %v3384_v28 = vld [vmem:[#allocation2 + $0x1c] sm:$0xf] }
 0x1a1   : > { %v7537_v63 = vpop.f32.mrb[14].mxu1  ;;  %v2645_v6 = vsel %vm7029_vm13, %v2643_v23, %v2644_v4  ;;  %v3105_v35 = vrot.slane %v3104_v13, 4  ;;  %v2351_v40 = vor.u32 %v2350_v30, %v2346_v9  ;;  %v3112_v31 = vshrl.u32 %v2895_v0, 16  ;;  %v3385_v2 = vld [vmem:[#allocation2 + $0x20] sm:$0x1] }
 0x1a2   : > { %v7543_v43 = vpop.f32.mrb[15].mxu1  ;;  %8324 = vst [vmem:[#allocation19_spill] sm:$0xff] %v7567_v47  ;;  %v5630_v33 = vcombine.low %v7535_v26, %v2645_v6  ;;  %v2342_v38 = vrot.slane %v2341_v44, 4  ;;  %v2356_v45 = vrot.slane %v2354_v27, 5  ;;  %v3115_v52 = vshll.u32 %v2895_v0, 16 }
 0x1a3   : > { %v3110_v24 = vsel %vm6890_vm6, %v3105_v35, %v3109_v48  ;;  %v2352_v46 = vrot.slane %v2351_v40, 4  ;;  %v3114_v55 = vrot.slane %v3112_v31, 4  ;;  %v3121_v59 = vshll.u32 %v2896_v49, 16  ;;  %v3386_v11 = vld [vmem:[#allocation2 + $0x24] sm:$0xe] }
 0x1a4   : > { %4865 = vmatprep.mubr.bf16.mxu0 %v5630_v33  ;;  %v5654_v7 = vcombine.low %v3100_v20, %v3110_v24  ;;  %v2347_v19 = vsel %vm6890_vm6, %v2342_v38, %v2346_v9  ;;  %v3117_v26 = vrot.slane %v3115_v52, 5  ;;  %v3125_v42 = vshrl.u32 %v2896_v49, 16  ;;  %v3387_v0 = vld [vmem:[#allocation2 + $0x28] sm:$0xf]  ;;  %v3388_v9 = vld [vmem:[#allocation2 + $0x2c] sm:$0x1] }
 0x1a5   : > { %v2357_v4 = vsel %vm6890_vm6, %v2352_v46, %v2356_v45  ;;  %v3123_v13 = vrot.slane %v3121_v59, 5  ;;  %v3131_v48 = vshll.u32 %v2897_v1, 16  ;;  %v5663_v30 = vrot.slane %v3383_v21, 9  ;;  %v2898_v52 = vld [vmem:[#allocation2 + $0x84] sm:$0xf] }
 0x1a6   : > { %4962 = vmatprep.mubr.bf16.mxu1 %v5654_v7  ;;  %v5598_v6 = vcombine.low %v2347_v19, %v2357_v4  ;;  %v3118_v20 = vor.u32 %v3117_v26, %v3114_v55  ;;  %v3127_v35 = vrot.slane %v3125_v42, 4  ;;  %v3481_v40 = vrot.slane %v3384_v28, 5  ;;  %v2899_v46 = vld [vmem:[#allocation2 + $0x88] sm:$0xf]  ;;  %v2900_v59 = vld [vmem:[#allocation2 + $0x8c] sm:$0x1] }
 0x1a7   : > { %v7545_v58 = vpop.f32.mrb[16].mxu1  ;;  %4963 = vmatmul.mubr.bf16.gmra.mrb[108].mxu1 %v6527_v36  ;;  %v3133_v49 = vrot.slane %v3131_v48, 5  ;;  %v3484_v31 = vrot.slane %v3385_v2, 5  ;;  %v5664_v33 = vrot.slane %v3386_v11, 9  ;;  %v3488_v38 = vrot.slane %v3387_v0, 5  ;;  %v6528_v11 = vld [vmem:[#allocation2 + $0x78] sm:$0xff]  }
 0x1a8   : > { %v7551_v5 = vpop.f32.mrb[17].mxu1  ;;  %4866 = vmatmul.mubr.bf16.gmra.mrb[108].mxu0 %v5598_v6  ;;  %v3119_v45 = vrot.slane %v3118_v20, 4  ;;  %v3128_v1 = vor.u32 %v3127_v35, %v3123_v13  ;;  %v3482_v21 = vsel %vm7029_vm13, %v5663_v30, %v3481_v40  ;;  %v3483_v24 = vrot.slane %v3481_v40, 4  ;;  %v3389_v2 = vld [vmem:[#allocation2 + $0x30] sm:$0xe] }
 0x1a9   : > { %v7578_v23 = vpop.f32.mrb[18].mxu1  ;;  %v3489_v55 = vsel %vm7029_vm13, %v5664_v33, %v3488_v38  ;;  %v3490_v28 = vrot.slane %v3488_v38, 4  ;;  %v3491_v7 = vrot.slane %v3388_v9, 5  ;;  %v7594_v36 = vadd.f32 %v7461_v16, %v7459_v8  ;;  %v3390_v4 = vld [vmem:[#allocation2 + $0x34] sm:$0xf] }
 0x1aa   : > { %v7561_v15 = vpop.f32.mrb[16].mxu0  ;;  %v7586_v27 = vpop.f32.mrb[19].mxu1  ;;  %v3124_v19 = vsel %vm6890_vm6, %v3119_v45, %v3123_v13  ;;  %v3129_v26 = vrot.slane %v3128_v1, 4  ;;  %v3485_v42 = vsel %vm7029_vm13, %v3483_v24, %v3484_v31  ;;  %v7602_v0 = vadd.f32 %v7475_v61, %v7473_v54  ;;  %v3391_v6 = vld [vmem:[#allocation2 + $0x38] sm:$0x1] }
 0x1ab   : > { %v7569_v57 = vpop.f32.mrb[17].mxu0  ;;  %v5679_v30 = vcombine.low %v3482_v21, %v3485_v42  ;;  %v3492_v8 = vsel %vm7029_vm13, %v3490_v28, %v3491_v7  ;;  %v7610_v16 = vadd.f32 %v7483_v39, %v7477_v18  ;;  %v7614_v13 = vadd.f32 %v7489_v51, %v7481_v25  ;;  %v3392_v20 = vld [vmem:[#allocation2 + $0x3c] sm:$0xe]  ;;  %v3393_v33 = vld [vmem:[#allocation2 + $0x40] sm:$0xf] }
 0x1ac   : > { %v7574_v53 = vpop.f32.mrb[18].mxu0  ;;  %8325 = vst [vmem:[#allocation20_spill] sm:$0xff] %v7602_v0  ;;  %v3134_v61 = vsel %vm6890_vm6, %v3129_v26, %v3133_v49  ;;  %v5680_v40 = vcombine.low %v3489_v55, %v3492_v8  ;;  %v3136_v9 = vshrl.u32 %v2898_v52, 16  ;;  %v3139_v31 = vshll.u32 %v2898_v52, 16  ;;  %v3394_v38 = vld [vmem:[#allocation2 + $0x44] sm:$0x1] }
 0x1ad   : > { %v7584_v44 = vpop.f32.mrb[19].mxu0  ;;  %8326 = vst [vmem:[#allocation21_spill] sm:$0xff] %v7614_v13  ;;  %v5655_v25 = vcombine.low %v3124_v19, %v3134_v61  ;;  %6296 = vmatprep.mubr.bf16.mxu0 %v5679_v30  ;;  %v3145_v51 = vshll.u32 %v2899_v46, 16  ;;  %v3149_v45 = vshrl.u32 %v2899_v46, 16  ;;  %v3155_v1 = vshll.u32 %v2900_v59, 16 }
 0x1ae   : > { %v3138_v28 = vrot.slane %v3136_v9, 4  ;;  %v3141_v49 = vrot.slane %v3139_v31, 5  ;;  %v5665_v55 = vrot.slane %v3389_v2, 9  ;;  %v3495_v7 = vrot.slane %v3390_v4, 5  ;;  %v2901_v4 = vld [vmem:[#allocation2 + $0x90] sm:$0xf] }
 0x1af   : > { %v7616_v35 = vpop.f32.mrb[20].mxu1  ;;  %4970 = vmatprep.mubr.bf16.mxu1 %v5655_v25  ;;  %v3147_v26 = vrot.slane %v3145_v51, 5  ;;  %v3151_v42 = vrot.slane %v3149_v45, 4  ;;  %v3157_v8 = vrot.slane %v3155_v1, 5  ;;  %v3498_v13 = vrot.slane %v3391_v6, 5  ;;  %v6529_v45 = vld [vmem:[#allocation2 + $0x84] sm:$0xff]  }
 0x1b0   : > { %v7622_v18 = vpop.f32.mrb[21].mxu1  ;;  %4971 = vmatmul.mubr.bf16.gmra.mrb[112].mxu1 %v6528_v11  ;;  %6297 = vmatmul.mubr.bf16.vlgmr.msra.gmra.mrb[112].mxu0 %v5680_v40  ;;  %v3142_v19 = vor.u32 %v3141_v49, %v3138_v28  ;;  %v3496_v46 = vsel %vm7029_vm13, %v5665_v55, %v3495_v7  ;;  %v3497_v59 = vrot.slane %v3495_v7, 4  ;;  %v5666_v30 = vrot.slane %v3392_v20, 9  ;;  %v2902_v25 = vld [vmem:[#allocation2 + $0x94] sm:$0xf] }
 0x1b1   : > { %v7626_v21 = vpop.f32.mrb[22].mxu1  ;;  %v3152_v61 = vor.u32 %v3151_v42, %v3147_v26  ;;  %v3502_v9 = vrot.slane %v3393_v33, 5  ;;  %v3505_v31 = vrot.slane %v3394_v38, 5  ;;  %v7636_v2 = vadd.f32 %v7515_v32, %v7497_v17  ;;  %v2903_v40 = vld [vmem:[#allocation2 + $0x98] sm:$0x1] }
 0x1b2   : > { %v7604_v48 = vpop.f32.mrb[20].mxu0  ;;  %v7630_v52 = vpop.f32.mrb[23].mxu1  ;;  %v3143_v51 = vrot.slane %v3142_v19, 4  ;;  %v3499_v11 = vsel %vm7029_vm13, %v3497_v59, %v3498_v13  ;;  %v7642_v6 = vadd.f32 %v7525_v56, %v7507_v41  ;;  %v7646_v20 = vadd.f32 %v7541_v34, %v7529_v22  ;;  %v3395_v33 = vld [vmem:[#allocation2 + $0x48] sm:$0xe] }
 0x1b3   : > { %v7618_v54 = vpop.f32.mrb[21].mxu0  ;;  %v3153_v17 = vrot.slane %v3152_v61, 4  ;;  %v5681_v32 = vcombine.low %v3496_v46, %v3499_v11  ;;  %v3503_v1 = vsel %vm7029_vm13, %v5666_v30, %v3502_v9  ;;  %v3504_v28 = vrot.slane %v3502_v9, 4  ;;  %v3396_v13 = vld [vmem:[#allocation2 + $0x4c] sm:$0xf] }
 0x1b4   : > { %v7624_v39 = vpop.f32.mrb[22].mxu0  ;;  %8327 = vst [vmem:[#allocation22_spill] sm:$0xff] %v7642_v6  ;;  %v3397_v49 = vld [vmem:[#allocation2 + $0x50] sm:$0x1]  ;;  %v3148_v41 = vsel %vm6890_vm6, %v3143_v51, %v3147_v26  ;;  %v7656_v56 = vadd.f32 %v7543_v43, %v7537_v63  ;;  %v3160_v22 = vshrl.u32 %v2901_v4, 16  ;;  %v3163_v34 = vshll.u32 %v2901_v4, 16 }
 0x1b5   : > { %v7628_v24 = vpop.f32.mrb[23].mxu0  ;;  %v3398_v55 = vld [vmem:[#allocation2 + $0x54] sm:$0xe]  ;;  %v3158_v19 = vsel %vm6890_vm6, %v3153_v17, %v3157_v8  ;;  %6300 = vmatprep.mubr.bf16.mxu0 %v5681_v32  ;;  %v3506_v46 = vsel %vm7029_vm13, %v3504_v28, %v3505_v31  ;;  %v3169_v59 = vshll.u32 %v2902_v25, 16  ;;  %v3173_v26 = vshrl.u32 %v2902_v25, 16 }
 0x1b6   : > { %8328 = vst [vmem:[#allocation23_spill] sm:$0xff] %v7656_v56  ;;  %v3399_v30 = vld [vmem:[#allocation2 + $0x58] sm:$0xf]  ;;  %v5656_v43 = vcombine.low %v3148_v41, %v3158_v19  ;;  %v5682_v9 = vcombine.low %v3503_v1, %v3506_v46  ;;  %v3162_v4 = vrot.slane %v3160_v22, 4  ;;  %v3165_v51 = vrot.slane %v3163_v34, 5 }
 0x1b7   : > { %v7658_v7 = vpop.f32.mrb[24].mxu1  ;;  %v3400_v11 = vld [vmem:[#allocation2 + $0x5c] sm:$0x1]  ;;  %v3171_v8 = vrot.slane %v3169_v59, 5  ;;  %v3175_v17 = vrot.slane %v3173_v26, 4  ;;  %v3179_v32 = vshll.u32 %v2903_v40, 16 }
 0x1b8   : > { %v7666_v61 = vpop.f32.mrb[25].mxu1  ;;  %v5667_v31 = vrot.slane %v3395_v33, 9  ;;  %4978 = vmatprep.mubr.bf16.mxu1 %v5656_v43  ;;  %6301 = vmatmul.mubr.bf16.gmra.mrb[116].mxu0 %v5682_v9  ;;  %v3166_v25 = vor.u32 %v3165_v51, %v3162_v4  ;;  %v3509_v0 = vrot.slane %v3396_v13, 5  ;;  %v3512_v47 = vrot.slane %v3397_v49, 5  ;;  %v2904_v12 = vld [vmem:[#allocation2 + $0x9c] sm:$0xf] }
 0x1b9   : > { %v7670_v56 = vpop.f32.mrb[26].mxu1  ;;  %v5668_v41 = vrot.slane %v3398_v55, 9  ;;  %4979 = vmatmul.mubr.bf16.gmra.mrb[116].mxu1 %v6529_v45  ;;  %v3176_v22 = vor.u32 %v3175_v17, %v3171_v8  ;;  %v3181_v34 = vrot.slane %v3179_v32, 5  ;;  %v3516_v19 = vrot.slane %v3399_v30, 5  ;;  %v2905_v49 = vld [vmem:[#allocation2 + $0xa0] sm:$0xf] }
 0x1ba   : > { %v7674_v28 = vpop.f32.mrb[27].mxu1  ;;  %v3519_v46 = vrot.slane %v3400_v11, 5  ;;  %v3167_v40 = vrot.slane %v3166_v25, 4  ;;  %v3510_v33 = vsel %vm7029_vm13, %v5667_v31, %v3509_v0  ;;  %v3511_v26 = vrot.slane %v3509_v0, 4  ;;  %v2906_v55 = vld [vmem:[#allocation2 + $0xa4] sm:$0x1] }
 0x1bb   : > { %v7648_v38 = vpop.f32.mrb[24].mxu0  ;;  %v7684_v13 = vadd.f32 %v7569_v57, %v7561_v15  ;;  %v3177_v43 = vrot.slane %v3176_v22, 4  ;;  %v6530_v45 = vld [vmem:[#allocation2 + $0x90] sm:$0xff]   ;;  %v3517_v30 = vsel %vm7029_vm13, %v5668_v41, %v3516_v19  ;;  %v3518_v9 = vrot.slane %v3516_v19, 4  ;;  %v3401_v11 = vld [vmem:[#allocation2 + $0x60] sm:$0xe] }
 0x1bc   : > { %v7660_v42 = vpop.f32.mrb[25].mxu0  ;;  %v5938_v4 = vadd.f32 %v7551_v5, %v7545_v58  ;;  %v3172_v51 = vsel %vm6890_vm6, %v3167_v40, %v3171_v8  ;;  %v3513_v0 = vsel %vm7029_vm13, %v3511_v26, %v3512_v47  ;;  %v7696_v15 = vadd.f32 %v7584_v44, %v7574_v53  ;;  %v3402_v17 = vld [vmem:[#allocation2 + $0x64] sm:$0xf]  ;;  %v3403_v32 = vld [vmem:[#allocation2 + $0x68] sm:$0x1] }
 0x1bd   : > { %v7668_v63 = vpop.f32.mrb[26].mxu0  ;;  %v5941_v57 = vadd.f32 %v7586_v27, %v7578_v23  ;;  %v3182_v31 = vsel %vm6890_vm6, %v3177_v43, %v3181_v34  ;;  %v5683_v58 = vcombine.low %v3510_v33, %v3513_v0  ;;  %v3520_v5 = vsel %vm7029_vm13, %v3518_v9, %v3519_v46  ;;  %v3404_v47 = vld [vmem:[#allocation2 + $0x6c] sm:$0xe]  ;;  %v3405_v25 = vld [vmem:[#allocation2 + $0x70] sm:$0xf] }
 0x1be   : > { %v7672_v6 = vpop.f32.mrb[27].mxu0  ;;  %v7705_v8 = vadd.f32 %v5938_v4, %v7501_v29  ;;  %v5657_v23 = vcombine.low %v3172_v51, %v3182_v31  ;;  %v5684_v27 = vcombine.low %v3517_v30, %v3520_v5  ;;  %v3184_v22 = vshrl.u32 %v2904_v12, 16  ;;  %v3406_v34 = vld [vmem:[#allocation2 + $0x74] sm:$0x1] }
 0x1bf   : > { %v7676_v1 = vpop.f32.mrb[28].mxu1  ;;  %v7712_v41 = vadd.f32 %v5941_v57, %v7513_v60  ;;  %6304 = vmatprep.mubr.bf16.mxu0 %v5683_v58  ;;  %v3187_v29 = vshll.u32 %v2904_v12, 16  ;;  %v3193_v46 = vshll.u32 %v2905_v49, 16  ;;  %v3197_v33 = vshrl.u32 %v2905_v49, 16 }
 0x1c0   : > { %v7678_v59 = vpop.f32.mrb[29].mxu1  ;;  %v3203_v26 = vshll.u32 %v2906_v55, 16  ;;  %4986 = vmatprep.mubr.bf16.mxu1 %v5657_v23  ;;  %6305 = vmatmul.mubr.bf16.gmra.mrb[120].mxu0 %v5684_v27  ;;  %v3186_v30 = vrot.slane %v3184_v22, 4  ;;  %v5669_v60 = vrot.slane %v3401_v11, 9  ;;  %v3523_v4 = vrot.slane %v3402_v17, 5 }
 0x1c1   : > { %v7709_v44 = vpop.f32.mrb[30].mxu1  ;;  %8329 = vst [vmem:[#allocation24_spill] sm:$0xff] %v7712_v41  ;;  %v3526_v51 = vrot.slane %v3403_v32, 5  ;;  %4987 = vmatmul.mubr.bf16.gmra.mrb[120].mxu1 %v6530_v45  ;;  %v3189_v31 = vrot.slane %v3187_v29, 5  ;;  %v3195_v12 = vrot.slane %v3193_v46, 5  ;;  %v3199_v58 = vrot.slane %v3197_v33, 4 }
 0x1c2   : > { %v7716_v40 = vpop.f32.mrb[31].mxu1  ;;  %v3205_v49 = vrot.slane %v3203_v26, 5  ;;  %v3524_v55 = vsel %vm7029_vm13, %v5669_v60, %v3523_v4  ;;  %v3525_v5 = vrot.slane %v3523_v4, 4  ;;  %v5670_v62 = vrot.slane %v3404_v47, 9  ;;  %v2907_v45 = vld [vmem:[#allocation2 + $0xa8] sm:$0xf] }
 0x1c3   : > { %v3530_v23 = vrot.slane %v3405_v25, 5  ;;  %v3190_v11 = vor.u32 %v3189_v31, %v3186_v30  ;;  %v3200_v17 = vor.u32 %v3199_v58, %v3195_v12  ;;  %v3533_v32 = vrot.slane %v3406_v34, 5  ;;  %v6531_v60 = vld [vmem:[#allocation2 + $0x9c] sm:$0xff]   ;;  %v2909_v4 = vld [vmem:[#allocation2 + $0xb0] sm:$0x1] }
 0x1c4   : > { %v7732_v22 = vadd.f32 %v7618_v54, %v7604_v48  ;;  %v3527_v46 = vsel %vm7029_vm13, %v3525_v5, %v3526_v51  ;;  %v5944_v25 = vadd.f32 %v7622_v18, %v7616_v35  ;;  %v7744_v48 = vadd.f32 %v7628_v24, %v7624_v39  ;;  %v2908_v54 = vld [vmem:[#allocation2 + $0xac] sm:$0xf]  ;;  %v3407_v18 = vld [vmem:[#allocation2 + $0x78] sm:$0xe]  ;;  %v3408_v58 = vld [vmem:[#allocation2 + $0x7c] sm:$0xf] }
 0x1c5   : > { %v3531_v33 = vsel %vm7029_vm13, %v5670_v62, %v3530_v23  ;;  %v3532_v47 = vrot.slane %v3530_v23, 4  ;;  %v3191_v26 = vrot.slane %v3190_v11, 4  ;;  %v3201_v30 = vrot.slane %v3200_v17, 4  ;;  %v3409_v11 = vld [vmem:[#allocation2 + $0x80] sm:$0x1] }
 0x1c6   : > { %v5685_v34 = vcombine.low %v3524_v55, %v3527_v46  ;;  %v7749_v31 = vadd.f32 %v5944_v25, %v7549_v10  ;;  %v5947_v62 = vadd.f32 %v7630_v52, %v7626_v21  ;;  %v3208_v35 = vshrl.u32 %v2907_v45, 16  ;;  %v3410_v10 = vld [vmem:[#allocation2 + $0x84] sm:$0xe]  ;;  %v3412_v25 = vld [vmem:[#allocation2 + $0x8c] sm:$0x1] }
 0x1c7   : > { %v7707_v53 = vpop.f32.mrb[28].mxu0  ;;  %v7720_v9 = vpop.f32.mrb[32].mxu1  ;;  %v3534_v51 = vsel %vm7029_vm13, %v3532_v47, %v3533_v32  ;;  %v3196_v39 = vsel %vm6890_vm6, %v3191_v26, %v3195_v12  ;;  %v3206_v24 = vsel %vm6890_vm6, %v3201_v30, %v3205_v49  ;;  %v3211_v23 = vshll.u32 %v2907_v45, 16  ;;  %v3411_v47 = vld [vmem:[#allocation2 + $0x88] sm:$0xf] }
 0x1c8   : > { %v7714_v19 = vpop.f32.mrb[29].mxu0  ;;  %v7724_v57 = vpop.f32.mrb[33].mxu1  ;;  %8330 = vst [vmem:[#allocation25_spill] sm:$0xff] %v7749_v31  ;;  %6308 = vmatprep.mubr.bf16.mxu0 %v5685_v34  ;;  %v5686_v5 = vcombine.low %v3531_v33, %v3534_v51  ;;  %v5658_v32 = vcombine.low %v3196_v39, %v3206_v24  ;;  %v7762_v21 = vadd.f32 %v5947_v62, %v7559_v14  ;;  %v3210_v52 = vrot.slane %v3208_v35, 4 }
 0x1c9   : > { %v7718_v43 = vpop.f32.mrb[30].mxu0  ;;  %v7728_v27 = vpop.f32.mrb[34].mxu1  ;;  %v3217_v46 = vshll.u32 %v2908_v54, 16  ;;  %v3213_v12 = vrot.slane %v3211_v23, 5  ;;  %v3221_v26 = vshrl.u32 %v2908_v54, 16  ;;  %v3227_v50 = vshll.u32 %v2909_v4, 16 }
 0x1ca   : > { %v7722_v0 = vpop.f32.mrb[31].mxu0  ;;  %v7734_v29 = vpop.f32.mrb[35].mxu1  ;;  %8331 = vst [vmem:[#allocation26_spill] sm:$0xff] %v7762_v21  ;;  %6309 = vmatmul.mubr.bf16.gmra.mrb[124].mxu0 %v5686_v5  ;;  %v5671_v49 = vrot.slane %v3407_v18, 9  ;;  %4994 = vmatprep.mubr.bf16.mxu1 %v5658_v32  ;;  %v3537_v34 = vrot.slane %v3408_v58, 5  ;;  %v3540_v51 = vrot.slane %v3409_v11, 5  ;;  %v7778_v58 = vadd.f32 %v7660_v42, %v7648_v38 }
 0x1cb   : > { %v3219_v33 = vrot.slane %v3217_v46, 5  ;;  %v5672_v39 = vrot.slane %v3410_v10, 9  ;;  %4995 = vmatmul.mubr.bf16.gmra.mrb[124].mxu1 %v6531_v60  ;;  %v3214_v35 = vor.u32 %v3213_v12, %v3210_v52  ;;  %v3223_v24 = vrot.slane %v3221_v26, 4  ;;  %v2910_v52 = vld [vmem:[#allocation2 + $0xb4] sm:$0xf] }
 0x1cc   : > { %v3229_v5 = vrot.slane %v3227_v50, 5  ;;  %v3544_v54 = vrot.slane %v3411_v47, 5  ;;  %v3538_v18 = vsel %vm7029_vm13, %v5671_v49, %v3537_v34  ;;  %v3539_v23 = vrot.slane %v3537_v34, 4  ;;  %v2911_v42 = vld [vmem:[#allocation2 + $0xb8] sm:$0xf] }
 0x1cd   : > { %v3547_v32 = vrot.slane %v3412_v25, 5  ;;  %v3215_v10 = vrot.slane %v3214_v35, 4  ;;  %v3224_v46 = vor.u32 %v3223_v24, %v3219_v33  ;;  %v5950_v12 = vadd.f32 %v7666_v61, %v7658_v7  ;;  %v2912_v26 = vld [vmem:[#allocation2 + $0xbc] sm:$0x1]  ;;  %v3413_v61 = vld [vmem:[#allocation2 + $0x90] sm:$0xe] }
 0x1ce   : > { %v3545_v60 = vsel %vm7029_vm13, %v5672_v39, %v3544_v54  ;;  %v3546_v50 = vrot.slane %v3544_v54, 4  ;;  %v3541_v47 = vsel %vm7029_vm13, %v3539_v23, %v3540_v51  ;;  %v7790_v25 = vadd.f32 %v7672_v6, %v7668_v63  ;;  %v6532_v51 = vld [vmem:[#allocation2 + $0xa8] sm:$0xff]   ;;  %v3414_v24 = vld [vmem:[#allocation2 + $0x94] sm:$0xf]  ;;  %v3415_v23 = vld [vmem:[#allocation2 + $0x98] sm:$0x1] }
 0x1cf   : > { %v7753_v55 = vpop.f32.mrb[36].mxu1  ;;  %v5953_v38 = vadd.f32 %v7674_v28, %v7670_v56  ;;  %v3220_v34 = vsel %vm6890_vm6, %v3215_v10, %v3219_v33  ;;  %v3225_v39 = vrot.slane %v3224_v46, 4  ;;  %v5687_v35 = vcombine.low %v3538_v18, %v3541_v47  ;;  %v3416_v33 = vld [vmem:[#allocation2 + $0x9c] sm:$0xe]  ;;  %v3417_v47 = vld [vmem:[#allocation2 + $0xa0] sm:$0xf] }
 0x1d0   : > { %v7759_v17 = vpop.f32.mrb[37].mxu1  ;;  %v3548_v7 = vsel %vm7029_vm13, %v3546_v50, %v3547_v32  ;;  %v7803_v56 = vadd.f32 %v5950_v12, %v7594_v36  ;;  %v3232_v54 = vshrl.u32 %v2910_v52, 16  ;;  %v3235_v32 = vshll.u32 %v2910_v52, 16 }
 0x1d1   : > { %v7766_v45 = vpop.f32.mrb[38].mxu1  ;;  %v5688_v63 = vcombine.low %v3545_v60, %v3548_v7  ;;  %v7806_v28 = vadd.f32 %v5953_v38, %v7610_v16  ;;  %v3230_v18 = vsel %vm6890_vm6, %v3225_v39, %v3229_v5  ;;  %6312 = vmatprep.mubr.bf16.mxu0 %v5687_v35  ;;  %v3241_v46 = vshll.u32 %v2911_v42, 16  ;;  %v3418_v7 = vld [vmem:[#allocation2 + $0xa4] sm:$0x1] }
 0x1d2   : > { %v7764_v30 = vpop.f32.mrb[32].mxu0  ;;  %v7770_v62 = vpop.f32.mrb[39].mxu1  ;;  %8332 = vst [vmem:[#allocation27_spill] sm:$0xff] %v7803_v56  ;;  %v3245_v50 = vshrl.u32 %v2911_v42, 16  ;;  %v5659_v36 = vcombine.low %v3220_v34, %v3230_v18  ;;  %v3234_v12 = vrot.slane %v3232_v54, 4  ;;  %v3251_v16 = vshll.u32 %v2912_v26, 16 }
 0x1d3   : > { %v7768_v14 = vpop.f32.mrb[33].mxu0  ;;  %8333 = vst [vmem:[#allocation28_spill] sm:$0xff] %v7806_v28  ;;  %6313 = vmatmul.mubr.bf16.gmra.mrb[128].mxu0 %v5688_v63  ;;  %v5673_v38 = vrot.slane %v3413_v61, 9  ;;  %v3237_v28 = vrot.slane %v3235_v32, 5  ;;  %v3243_v56 = vrot.slane %v3241_v46, 5  ;;  %v3551_v31 = vrot.slane %v3414_v24, 5 }
 0x1d4   : > { %v7772_v4 = vpop.f32.mrb[34].mxu0  ;;  %v3247_v21 = vrot.slane %v3245_v50, 4  ;;  %5002 = vmatprep.mubr.bf16.mxu1 %v5659_v36  ;;  %v3253_v5 = vrot.slane %v3251_v16, 5  ;;  %v3554_v52 = vrot.slane %v3415_v23, 5  ;;  %v5674_v39 = vrot.slane %v3416_v33, 9  ;;  %v6533_v46 = vld [vmem:[#allocation2 + $0xb4] sm:$0xff]  }
 0x1d5   : > { %v7780_v11 = vpop.f32.mrb[35].mxu0  ;;  %v3558_v42 = vrot.slane %v3417_v47, 5  ;;  %5003 = vmatmul.mubr.bf16.gmra.mrb[128].mxu1 %v6532_v51  ;;  %v3238_v34 = vor.u32 %v3237_v28, %v3234_v12  ;;  %v3552_v26 = vsel %vm7029_vm13, %v5673_v38, %v3551_v31  ;;  %v3553_v61 = vrot.slane %v3551_v31, 4  ;;  %v2913_v50 = vld [vmem:[#allocation2 + $0xc0] sm:$0xf] }
 0x1d6   : > { %v3248_v63 = vor.u32 %v3247_v21, %v3243_v56  ;;  %v3561_v32 = vrot.slane %v3418_v7, 5  ;;  %v7826_v23 = vadd.f32 %v7714_v19, %v7707_v53  ;;  %v5956_v31 = vadd.f32 %v7678_v59, %v7676_v1  ;;  %v2914_v47 = vld [vmem:[#allocation2 + $0xc4] sm:$0xf]  ;;  %v2915_v16 = vld [vmem:[#allocation2 + $0xc8] sm:$0x1] }
 0x1d7   : > { %v7794_v49 = vpop.f32.mrb[40].mxu1  ;;  %v3559_v24 = vsel %vm7029_vm13, %v5674_v39, %v3558_v42  ;;  %v3560_v18 = vrot.slane %v3558_v42, 4  ;;  %v3239_v51 = vrot.slane %v3238_v34, 4  ;;  %v3555_v21 = vsel %vm7029_vm13, %v3553_v61, %v3554_v52  ;;  %v3419_v38 = vld [vmem:[#allocation2 + $0xa8] sm:$0xe] }
 0x1d8   : > { %v7800_v6 = vpop.f32.mrb[41].mxu1  ;;  %v3249_v28 = vrot.slane %v3248_v63, 4  ;;  %v5689_v36 = vcombine.low %v3552_v26, %v3555_v21  ;;  %v7838_v53 = vadd.f32 %v7722_v0, %v7718_v43  ;;  %v5959_v19 = vadd.f32 %v7716_v40, %v7709_v44  ;;  %v3420_v7 = vld [vmem:[#allocation2 + $0xac] sm:$0xf]  ;;  %v3421_v42 = vld [vmem:[#allocation2 + $0xb0] sm:$0x1] }
 0x1d9   : > { %v7808_v10 = vpop.f32.mrb[42].mxu1  ;;  %v3562_v12 = vsel %vm7029_vm13, %v3560_v18, %v3561_v32  ;;  %v3244_v52 = vsel %vm6890_vm6, %v3239_v51, %v3243_v56  ;;  %v7847_v39 = vadd.f32 %v5956_v31, %v7636_v2  ;;  %v3422_v34 = vld [vmem:[#allocation2 + $0xb4] sm:$0xe]  ;;  %v3423_v43 = vld [vmem:[#allocation2 + $0xb8] sm:$0xf]  ;;  %v3256_v40 = vshrl.u32 %v2913_v50, 16 }
 0x1da   : > { %v7812_v60 = vpop.f32.mrb[43].mxu1  ;;  %v7814_v41 = vpop.f32.mrb[36].mxu0  ;;  %v3254_v1 = vsel %vm6890_vm6, %v3249_v28, %v3253_v5  ;;  %v5690_v59 = vcombine.low %v3559_v24, %v3562_v12  ;;  %6316 = vmatprep.mubr.bf16.mxu0 %v5689_v36  ;;  %v7850_v44 = vadd.f32 %v5959_v19, %v7646_v20  ;;  %v3259_v63 = vshll.u32 %v2913_v50, 16  ;;  %v3424_v26 = vld [vmem:[#allocation2 + $0xbc] sm:$0x1] }
 0x1db   : > { %v7816_v35 = vpop.f32.mrb[37].mxu0  ;;  %8334 = vst [vmem:[#allocation29_spill] sm:$0xff] %v7847_v39  ;;  %v5660_v0 = vcombine.low %v3244_v52, %v3254_v1  ;;  %v3265_v56 = vshll.u32 %v2914_v47, 16  ;;  %v3269_v5 = vshrl.u32 %v2914_v47, 16  ;;  %v3275_v24 = vshll.u32 %v2915_v16, 16 }
 0x1dc   : > { %v7820_v54 = vpop.f32.mrb[38].mxu0  ;;  %8335 = vst [vmem:[#allocation30_spill] sm:$0xff] %v7850_v44  ;;  %6317 = vmatmul.mubr.bf16.gmra.mrb[132].mxu0 %v5690_v59  ;;  %v5675_v18 = vrot.slane %v3419_v38, 9  ;;  %v3258_v32 = vrot.slane %v3256_v40, 4  ;;  %v3261_v51 = vrot.slane %v3259_v63, 5  ;;  %v3565_v28 = vrot.slane %v3420_v7, 5 }
 0x1dd   : > { %v7828_v33 = vpop.f32.mrb[39].mxu0  ;;  %5010 = vmatprep.mubr.bf16.mxu1 %v5660_v0  ;;  %v3568_v21 = vrot.slane %v3421_v42, 5  ;;  %v3267_v20 = vrot.slane %v3265_v56, 5  ;;  %v3271_v50 = vrot.slane %v3269_v5, 4  ;;  %v3277_v36 = vrot.slane %v3275_v24, 5 }
 0x1de   : > { %5011 = vmatmul.mubr.bf16.gmra.mrb[132].mxu1 %v6533_v46  ;;  %v5676_v12 = vrot.slane %v3422_v34, 9  ;;  %v3262_v47 = vor.u32 %v3261_v51, %v3258_v32  ;;  %v3566_v16 = vsel %vm7029_vm13, %v5675_v18, %v3565_v28  ;;  %v3567_v38 = vrot.slane %v3565_v28, 4  ;;  %v2916_v0 = vld [vmem:[#allocation2 + $0xcc] sm:$0xf]  ;;  %v2917_v40 = vld [vmem:[#allocation2 + $0xd0] sm:$0xf] }
 0x1df   : > { %v7852_v61 = vpop.f32.mrb[44].mxu1  ;;  %v3572_v1 = vrot.slane %v3423_v43, 5  ;;  %v3272_v7 = vor.u32 %v3271_v50, %v3267_v20  ;;  %v3575_v42 = vrot.slane %v3424_v26, 5  ;;  %v7868_v46 = vadd.f32 %v7768_v14, %v7764_v30  ;;  %v2918_v26 = vld [vmem:[#allocation2 + $0xd4] sm:$0x1] }
 0x1e0   : > { %v7854_v2 = vpop.f32.mrb[45].mxu1  ;;  %v5962_v34 = vadd.f32 %v7724_v57, %v7720_v9  ;;  %v3263_v56 = vrot.slane %v3262_v47, 4  ;;  %v3569_v5 = vsel %vm7029_vm13, %v3567_v38, %v3568_v21  ;;  %v7885_v9 = vadd.f32 %v7780_v11, %v7772_v4  ;;  %v3425_v57 = vld [vmem:[#allocation2 + $0xc0] sm:$0xe]  ;;  %v3426_v51 = vld [vmem:[#allocation2 + $0xc4] sm:$0xf] }
 0x1e1   : > { %v7856_v31 = vpop.f32.mrb[46].mxu1  ;;  %v3573_v43 = vsel %vm7029_vm13, %v5676_v12, %v3572_v1  ;;  %v3574_v24 = vrot.slane %v3572_v1, 4  ;;  %v3273_v30 = vrot.slane %v3272_v7, 4  ;;  %v5691_v14 = vcombine.low %v3566_v16, %v3569_v5  ;;  %v3427_v47 = vld [vmem:[#allocation2 + $0xc8] sm:$0x1]  ;;  %v6534_v11 = vld [vmem:[#allocation2 + $0xc0] sm:$0xff]  }
 0x1e2   : > { %v7860_v52 = vpop.f32.mrb[47].mxu1  ;;  %v7881_v32 = vadd.f32 %v5962_v34, %v7684_v13  ;;  %v3268_v28 = vsel %vm6890_vm6, %v3263_v56, %v3267_v20  ;;  %v5965_v50 = vadd.f32 %v7734_v29, %v7728_v27  ;;  %v3280_v12 = vshrl.u32 %v2916_v0, 16  ;;  %v3428_v16 = vld [vmem:[#allocation2 + $0xcc] sm:$0xe]  ;;  %v3429_v20 = vld [vmem:[#allocation2 + $0xd0] sm:$0xf] }
 0x1e3   : > { %v3576_v21 = vsel %vm7029_vm13, %v3574_v24, %v3575_v42  ;;  %v3278_v4 = vsel %vm6890_vm6, %v3273_v30, %v3277_v36  ;;  %6320 = vmatprep.mubr.bf16.mxu0 %v5691_v14  ;;  %v3283_v1 = vshll.u32 %v2916_v0, 16  ;;  %v3289_v7 = vshll.u32 %v2917_v40, 16  ;;  %v3430_v5 = vld [vmem:[#allocation2 + $0xd4] sm:$0x1] }
 0x1e4   : > { %v7858_v19 = vpop.f32.mrb[40].mxu0  ;;  %8336 = vst [vmem:[#allocation31_spill] sm:$0xff] %v7881_v32  ;;  %v5692_v38 = vcombine.low %v3573_v43, %v3576_v21  ;;  %v5661_v56 = vcombine.low %v3268_v28, %v3278_v4  ;;  %v7898_v42 = vadd.f32 %v5965_v50, %v7696_v15  ;;  %v3282_v27 = vrot.slane %v3280_v12, 4 }
 0x1e5   : > { %v7864_v59 = vpop.f32.mrb[41].mxu0  ;;  %v3293_v29 = vshrl.u32 %v2917_v40, 16  ;;  %v3285_v32 = vrot.slane %v3283_v1, 5  ;;  %v3291_v44 = vrot.slane %v3289_v7, 5  ;;  %v3299_v39 = vshll.u32 %v2918_v26, 16 }
 0x1e6   : > { %v7872_v63 = vpop.f32.mrb[42].mxu0  ;;  %6321 = vmatmul.mubr.bf16.gmra.mrb[136].mxu0 %v5692_v38  ;;  %v5677_v36 = vrot.slane %v3425_v57, 9  ;;  %5018 = vmatprep.mubr.bf16.mxu1 %v5661_v56  ;;  %v3579_v0 = vrot.slane %v3426_v51, 5  ;;  %v3582_v14 = vrot.slane %v3427_v47, 5  ;;  %v5678_v21 = vrot.slane %v3428_v16, 9 }
 0x1e7   : > { %v7878_v18 = vpop.f32.mrb[43].mxu0  ;;  %v7893_v13 = vpop.f32.mrb[48].mxu1  ;;  %v3295_v43 = vrot.slane %v3293_v29, 4  ;;  %5019 = vmatmul.mubr.bf16.gmra.mrb[136].mxu1 %v6534_v11  ;;  %v3286_v28 = vor.u32 %v3285_v32, %v3282_v27  ;;  %v3301_v4 = vrot.slane %v3299_v39, 5  ;;  %v3586_v15 = vrot.slane %v3429_v20, 5  ;;  %v6535_v27 = vld [vmem:[#allocation2 + $0xcc] sm:$0xff]  }
 0x1e8   : > { %v5985_v34 = vpop.f32.mrb[49].mxu1  ;;  %v3589_v50 = vrot.slane %v3430_v5, 5  ;;  %v3580_v40 = vsel %vm7029_vm13, %v5677_v36, %v3579_v0  ;;  %v3581_v38 = vrot.slane %v3579_v0, 4  ;;  %v5880_v26 = vadd.f32 %v7816_v35, %v7814_v41 }
 0x1e9   : > { %v5987_v24 = vpop.f32.mrb[50].mxu1  ;;  %v3296_v12 = vor.u32 %v3295_v43, %v3291_v44  ;;  %v3287_v57 = vrot.slane %v3286_v28, 4  ;;  %v3587_v1 = vsel %vm7029_vm13, %v5678_v21, %v3586_v15  ;;  %v3588_v51 = vrot.slane %v3586_v15, 4 }
 0x1ea   : > { %v5988_v30 = vpop.f32.mrb[51].mxu1  ;;  %v5968_v47 = vadd.f32 %v7759_v17, %v7753_v55  ;;  %v3583_v39 = vsel %vm7029_vm13, %v3581_v38, %v3582_v14  ;;  %v5883_v16 = vadd.f32 %v7828_v33, %v7820_v54  ;;  %v5971_v11 = vadd.f32 %v7770_v62, %v7766_v45 }
 0x1eb   : > { %v3297_v32 = vrot.slane %v3296_v12, 4  ;;  %v3292_v41 = vsel %vm6890_vm6, %v3287_v57, %v3291_v44  ;;  %v5693_v35 = vcombine.low %v3580_v40, %v3583_v39  ;;  %v3590_v7 = vsel %vm7029_vm13, %v3588_v51, %v3589_v50  ;;  %v8337_v50 = vld [vmem:[#allocation24_spill] sm:$0xff] }
 0x1ec   : > { %v7919_v20 = vadd.f32 %v5968_v47, %v7732_v22  ;;  %v5694_v54 = vcombine.low %v3587_v1, %v3590_v7  ;;  %v7924_v33 = vadd.f32 %v5971_v11, %v7744_v48  ;;  %v5886_v45 = vadd.f32 %v7864_v59, %v7858_v19 }
 0x1ed   : > { %v3302_v56 = vsel %vm6890_vm6, %v3297_v32, %v3301_v4  ;;  %6324 = vmatprep.mubr.bf16.mxu0 %v5693_v35  ;;  %v5974_v22 = vadd.f32 %v7800_v6, %v7794_v49  ;;  %v5889_v29 = vadd.f32 %v7878_v18, %v7872_v63  ;;  %v5977_v37 = vadd.f32 %v7812_v60, %v7808_v10 }
 0x1ee   : > { %v5662_v3 = vcombine.low %v3292_v41, %v3302_v56  ;;  %6325 = vmatmul.mubr.bf16.gmra.mrb[140].mxu0 %v5694_v54  ;;  %v5980_v19 = vadd.f32 %v7854_v2, %v7852_v61  ;;  %v5983_v43 = vadd.f32 %v7860_v52, %v7856_v31  ;;  %v5986_v0 = vadd.f32 %v5985_v34, %v7893_v13 }
 0x1ef   : > { %v5890_v55 = vpop.f32.mrb[44].mxu0  ;;  %v5990_v17 = vpop.f32.mrb[52].mxu1  ;;  %v7940_v6 = vadd.f32 %v5974_v22, %v7778_v58  ;;  %v7943_v10 = vadd.f32 %v5977_v37, %v7790_v25  ;;  %v5989_v63 = vadd.f32 %v5988_v30, %v5987_v24 }
 0x1f0   : > { %v5891_v62 = vpop.f32.mrb[45].mxu0  ;;  %v5991_v44 = vpop.f32.mrb[53].mxu1  ;;  %5026 = vmatprep.mubr.bf16.mxu1 %v5662_v3  ;;  %v7946_v18 = vadd.f32 %v5980_v19, %v7826_v23  ;;  %v7949_v61 = vadd.f32 %v5983_v43, %v7838_v53  ;;  %v7952_v2 = vadd.f32 %v5986_v0, %v7868_v46 }
 0x1f1   : > { %v5893_v5 = vpop.f32.mrb[46].mxu0  ;;  %v5993_v36 = vpop.f32.mrb[54].mxu1  ;;  %v5892_v48 = vadd.f32 %v5891_v62, %v5890_v55  ;;  %5027 = vmatmul.mubr.bf16.gmra.mrb[140].mxu1 %v6535_v27  ;;  %v5992_v31 = vadd.f32 %v5991_v44, %v5990_v17  ;;  %v7955_v52 = vadd.f32 %v5989_v63, %v7885_v9  ;;  %v8339_v55 = vld [vmem:[#allocation26_spill] sm:$0xff] }
 0x1f2   : > { %v5894_v59 = vpop.f32.mrb[47].mxu0  ;;  %v5994_v49 = vpop.f32.mrb[55].mxu1 }
 0x1f3   : > { %v5895_v60 = vadd.f32 %v5894_v59, %v5893_v5  ;;  %v5995_v58 = vadd.f32 %v5994_v49, %v5993_v36  ;;  %v7957_v13 = vadd.f32 %v5992_v31, %v5880_v26  ;;  %v8340_v5 = vld [vmem:[#allocation27_spill] sm:$0xff]  ;;  %v8341_v49 = vld [vmem:[#allocation28_spill] sm:$0xff] }
 0x1f4   : > { %v8342_v31 = vld [vmem:[#allocation16_spill] sm:$0xff] }
 0x1f5   : > { %v7959_v34 = vadd.f32 %v5995_v58, %v5883_v16 }
 0x1f7   : > { %v6048_v25 = vpop.f32.mrb[48].mxu0  ;;  %v5996_v14 = vpop.f32.mrb[56].mxu1 }
 0x1f8   : > { %v6049_v24 = vpop.f32.mrb[49].mxu0  ;;  %v5997_v53 = vpop.f32.mrb[57].mxu1 }
 0x1f9   : > { %v6050_v30 = vadd.f32 %v6049_v24, %v6048_v25  ;;  %v6051_v23 = vpop.f32.mrb[50].mxu0  ;;  %v5998_v4 = vadd.f32 %v5997_v53, %v5996_v14  ;;  %v5999_v15 = vpop.f32.mrb[58].mxu1 }
 0x1fa   : > { %v6052_v21 = vpop.f32.mrb[51].mxu0  ;;  %v6000_v9 = vpop.f32.mrb[59].mxu1 }
 0x1fb   : > { %v7962_v28 = vadd.f32 %v6050_v30, %v7705_v8  ;;  %v6053_v46 = vadd.f32 %v6052_v21, %v6051_v23  ;;  %v7967_v40 = vadd.f32 %v5998_v4, %v5886_v45  ;;  %v6001_v38 = vadd.f32 %v6000_v9, %v5999_v15  ;;  %v8338_v8 = vld [vmem:[#allocation25_spill] sm:$0xff] }
 0x1fc   : > { %v8343_v30 = vld [vmem:[#allocation17_spill] sm:$0xff] }
 0x1fd   : > { %v7965_v12 = vadd.f32 %v6053_v46, %v8337_v50  ;;  %v7969_v57 = vadd.f32 %v6001_v38, %v5889_v29  ;;  %v8344_v4 = vld [vmem:[#allocation29_spill] sm:$0xff] }
 0x1ff   : > { %v6054_v26 = vpop.f32.mrb[52].mxu0 }
 0x200   : > { %v6055_v1 = vpop.f32.mrb[53].mxu0 }
 0x201   : > { %v6056_v51 = vadd.f32 %v6055_v1, %v6054_v26  ;;  %v6057_v47 = vpop.f32.mrb[54].mxu0  ;;  %v6002_v39 = vpop.f32.mrb[60].mxu1  ;;  %v8345_v1 = vld [vmem:[#allocation30_spill] sm:$0xff] }
 0x202   : > { %v6058_v32 = vpop.f32.mrb[55].mxu0  ;;  %v6003_v41 = vpop.f32.mrb[61].mxu1 }
 0x203   : > { %v7972_v16 = vadd.f32 %v6056_v51, %v8338_v8  ;;  %v6059_v11 = vadd.f32 %v6058_v32, %v6057_v47  ;;  %v6004_v35 = vadd.f32 %v6003_v41, %v6002_v39  ;;  %v6005_v7 = vpop.f32.mrb[62].mxu1  ;;  %v8346_v32 = vld [vmem:[#allocation18_spill] sm:$0xff] }
 0x204   : > { %v6006_v56 = vpop.f32.mrb[63].mxu1 }
 0x205   : > { %v7975_v17 = vadd.f32 %v6059_v11, %v8339_v55  ;;  %v7977_v27 = vadd.f32 %v6004_v35, %v5892_v48  ;;  %v6007_v54 = vadd.f32 %v6006_v56, %v6005_v7  ;;  %v8347_v35 = vld [vmem:[#allocation19_spill] sm:$0xff] }
 0x207   : > { %v6060_v45 = vpop.f32.mrb[56].mxu0  ;;  %v7979_v44 = vadd.f32 %v6007_v54, %v5895_v60 }
 0x208   : > { %v6061_v62 = vpop.f32.mrb[57].mxu0 }
 0x209   : > { %v6062_v3 = vadd.f32 %v6061_v62, %v6060_v45  ;;  %v6063_v22 = vpop.f32.mrb[58].mxu0  ;;  %v6008_v37 = vpop.f32.mrb[64].mxu1  ;;  %v8348_v62 = vld [vmem:[#allocation31_spill] sm:$0xff] }
 0x20a   : > { %v6064_v29 = vpop.f32.mrb[59].mxu0  ;;  %v6009_v59 = vpop.f32.mrb[65].mxu1 }
 0x20b   : > { %v7982_v36 = vadd.f32 %v6062_v3, %v8340_v5  ;;  %v6065_v19 = vadd.f32 %v6064_v29, %v6063_v22  ;;  %v6010_v43 = vadd.f32 %v6009_v59, %v6008_v37  ;;  %v6011_v0 = vpop.f32.mrb[66].mxu1 }
 0x20c   : > { %v6012_v48 = vpop.f32.mrb[67].mxu1 }
 0x20d   : > { %v7985_v63 = vadd.f32 %v6065_v19, %v8341_v49  ;;  %v7988_v58 = vadd.f32 %v6010_v43, %v8342_v31  ;;  %v6013_v60 = vadd.f32 %v6012_v48, %v6011_v0  ;;  %v8349_v43 = vld [vmem:[#allocation20_spill] sm:$0xff] }
 0x20f   : > { %v6066_v25 = vpop.f32.mrb[60].mxu0  ;;  %v7991_v23 = vadd.f32 %v6013_v60, %v8343_v30  ;;  %v8350_v60 = vld [vmem:[#allocation21_spill] sm:$0xff] }
 0x210   : > { %v6067_v24 = vpop.f32.mrb[61].mxu0 }
 0x211   : > { %v6068_v14 = vadd.f32 %v6067_v24, %v6066_v25  ;;  %v6069_v21 = vpop.f32.mrb[62].mxu0  ;;  %v6014_v46 = vpop.f32.mrb[68].mxu1 }
 0x212   : > { %v6070_v53 = vpop.f32.mrb[63].mxu0  ;;  %v6015_v50 = vpop.f32.mrb[69].mxu1 }
 0x213   : > { %v7994_v15 = vadd.f32 %v6068_v14, %v8344_v4  ;;  %v6071_v9 = vadd.f32 %v6070_v53, %v6069_v21  ;;  %v6016_v38 = vadd.f32 %v6015_v50, %v6014_v46  ;;  %v6017_v26 = vpop.f32.mrb[70].mxu1 }
 0x214   : > { %v6018_v47 = vpop.f32.mrb[71].mxu1 }
 0x215   : > { %v7997_v51 = vadd.f32 %v6071_v9, %v8345_v1  ;;  %v8000_v39 = vadd.f32 %v6016_v38, %v8346_v32  ;;  %v6019_v8 = vadd.f32 %v6018_v47, %v6017_v26 }
 0x217   : > { %v6072_v11 = vpop.f32.mrb[64].mxu0  ;;  %v8003_v7 = vadd.f32 %v6019_v8, %v8347_v35 }
 0x218   : > { %v6073_v41 = vpop.f32.mrb[65].mxu0 }
 0x219   : > { %v6074_v55 = vadd.f32 %v6073_v41, %v6072_v11  ;;  %v6075_v56 = vpop.f32.mrb[66].mxu0  ;;  %v6020_v45 = vpop.f32.mrb[72].mxu1 }
 0x21a   : > { %v6076_v54 = vpop.f32.mrb[67].mxu0  ;;  %v6021_v29 = vpop.f32.mrb[73].mxu1 }
 0x21b   : > { %v8006_v3 = vadd.f32 %v6074_v55, %v8348_v62  ;;  %v6077_v22 = vadd.f32 %v6076_v54, %v6075_v56  ;;  %v6022_v37 = vadd.f32 %v6021_v29, %v6020_v45  ;;  %v6023_v5 = vpop.f32.mrb[74].mxu1 }
 0x21c   : > { %v6024_v59 = vpop.f32.mrb[75].mxu1 }
 0x21d   : > { %v8009_v19 = vadd.f32 %v6077_v22, %v7898_v42  ;;  %v8012_v0 = vadd.f32 %v6022_v37, %v8349_v43  ;;  %v6025_v49 = vadd.f32 %v6024_v59, %v6023_v5  ;;  %v8352_v22 = vld [vmem:[#allocation23_spill] sm:$0xff] }
 0x21f   : > { %v6078_v48 = vpop.f32.mrb[68].mxu0  ;;  %v8015_v25 = vadd.f32 %v6025_v49, %v8350_v60 }
 0x220   : > { %v6079_v31 = vpop.f32.mrb[69].mxu0 }
 0x221   : > { %v6080_v24 = vadd.f32 %v6079_v31, %v6078_v48  ;;  %v6081_v30 = vpop.f32.mrb[70].mxu0 }
 0x222   : > { %v6082_v14 = vpop.f32.mrb[71].mxu0 }
 0x223   : > { %v8018_v21 = vadd.f32 %v6080_v24, %v7919_v20  ;;  %v6083_v53 = vadd.f32 %v6082_v14, %v6081_v30 }
 0x225   : > { %v8021_v42 = vadd.f32 %v6083_v53, %v7924_v33  ;;  %v8351_v33 = vld [vmem:[#allocation22_spill] sm:$0xff] }
 0x226   : > { %v6026_v47 = vpop.f32.mrb[76].mxu1 }
 0x227   : > { %v6084_v46 = vpop.f32.mrb[72].mxu0  ;;  %v6027_v32 = vpop.f32.mrb[77].mxu1 }
 0x228   : > { %v6085_v4 = vpop.f32.mrb[73].mxu0  ;;  %v6028_v20 = vadd.f32 %v6027_v32, %v6026_v47  ;;  %v6029_v11 = vpop.f32.mrb[78].mxu1 }
 0x229   : > { %v6086_v9 = vadd.f32 %v6085_v4, %v6084_v46  ;;  %v6087_v50 = vpop.f32.mrb[74].mxu0  ;;  %v6030_v41 = vpop.f32.mrb[79].mxu1 }
 0x22a   : > { %v6088_v38 = vpop.f32.mrb[75].mxu0  ;;  %v8030_v55 = vadd.f32 %v6028_v20, %v8351_v33  ;;  %v6031_v56 = vadd.f32 %v6030_v41, %v6029_v11 }
 0x22b   : > { %v8024_v26 = vadd.f32 %v6086_v9, %v7940_v6  ;;  %v6089_v1 = vadd.f32 %v6088_v38, %v6087_v50 }
 0x22c   : > { %v8033_v6 = vadd.f32 %v6031_v56, %v8352_v22 }
 0x22d   : > { %v8027_v8 = vadd.f32 %v6089_v1, %v7943_v10 }
 0x22f   : > { %v6090_v35 = vpop.f32.mrb[76].mxu0 }
 0x230   : > { %v6091_v54 = vpop.f32.mrb[77].mxu0  ;;  %v6160_v5 = vpop.f32.mrb[80].mxu1 }
 0x231   : > { %v6092_v45 = vadd.f32 %v6091_v54, %v6090_v35  ;;  %v6093_v62 = vpop.f32.mrb[78].mxu0  ;;  %v6161_v43 = vpop.f32.mrb[81].mxu1 }
 0x232   : > { %v6094_v29 = vpop.f32.mrb[79].mxu0  ;;  %v6162_v49 = vadd.f32 %v6161_v43, %v6160_v5  ;;  %v6163_v48 = vpop.f32.mrb[82].mxu1 }
 0x233   : > { %v8036_v37 = vadd.f32 %v6092_v45, %v7946_v18  ;;  %v6095_v10 = vadd.f32 %v6094_v29, %v6093_v62  ;;  %v6164_v60 = vpop.f32.mrb[83].mxu1 }
 0x234   : > { %v6165_v30 = vadd.f32 %v6164_v60, %v6163_v48  ;;  %v8042_v14 = vadd.f32 %v6162_v49, %v7962_v28 }
 0x235   : > { %v8039_v59 = vadd.f32 %v6095_v10, %v7949_v61 }
 0x236   : > { %v8045_v18 = vadd.f32 %v6165_v30, %v7965_v12 }
 0x237   : > { %v6096_v31 = vpop.f32.mrb[80].mxu0 }
 0x238   : > { %v6097_v24 = vpop.f32.mrb[81].mxu0 }
 0x239   : > { %v6098_v53 = vadd.f32 %v6097_v24, %v6096_v31  ;;  %v6099_v46 = vpop.f32.mrb[82].mxu0 }
 0x23a   : > { %v6100_v4 = vpop.f32.mrb[83].mxu0  ;;  %v6166_v38 = vpop.f32.mrb[84].mxu1 }
 0x23b   : > { %v8048_v9 = vadd.f32 %v6098_v53, %v7952_v2  ;;  %v6101_v61 = vadd.f32 %v6100_v4, %v6099_v46  ;;  %v6167_v1 = vpop.f32.mrb[85].mxu1 }
 0x23c   : > { %v6168_v47 = vadd.f32 %v6167_v1, %v6166_v38  ;;  %v6169_v32 = vpop.f32.mrb[86].mxu1 }
 0x23d   : > { %v8051_v50 = vadd.f32 %v6101_v61, %v7955_v52  ;;  %v6170_v28 = vpop.f32.mrb[87].mxu1 }
 0x23e   : > { %v6171_v41 = vadd.f32 %v6170_v28, %v6169_v32  ;;  %v8054_v35 = vadd.f32 %v6168_v47, %v7972_v16 }
 0x23f   : > { %v6102_v20 = vpop.f32.mrb[84].mxu0 }
 0x240   : > { %v6103_v11 = vpop.f32.mrb[85].mxu0  ;;  %v8057_v2 = vadd.f32 %v6171_v41, %v7975_v17 }
 0x241   : > { %v6104_v12 = vadd.f32 %v6103_v11, %v6102_v20  ;;  %v6105_v33 = vpop.f32.mrb[86].mxu0 }
 0x242   : > { %v6106_v56 = vpop.f32.mrb[87].mxu0 }
 0x243   : > { %v8060_v52 = vadd.f32 %v6104_v12, %v7957_v13  ;;  %v6107_v54 = vadd.f32 %v6106_v56, %v6105_v33 }
 0x244   : > { %v6172_v62 = vpop.f32.mrb[88].mxu1 }
 0x245   : > { %v8063_v45 = vadd.f32 %v6107_v54, %v7959_v34  ;;  %v6173_v22 = vpop.f32.mrb[89].mxu1 }
 0x246   : > { %v6174_v29 = vadd.f32 %v6173_v22, %v6172_v62  ;;  %v6175_v10 = vpop.f32.mrb[90].mxu1 }
 0x247   : > { %v6108_v5 = vpop.f32.mrb[88].mxu0  ;;  %v6176_v16 = vpop.f32.mrb[91].mxu1 }
 0x248   : > { %v6109_v43 = vpop.f32.mrb[89].mxu0  ;;  %v6177_v49 = vadd.f32 %v6176_v16, %v6175_v10  ;;  %v8066_v48 = vadd.f32 %v6174_v29, %v7982_v36 }
 0x249   : > { %v6110_v17 = vadd.f32 %v6109_v43, %v6108_v5  ;;  %v6111_v31 = vpop.f32.mrb[90].mxu0 }
 0x24a   : > { %v6112_v60 = vpop.f32.mrb[91].mxu0  ;;  %v8069_v13 = vadd.f32 %v6177_v49, %v7985_v63 }
 0x24b   : > { %v8072_v34 = vadd.f32 %v6110_v17, %v7967_v40  ;;  %v6113_v24 = vadd.f32 %v6112_v60, %v6111_v31 }
 0x24d   : > { %v8075_v30 = vadd.f32 %v6113_v24, %v7969_v57 }
 0x24f   : > { %v6178_v53 = vpop.f32.mrb[92].mxu1 }
 0x250   : > { %v6179_v46 = vpop.f32.mrb[93].mxu1 }
 0x251   : > { %v6114_v4 = vpop.f32.mrb[92].mxu0  ;;  %v6180_v61 = vadd.f32 %v6179_v46, %v6178_v53  ;;  %v6181_v38 = vpop.f32.mrb[94].mxu1 }
 0x252   : > { %v6115_v36 = vpop.f32.mrb[93].mxu0  ;;  %v6182_v1 = vpop.f32.mrb[95].mxu1 }
 0x253   : > { %v6116_v47 = vadd.f32 %v6115_v36, %v6114_v4  ;;  %v6117_v32 = vpop.f32.mrb[94].mxu0  ;;  %v6183_v20 = vadd.f32 %v6182_v1, %v6181_v38  ;;  %v8078_v63 = vadd.f32 %v6180_v61, %v7994_v15 }
 0x254   : > { %v6118_v28 = vpop.f32.mrb[95].mxu0 }
 0x255   : > { %v8081_v40 = vadd.f32 %v6116_v47, %v7977_v27  ;;  %v6119_v11 = vadd.f32 %v6118_v28, %v6117_v32  ;;  %v8084_v57 = vadd.f32 %v6183_v20, %v7997_v51 }
 0x257   : > { %v8087_v41 = vadd.f32 %v6119_v11, %v7979_v44 }
 0x259   : > { %v6184_v12 = vpop.f32.mrb[96].mxu1 }
 0x25a   : > { %v6185_v33 = vpop.f32.mrb[97].mxu1 }
 0x25b   : > { %v6186_v56 = vadd.f32 %v6185_v33, %v6184_v12  ;;  %v6187_v54 = vpop.f32.mrb[98].mxu1 }
 0x25c   : > { %v6120_v62 = vpop.f32.mrb[96].mxu0  ;;  %v6188_v22 = vpop.f32.mrb[99].mxu1 }
 0x25d   : > { %v6121_v29 = vpop.f32.mrb[97].mxu0  ;;  %v6189_v15 = vadd.f32 %v6188_v22, %v6187_v54  ;;  %v8090_v10 = vadd.f32 %v6186_v56, %v8006_v3 }
 0x25e   : > { %v6122_v27 = vadd.f32 %v6121_v29, %v6120_v62  ;;  %v6123_v5 = vpop.f32.mrb[98].mxu0 }
 0x25f   : > { %v6124_v16 = vpop.f32.mrb[99].mxu0  ;;  %v8093_v51 = vadd.f32 %v6189_v15, %v8009_v19 }
 0x260   : > { %v8096_v44 = vadd.f32 %v6122_v27, %v7988_v58  ;;  %v6125_v43 = vadd.f32 %v6124_v16, %v6123_v5 }
 0x262   : > { %v8099_v49 = vadd.f32 %v6125_v43, %v7991_v23 }
 0x264   : > { %v6190_v17 = vpop.f32.mrb[100].mxu1 }
 0x265   : > { %v6191_v31 = vpop.f32.mrb[101].mxu1 }
 0x266   : > { %v6126_v60 = vpop.f32.mrb[100].mxu0  ;;  %v6192_v24 = vadd.f32 %v6191_v31, %v6190_v17  ;;  %v6193_v53 = vpop.f32.mrb[102].mxu1 }
 0x267   : > { %v6127_v3 = vpop.f32.mrb[101].mxu0  ;;  %v6194_v46 = vpop.f32.mrb[103].mxu1 }
 0x268   : > { %v6128_v4 = vadd.f32 %v6127_v3, %v6126_v60  ;;  %v6129_v61 = vpop.f32.mrb[102].mxu0  ;;  %v6195_v38 = vadd.f32 %v6194_v46, %v6193_v53  ;;  %v8102_v19 = vadd.f32 %v6192_v24, %v8018_v21 }
 0x269   : > { %v6130_v36 = vpop.f32.mrb[103].mxu0 }
 0x26a   : > { %v8105_v58 = vadd.f32 %v6128_v4, %v8000_v39  ;;  %v6131_v1 = vadd.f32 %v6130_v36, %v6129_v61  ;;  %v8108_v23 = vadd.f32 %v6195_v38, %v8021_v42 }
 0x26c   : > { %v8111_v47 = vadd.f32 %v6131_v1, %v8003_v7 }
 0x26f   : > { %v6196_v32 = vpop.f32.mrb[104].mxu1 }
 0x270   : > { %v6132_v20 = vpop.f32.mrb[104].mxu0  ;;  %v6197_v28 = vpop.f32.mrb[105].mxu1 }
 0x271   : > { %v6133_v11 = vpop.f32.mrb[105].mxu0  ;;  %v6198_v12 = vadd.f32 %v6197_v28, %v6196_v32  ;;  %v6199_v33 = vpop.f32.mrb[106].mxu1 }
 0x272   : > { %v6134_v56 = vadd.f32 %v6133_v11, %v6132_v20  ;;  %v6135_v21 = vpop.f32.mrb[106].mxu0  ;;  %v6200_v54 = vpop.f32.mrb[107].mxu1 }
 0x273   : > { %v6136_v62 = vpop.f32.mrb[107].mxu0  ;;  %v6201_v22 = vadd.f32 %v6200_v54, %v6199_v33  ;;  %v8114_v39 = vadd.f32 %v6198_v12, %v8024_v26 }
 0x274   : > { %v8117_v42 = vadd.f32 %v6134_v56, %v8012_v0  ;;  %v6137_v29 = vadd.f32 %v6136_v62, %v6135_v21 }
 0x275   : > { %v8120_v7 = vadd.f32 %v6201_v22, %v8027_v8 }
 0x276   : > { %v8123_v15 = vadd.f32 %v6137_v29, %v8015_v25 }
 0x27a   : > { %v6202_v27 = vpop.f32.mrb[108].mxu1 }
 0x27b   : > { %v6138_v5 = vpop.f32.mrb[108].mxu0  ;;  %v6203_v16 = vpop.f32.mrb[109].mxu1 }
 0x27c   : > { %v6139_v43 = vpop.f32.mrb[109].mxu0  ;;  %v6204_v17 = vadd.f32 %v6203_v16, %v6202_v27  ;;  %v6205_v31 = vpop.f32.mrb[110].mxu1 }
 0x27d   : > { %v6140_v60 = vadd.f32 %v6139_v43, %v6138_v5  ;;  %v6141_v24 = vpop.f32.mrb[110].mxu0  ;;  %v6206_v26 = vpop.f32.mrb[111].mxu1 }
 0x27e   : > { %v6142_v53 = vpop.f32.mrb[111].mxu0  ;;  %v6207_v0 = vadd.f32 %v6206_v26, %v6205_v31  ;;  %v8126_v3 = vadd.f32 %v6204_v17, %v8036_v37 }
 0x27f   : > { %v8129_v8 = vadd.f32 %v6140_v60, %v8030_v55  ;;  %v6143_v25 = vadd.f32 %v6142_v53, %v6141_v24 }
 0x280   : > { %v8132_v46 = vadd.f32 %v6207_v0, %v8039_v59 }
 0x281   : > { %v8135_v4 = vadd.f32 %v6143_v25, %v8033_v6 }
 0x283   : > { %v6208_v61 = vpop.f32.mrb[112].mxu1  ;;  %v6298_v38 = vpop.f32.mrb[112].mxu0 }
 0x284   : > { %v5078_v36 = vadd.f32 %v6298_v38, %v8054_v35  ;;  %v6209_v1 = vpop.f32.mrb[113].mxu1  ;;  %v5069_v37 = vpop.f32.mrb[113].mxu0 }
 0x285   : > { %v6210_v32 = vadd.f32 %v6209_v1, %v6208_v61  ;;  %v5070_v55 = vadd.f32 %v5069_v37, %v8042_v14  ;;  %v6211_v20 = vpop.f32.mrb[114].mxu1  ;;  %v6299_v28 = vpop.f32.mrb[114].mxu0 }
 0x286   : > { %5198 = vst [vmem:[%s6882_s20 + $0x10] sm:$0xff] %v5078_v36  ;;  %v5081_v59 = vadd.f32 %v6299_v28, %v8057_v2  ;;  %v6212_v11 = vpop.f32.mrb[115].mxu1  ;;  %v5072_v12 = vpop.f32.mrb[115].mxu0  ;;  %v5271_v62 = vmul.f32 %v5078_v36, %v5078_v36 }
 0x287   : > { %5196 = vst [vmem:[%s6882_s20] sm:$0xff] %v5070_v55  ;;  %v6213_v6 = vadd.f32 %v6212_v11, %v6211_v20  ;;  %v5073_v33 = vadd.f32 %v5072_v12, %v8045_v18  ;;  %v8144_v56 = vadd.f32 %v6210_v32, %v8048_v9  ;;  %v5269_v35 = vmul.f32 %v5070_v55, %v5070_v55 }
 0x288   : > { %5199 = vst [vmem:[%s6882_s20 + $0x18] sm:$0xff] %v5081_v59  ;;  %v5272_v9 = vmul.f32 %v5081_v59, %v5081_v59 }
 0x289   : > { %5197 = vst [vmem:[%s6882_s20 + $0x8] sm:$0xff] %v5073_v33  ;;  %v5229_v21 = vadd.f32 %v5073_v33, %v5070_v55  ;;  %v5270_v14 = vmul.f32 %v5073_v33, %v5073_v33  ;;  %v8149_v54 = vadd.f32 %v6213_v6, %v8051_v50 }
 0x28b   : > { %v5230_v2 = vadd.f32 %v5229_v21, %v5078_v36  ;;  %v5301_v22 = vadd.f32 %v5270_v14, %v5269_v35  ;;  %v6302_v29 = vpop.f32.mrb[116].mxu0 }
 0x28c   : > { %v6214_v27 = vpop.f32.mrb[116].mxu1  ;;  %v5094_v18 = vadd.f32 %v6302_v29, %v8078_v63  ;;  %v5085_v5 = vpop.f32.mrb[117].mxu0 }
 0x28d   : > { %v5302_v16 = vadd.f32 %v5301_v22, %v5271_v62  ;;  %v6215_v43 = vpop.f32.mrb[117].mxu1  ;;  %v5086_v17 = vadd.f32 %v5085_v5, %v8066_v48  ;;  %v5231_v31 = vadd.f32 %v5230_v2, %v5081_v59  ;;  %v6303_v60 = vpop.f32.mrb[118].mxu0 }
 0x28e   : > { %5202 = vst [vmem:[%s6882_s20 + $0x30] sm:$0xff] %v5094_v18  ;;  %v6216_v50 = vadd.f32 %v6215_v43, %v6214_v27  ;;  %v6217_v24 = vpop.f32.mrb[118].mxu1  ;;  %v5097_v26 = vadd.f32 %v6303_v60, %v8084_v57  ;;  %v5088_v53 = vpop.f32.mrb[119].mxu0  ;;  %v5275_v55 = vmul.f32 %v5094_v18, %v5094_v18 }
 0x28f   : > { %5200 = vst [vmem:[%s6882_s20 + $0x20] sm:$0xff] %v5086_v17  ;;  %v5232_v0 = vadd.f32 %v5231_v31, %v5086_v17  ;;  %v5273_v25 = vmul.f32 %v5086_v17, %v5086_v17  ;;  %v5303_v63 = vadd.f32 %v5302_v16, %v5272_v9  ;;  %v6218_v61 = vpop.f32.mrb[119].mxu1  ;;  %v5089_v38 = vadd.f32 %v5088_v53, %v8069_v13 }
 0x290   : > { %5203 = vst [vmem:[%s6882_s20 + $0x38] sm:$0xff] %v5097_v26  ;;  %v6219_v36 = vadd.f32 %v6218_v61, %v6217_v24  ;;  %v8159_v48 = vadd.f32 %v6216_v50, %v8060_v52  ;;  %v5276_v6 = vmul.f32 %v5097_v26, %v5097_v26 }
 0x291   : > { %v5304_v1 = vadd.f32 %v5303_v63, %v5273_v25  ;;  %5201 = vst [vmem:[%s6882_s20 + $0x28] sm:$0xff] %v5089_v38  ;;  %v5233_v37 = vadd.f32 %v5232_v0, %v5089_v38  ;;  %v5274_v32 = vmul.f32 %v5089_v38, %v5089_v38 }
 0x292   : > { %v8163_v57 = vadd.f32 %v6219_v36, %v8063_v45 }
 0x293   : > { %v5234_v20 = vadd.f32 %v5233_v37, %v5094_v18  ;;  %v5305_v28 = vadd.f32 %v5304_v1, %v5274_v32  ;;  %v6306_v59 = vpop.f32.mrb[120].mxu0 }
 0x294   : > { %v6220_v11 = vpop.f32.mrb[120].mxu1  ;;  %v5110_v13 = vadd.f32 %v6306_v59, %v8102_v19  ;;  %v5101_v12 = vpop.f32.mrb[121].mxu0 }
 0x295   : > { %v5306_v52 = vadd.f32 %v5305_v28, %v5275_v55  ;;  %v6221_v33 = vpop.f32.mrb[121].mxu1  ;;  %v5102_v35 = vadd.f32 %v5101_v12, %v8090_v10  ;;  %v5235_v21 = vadd.f32 %v5234_v20, %v5097_v26  ;;  %v6307_v14 = vpop.f32.mrb[122].mxu0 }
 0x296   : > { %5206 = vst [vmem:[%s6882_s20 + $0x50] sm:$0xff] %v5110_v13  ;;  %v6222_v45 = vadd.f32 %v6221_v33, %v6220_v11  ;;  %v6223_v62 = vpop.f32.mrb[122].mxu1  ;;  %v5113_v2 = vadd.f32 %v6307_v14, %v8108_v23  ;;  %v5104_v22 = vpop.f32.mrb[123].mxu0  ;;  %v5279_v31 = vmul.f32 %v5110_v13, %v5110_v13 }
 0x297   : > { %5204 = vst [vmem:[%s6882_s20 + $0x40] sm:$0xff] %v5102_v35  ;;  %v5236_v29 = vadd.f32 %v5235_v21, %v5102_v35  ;;  %v5277_v27 = vmul.f32 %v5102_v35, %v5102_v35  ;;  %v5307_v19 = vadd.f32 %v5306_v52, %v5276_v6  ;;  %v6224_v18 = vpop.f32.mrb[123].mxu1  ;;  %v5105_v5 = vadd.f32 %v5104_v22, %v8093_v51 }
 0x298   : > { %5207 = vst [vmem:[%s6882_s20 + $0x58] sm:$0xff] %v5113_v2  ;;  %v6225_v9 = vadd.f32 %v6224_v18, %v6223_v62  ;;  %v8173_v10 = vadd.f32 %v6222_v45, %v8072_v34  ;;  %v5280_v26 = vmul.f32 %v5113_v2, %v5113_v2 }
 0x299   : > { %v5308_v16 = vadd.f32 %v5307_v19, %v5277_v27  ;;  %5205 = vst [vmem:[%s6882_s20 + $0x48] sm:$0xff] %v5105_v5  ;;  %v5237_v43 = vadd.f32 %v5236_v29, %v5105_v5  ;;  %v5278_v17 = vmul.f32 %v5105_v5, %v5105_v5 }
 0x29a   : > { %v8177_v23 = vadd.f32 %v6225_v9, %v8075_v30 }
 0x29b   : > { %v5238_v60 = vadd.f32 %v5237_v43, %v5110_v13  ;;  %v5309_v50 = vadd.f32 %v5308_v16, %v5278_v17 }
 0x29d   : > { %v6310_v24 = vpop.f32.mrb[124].mxu0  ;;  %v5310_v51 = vadd.f32 %v5309_v50, %v5279_v31  ;;  %v5239_v34 = vadd.f32 %v5238_v60, %v5113_v2 }
 0x29e   : > { %v5126_v53 = vadd.f32 %v6310_v24, %v8126_v3  ;;  %v5117_v0 = vpop.f32.mrb[125].mxu0  ;;  %v6226_v25 = vpop.f32.mrb[124].mxu1 }
 0x29f   : > { %v5118_v63 = vadd.f32 %v5117_v0, %v8114_v39  ;;  %v6311_v61 = vpop.f32.mrb[126].mxu0  ;;  %v6227_v30 = vpop.f32.mrb[125].mxu1  ;;  %v5311_v38 = vadd.f32 %v5310_v51, %v5280_v26 }
 0x2a0   : > { %5210 = vst [vmem:[%s6882_s20 + $0x70] sm:$0xff] %v5126_v53  ;;  %v5129_v36 = vadd.f32 %v6311_v61, %v8132_v46  ;;  %v5120_v1 = vpop.f32.mrb[127].mxu0  ;;  %v6228_v37 = vadd.f32 %v6227_v30, %v6226_v25  ;;  %v6229_v20 = vpop.f32.mrb[126].mxu1  ;;  %v5283_v6 = vmul.f32 %v5126_v53, %v5126_v53 }
 0x2a1   : > { %5208 = vst [vmem:[%s6882_s20 + $0x60] sm:$0xff] %v5118_v63  ;;  %v5240_v32 = vadd.f32 %v5239_v34, %v5118_v63  ;;  %v5281_v55 = vmul.f32 %v5118_v63, %v5118_v63  ;;  %v5121_v3 = vadd.f32 %v5120_v1, %v8120_v7  ;;  %v6230_v28 = vpop.f32.mrb[127].mxu1 }
 0x2a2   : > { %5211 = vst [vmem:[%s6882_s20 + $0x78] sm:$0xff] %v5129_v36  ;;  %v6231_v11 = vadd.f32 %v6230_v28, %v6229_v20  ;;  %v4997_v12 = vadd.f32 %v6228_v37, %v8081_v40  ;;  %v5284_v21 = vmul.f32 %v5129_v36, %v5129_v36 }
 0x2a3   : > { %v5312_v59 = vadd.f32 %v5311_v38, %v5281_v55  ;;  %5209 = vst [vmem:[%s6882_s20 + $0x68] sm:$0xff] %v5121_v3  ;;  %v5241_v39 = vadd.f32 %v5240_v32, %v5121_v3  ;;  %v5282_v13 = vmul.f32 %v5121_v3, %v5121_v3 }
 0x2a4   : > { %v5000_v33 = vadd.f32 %v6231_v11, %v8087_v41 }
 0x2a5   : > { %v5242_v46 = vadd.f32 %v5241_v39, %v5126_v53  ;;  %v5313_v52 = vadd.f32 %v5312_v59, %v5282_v13 }
 0x2a6   : > { %v6314_v35 = vpop.f32.mrb[128].mxu0 }
 0x2a7   : > { %v5314_v14 = vadd.f32 %v5313_v52, %v5283_v6  ;;  %v5142_v7 = vadd.f32 %v6314_v35, %v8159_v48  ;;  %v5133_v45 = vpop.f32.mrb[129].mxu0  ;;  %v5243_v62 = vadd.f32 %v5242_v46, %v5129_v36 }
 0x2a8   : > { %v5134_v2 = vadd.f32 %v5133_v45, %v8144_v56  ;;  %v6315_v22 = vpop.f32.mrb[130].mxu0  ;;  %v6232_v29 = vpop.f32.mrb[128].mxu1 }
 0x2a9   : > { %5214 = vst [vmem:[%s6882_s20 + $0x90] sm:$0xff] %v5142_v7  ;;  %v5315_v40 = vadd.f32 %v5314_v14, %v5284_v21  ;;  %v5145_v27 = vadd.f32 %v6315_v22, %v8163_v57  ;;  %v5136_v19 = vpop.f32.mrb[131].mxu0  ;;  %v6233_v18 = vpop.f32.mrb[129].mxu1  ;;  %v5287_v57 = vmul.f32 %v5142_v7, %v5142_v7 }
 0x2aa   : > { %5212 = vst [vmem:[%s6882_s20 + $0x80] sm:$0xff] %v5134_v2  ;;  %v5244_v41 = vadd.f32 %v5243_v62, %v5134_v2  ;;  %v5285_v5 = vmul.f32 %v5134_v2, %v5134_v2  ;;  %v5137_v9 = vadd.f32 %v5136_v19, %v8149_v54  ;;  %v6234_v48 = vadd.f32 %v6233_v18, %v6232_v29  ;;  %v6235_v16 = vpop.f32.mrb[130].mxu1 }
 0x2ab   : > { %5215 = vst [vmem:[%s6882_s20 + $0x98] sm:$0xff] %v5145_v27  ;;  %v6236_v17 = vpop.f32.mrb[131].mxu1  ;;  %v5288_v54 = vmul.f32 %v5145_v27, %v5145_v27 }
 0x2ac   : > { %v5316_v43 = vadd.f32 %v5315_v40, %v5285_v5  ;;  %5213 = vst [vmem:[%s6882_s20 + $0x88] sm:$0xff] %v5137_v9  ;;  %v5245_v56 = vadd.f32 %v5244_v41, %v5137_v9  ;;  %v5286_v31 = vmul.f32 %v5137_v9, %v5137_v9  ;;  %v6237_v60 = vadd.f32 %v6236_v17, %v6235_v16 }
 0x2ad   : > { %v5005_v50 = vadd.f32 %v6234_v48, %v8096_v44 }
 0x2ae   : > { %v5246_v24 = vadd.f32 %v5245_v56, %v5142_v7  ;;  %v5317_v26 = vadd.f32 %v5316_v43, %v5286_v31  ;;  %v5008_v53 = vadd.f32 %v6237_v60, %v8099_v49 }
 0x2af   : > { %v6318_v51 = vpop.f32.mrb[132].mxu0 }
 0x2b0   : > { %v5318_v0 = vadd.f32 %v5317_v26, %v5287_v57  ;;  %v5158_v34 = vadd.f32 %v6318_v51, %v4997_v12  ;;  %v5149_v25 = vpop.f32.mrb[133].mxu0  ;;  %v5247_v63 = vadd.f32 %v5246_v24, %v5145_v27 }
 0x2b1   : > { %v6238_v61 = vpop.f32.mrb[132].mxu1  ;;  %v5150_v30 = vadd.f32 %v5149_v25, %v8173_v10  ;;  %v6319_v38 = vpop.f32.mrb[134].mxu0 }
 0x2b2   : > { %5218 = vst [vmem:[%s6882_s20 + $0xb0] sm:$0xff] %v5158_v34  ;;  %v6239_v44 = vpop.f32.mrb[133].mxu1  ;;  %v5319_v36 = vadd.f32 %v5318_v0, %v5288_v54  ;;  %v5161_v1 = vadd.f32 %v6319_v38, %v5000_v33  ;;  %v5152_v37 = vpop.f32.mrb[135].mxu0  ;;  %v5291_v12 = vmul.f32 %v5158_v34, %v5158_v34 }
 0x2b3   : > { %v6240_v32 = vadd.f32 %v6239_v44, %v6238_v61  ;;  %5216 = vst [vmem:[%s6882_s20 + $0xa0] sm:$0xff] %v5150_v30  ;;  %v5248_v55 = vadd.f32 %v5247_v63, %v5150_v30  ;;  %v5289_v49 = vmul.f32 %v5150_v30, %v5150_v30  ;;  %v6241_v20 = vpop.f32.mrb[134].mxu1  ;;  %v5153_v3 = vadd.f32 %v5152_v37, %v8177_v23 }
 0x2b4   : > { %5219 = vst [vmem:[%s6882_s20 + $0xb8] sm:$0xff] %v5161_v1  ;;  %v6242_v28 = vpop.f32.mrb[135].mxu1  ;;  %v5292_v33 = vmul.f32 %v5161_v1, %v5161_v1 }
 0x2b5   : > { %v5320_v59 = vadd.f32 %v5319_v36, %v5289_v49  ;;  %v6243_v11 = vadd.f32 %v6242_v28, %v6241_v20  ;;  %5217 = vst [vmem:[%s6882_s20 + $0xa8] sm:$0xff] %v5153_v3  ;;  %v5249_v10 = vadd.f32 %v5248_v55, %v5153_v3  ;;  %v5290_v39 = vmul.f32 %v5153_v3, %v5153_v3 }
 0x2b6   : > { %v5013_v13 = vadd.f32 %v6240_v32, %v8105_v58 }
 0x2b7   : > { %v5250_v6 = vadd.f32 %v5249_v10, %v5158_v34  ;;  %v5321_v46 = vadd.f32 %v5320_v59, %v5290_v39  ;;  %v5016_v52 = vadd.f32 %v6243_v11, %v8111_v47 }
 0x2b9   : > { %v5322_v35 = vadd.f32 %v5321_v46, %v5291_v12  ;;  %v6322_v21 = vpop.f32.mrb[136].mxu0  ;;  %v5251_v23 = vadd.f32 %v5250_v6, %v5161_v1 }
 0x2ba   : > { %v5174_v14 = vadd.f32 %v6322_v21, %v5013_v13  ;;  %v5165_v7 = vpop.f32.mrb[137].mxu0  ;;  %v6244_v45 = vpop.f32.mrb[136].mxu1 }
 0x2bb   : > { %v5166_v62 = vadd.f32 %v5165_v7, %v5005_v50  ;;  %v5323_v2 = vadd.f32 %v5322_v35, %v5292_v33  ;;  %v6323_v22 = vpop.f32.mrb[138].mxu0  ;;  %v6245_v58 = vpop.f32.mrb[137].mxu1 }
 0x2bc   : > { %5222 = vst [vmem:[%s6882_s20 + $0xd0] sm:$0xff] %v5174_v14  ;;  %v5177_v29 = vadd.f32 %v6323_v22, %v5016_v52  ;;  %v5168_v40 = vpop.f32.mrb[139].mxu0  ;;  %v6246_v27 = vadd.f32 %v6245_v58, %v6244_v45  ;;  %v6247_v18 = vpop.f32.mrb[138].mxu1  ;;  %v5295_v56 = vmul.f32 %v5174_v14, %v5174_v14 }
 0x2bd   : > { %5220 = vst [vmem:[%s6882_s20 + $0xc0] sm:$0xff] %v5166_v62  ;;  %v5252_v47 = vadd.f32 %v5251_v23, %v5166_v62  ;;  %v5293_v19 = vmul.f32 %v5166_v62, %v5166_v62  ;;  %v5169_v41 = vadd.f32 %v5168_v40, %v5008_v53  ;;  %v6248_v5 = vpop.f32.mrb[139].mxu1 }
 0x2be   : > { %5223 = vst [vmem:[%s6882_s20 + $0xd8] sm:$0xff] %v5177_v29  ;;  %v6249_v48 = vadd.f32 %v6248_v5, %v6247_v18  ;;  %v5021_v17 = vadd.f32 %v6246_v27, %v8117_v42  ;;  %v5296_v24 = vmul.f32 %v5177_v29, %v5177_v29 }
 0x2bf   : > { %v5324_v9 = vadd.f32 %v5323_v2, %v5293_v19  ;;  %5221 = vst [vmem:[%s6882_s20 + $0xc8] sm:$0xff] %v5169_v41  ;;  %v5253_v16 = vadd.f32 %v5252_v47, %v5169_v41  ;;  %v5294_v43 = vmul.f32 %v5169_v41, %v5169_v41 }
 0x2c0   : > { %v5024_v50 = vadd.f32 %v6249_v48, %v8123_v15 }
 0x2c1   : > { %v5254_v31 = vadd.f32 %v5253_v16, %v5174_v14  ;;  %v5325_v60 = vadd.f32 %v5324_v9, %v5294_v43  ;;  %v6326_v57 = vpop.f32.mrb[140].mxu0 }
 0x2c2   : > { %v5181_v51 = vpop.f32.mrb[141].mxu0 }
 0x2c3   : > { %v5326_v26 = vadd.f32 %v5325_v60, %v5295_v56  ;;  %v5255_v53 = vadd.f32 %v5254_v31, %v5177_v29  ;;  %v5182_v0 = vadd.f32 %v5181_v51, %v5021_v17  ;;  %v6327_v34 = vpop.f32.mrb[142].mxu0 }
 0x2c4   : > { %v6250_v54 = vpop.f32.mrb[140].mxu1  ;;  %v5184_v42 = vpop.f32.mrb[143].mxu0 }
 0x2c5   : > { %v6251_v25 = vpop.f32.mrb[141].mxu1  ;;  %v5327_v63 = vadd.f32 %v5326_v26, %v5296_v24  ;;  %5224 = vst [vmem:[%s6882_s20 + $0xe0] sm:$0xff] %v5182_v0  ;;  %v5256_v30 = vadd.f32 %v5255_v53, %v5182_v0  ;;  %v5297_v38 = vmul.f32 %v5182_v0, %v5182_v0  ;;  %v5185_v15 = vadd.f32 %v5184_v42, %v5024_v50 }
 0x2c6   : > { %v6252_v61 = vadd.f32 %v6251_v25, %v6250_v54  ;;  %v6253_v44 = vpop.f32.mrb[142].mxu1 }
 0x2c7   : > { %v6254_v36 = vpop.f32.mrb[143].mxu1  ;;  %v5328_v37 = vadd.f32 %v5327_v63, %v5297_v38  ;;  %5225 = vst [vmem:[%s6882_s20 + $0xe8] sm:$0xff] %v5185_v15  ;;  %v5257_v55 = vadd.f32 %v5256_v30, %v5185_v15  ;;  %v5298_v49 = vmul.f32 %v5185_v15, %v5185_v15 }
 0x2c8   : > { %v5029_v1 = vadd.f32 %v6252_v61, %v8129_v8  ;;  %v6255_v32 = vadd.f32 %v6254_v36, %v6253_v44 }
 0x2c9   : > { %v5329_v28 = vadd.f32 %v5328_v37, %v5298_v49 }
 0x2ca   : > { %v5190_v20 = vadd.f32 %v6326_v57, %v5029_v1  ;;  %v5032_v3 = vadd.f32 %v6255_v32, %v8135_v4 }
 0x2cc   : > { %5226 = vst [vmem:[%s6882_s20 + $0xf0] sm:$0xff] %v5190_v20  ;;  %v5299_v8 = vmul.f32 %v5190_v20, %v5190_v20  ;;  %v5193_v59 = vadd.f32 %v6327_v34, %v5032_v3  ;;  %v5258_v11 = vadd.f32 %v5257_v55, %v5190_v20 }
 0x2ce   : > { %5227 = vst [vmem:[%s6882_s20 + $0xf8] sm:$0xff] %v5193_v59  ;;  %v5300_v10 = vmul.f32 %v5193_v59, %v5193_v59  ;;  %v5259_v39 = vadd.f32 %v5258_v11, %v5193_v59  ;;  %v5330_v13 = vadd.f32 %v5329_v28, %v5299_v8 }
 0x2cf   : > { %6607 = shalt.err (!%p6604_p10)
}
 0x2d0   : > { %s6608_s23 = scalar_lea.hbm %s8222_s5, 4096  ;;  %s6612_s7 = scalar_lea.hbm %s8294_s2, 8192 }
 0x2d1   : > { %p6609_p2 = scmp.ne.s32.totalorder %s8222_s5, %s6608_s23  ;;  %p6613_p12 = scmp.lt.u32.totalorder %s8222_s5, %s8294_s2 }
 0x2d2   : > { %p6614_p1 = scmp.lt.u32.totalorder %s6612_s7, %s6608_s23  ;;  %p6616_p6 = scmp.lt.u32.totalorder %s6608_s23, %s8222_s5 }
 0x2d3   : > { %p6610_p0 = pnand %p6609_p2, %p6820_p11 }
 0x2d4   : > { %p6615_p4 = por %p6614_p1, %p6613_p12 }
 0x2d5   : > { %p6611_p5 = pneg %p6610_p0 }
 0x2d6   : > { %p6617_p8 = por %p6616_p6, %p6615_p4 }
 0x2d8   : > { %p6618_p9 = pnand %p6617_p8, %p6611_p5 }
 0x2da   : > { %6621 = shalt.err (!%p6618_p9)
}
 0x2db   : > { %s6705_s20 = smov 128   ;;  %s6706_s18 = smov 8   ;;  %v5260_v4 = vrot.slane %v5259_v39, 4  ;;  %v5331_v12 = vadd.f32 %v5330_v13, %v5300_v10  ;;  %v5228_v7 = vld [vmem:[#allocation10] sm:$0x1] }
 0x2dc   : > { %6350 = dma.vmem_to_hbm [thread:$0]  (%p6820_p11), %s8224_s4, 4096, %s8222_s5, %s5341_s10, %s6705_s20, %s6705_s20, %s6706_s18   ;;  %v5268_v2 = vld [vmem:[#allocation10 + $0x1] sm:$0x1] }
 0x2dd   : > { %v5261_v6 = vadd.f32 %v5260_v4, %v5259_v39  ;;  %v5332_v46 = vrot.slane %v5331_v12, 4  ;;  %s6707_s25 = smov [#allocation10]   ;;  %p8353_p13 = scmp.eq.s32.totalorder %s6749_s16, 1 }
 0x2de   : > { %s5368_s26 = sshll.u32 %s6707_s25, 4  ;;  %s5369_s26 = int_to_ptr.vmem [resolvable:$true] %s5368_s26 }
 0x2df   : > { %v5262_v52 = vrot.slane %v5261_v6, 2  ;;  %v5333_v33 = vadd.f32 %v5332_v46, %v5331_v12  ;;  %s6622_s21 = scalar_lea.vmem %s5369_s26, 32  ;;  %p6629_p10 = scmp.lt.s32.totalorder %s5369_s26, %s5369_s26 }
 0x2e0   : > { %p6623_p11 = scmp.ne.s32.totalorder %s5369_s26, %s6622_s21  ;;  %p6630_p2 = scmp.lt.s32.totalorder %s6622_s21, %s6622_s21 }
 0x2e1   : > { %v5263_v35 = vadd.f32 %v5262_v52, %v5261_v6  ;;  %v5334_v21 = vrot.slane %v5333_v33, 2 }
 0x2e2   : > { %p6624_p3 = pnand %p6623_p11, %p8353_p13  ;;  %p6631_p0 = por %p6630_p2, %p6629_p10 }
 0x2e3   : > { %v5264_v23 = vrot.slane %v5263_v35, 1  ;;  %v5335_v14 = vadd.f32 %v5334_v21, %v5333_v33 }
 0x2e4   : > { %p6625_p7 = pneg %p6624_p3 }
 0x2e5   : > { %v5265_v45 = vadd.f32 %v5264_v23, %v5263_v35  ;;  %v5336_v62 = vrot.slane %v5335_v14, 1 }
 0x2e6   : > { %p6632_p5 = pnand %p6631_p0, %p6625_p7 }
 0x2e7   : > { %v5266_v22 = vadd.f32 %v5265_v45, %v5228_v7  ;;  %v5337_v58 = vadd.f32 %v5336_v62, %v5335_v14 }
 0x2e9   : > { %5267 = vst [vmem:[#allocation10] sm:$0x1] %v5266_v22  ;;  %v5338_v29 = vadd.f32 %v5337_v58, %v5268_v2 }
 0x2eb   : > { %5339 = vst [vmem:[#allocation10 + $0x1] sm:$0x1] %v5338_v29 }
 0x2ec   : > { %6635 = shalt.err (!%p6632_p5)
}
 0x2ed   : > { %s6636_s5 = scalar_lea.hbm %s8295_s3, 32  ;;  %p8354_p1 = pmov %p8353_p13 }
 0x2ee   : > { %p6637_p12 = scmp.ne.s32.totalorder %s8295_s3, %s6636_s5  ;;  %p6642_p8 = scmp.lt.u32.totalorder %s6636_s5, %s8295_s3 }
 0x2f0   : > { %p6638_p4 = pnand %p6637_p12, %p8354_p1 }
 0x2f2   : > { %p6639_p6 = pneg %p6638_p4 }
 0x2f4   : > { %p6644_p9 = pnand %p6642_p8, %p6639_p6 }
 0x2f6   : > { %6647 = shalt.err (!%p6644_p9)
}
 0x2f7   : > { %p8355_p11 = pmov %p8354_p1  ;;  %p8356_p13 = pmov %p8354_p1 }
 0x2f9   : > { %6352 = dma.vmem_to_hbm [thread:$0]  (%p8355_p11), %s5369_s26, 32, %s8295_s3, [#allocation11]  }
 0x2fa   : > { %6673 = dma.done.wait (%p8356_p13), [#allocation11], 32   ;;  %p8357_p3 = pmov %p8354_p1 }
 0x2fc   : > { %6675 = vsyncadd (%p8357_p3), [#allocation11], 4294967264 }
 0x2fd PF: > { %s5384_s30 = sand.u32 1, %s6682_s12   ;;  %p8358_p7 = scmp.ne.s32.totalorder %s8300_s19, 0 }
 0x2fe   : > { %p8359_p10 = scmp.ge.s32.totalorder %s6694_s15, 2  ;;  %s5385_s22 = scalar_lea.sflag [#allocation6], %s5384_s30 }
 0x300   : > { %p6365_p2 = pnand %p8359_p10, %p8358_p7 }
 0x302   : > { %6677 = dma.done.wait (!%p6365_p2), %s5385_s22, 4096  }
 0x303   : > { %6679 = vsyncadd (!%p6365_p2), %s5385_s22, 4294963200  ;;  %p19_p0 = scmp.ge.s32.totalorder %s6785_s24, 4   ;;  %s8360_s12 = smov %s6686_s13 }
 0x304   : > { %s8361_s13 = smov %s6690_s14  ;;  %s8362_s14 = smov %s6816_s17 }
 0x305   : > { %s8363_s15 = smov %s6785_s24  ;;  %21 = sbr.rel (!%p19_p0) target bundleno = 7 (0x7), region = 91 }
 0x30c   :  { %5390 = vsyncpa [#allocation5], 1 }
 0x30d   :  { %5392 = vsyncpa [#allocation5 + $0x1], 1 }
 0x30e   :  { %5393 = vsyncpa [#allocation8], 1 }
 0x30f   :  { %5394 = vsyncpa [#allocation6], 1 }
 0x310   :  { %5396 = vsyncpa [#allocation6 + $0x1], 1 }
 0x311   :  { %5397 = vsyncpa [#allocation11], 1 }

</bundles_post_ra>
